<compile_context>
chip_gen: v5e
topology: v5e:2x2
jax: 0.10.0
libtpu: 0.0.40
codegen_flags: <defaults>
</compile_context>

<pallas_src>
import functools

import numpy as np
import jax
import jax.numpy as jnp
from jax import lax
from jax.experimental import pallas as pl
from jax.experimental.pallas import tpu as pltpu

N_ITERS = 30                 # max IPM iterations (early exit usually fires sooner)
SUBLANES = 8
LANES = 128
B_TILE = SUBLANES * LANES    # 1024 batch columns per grid step (full vreg per row)
_D_CAP = 1e7                 # cap on lam/s (bounds conditioning of the f32 solve)
_EXIT_MU_TOL = 1e-7          # complementarity gap tolerance (freeze / early exit)
_EXIT_RD_TOL = 1e-5          # dual residual inf-norm tolerance (freeze / early exit)


def _qp_kernel(z0_ref, mu_ref, dg_ref, d2g_ref, out_ref, *, c_ramp, n_iters):
    f32 = jnp.float32
    n = z0_ref.shape[0]
    nm1 = n - 1
    m = 2 * nm1
    c = f32(c_ramp)
    eps = f32(1e-12)

    def recip(x):            # EUP approximate reciprocal (step sizes / sigma only)
        return pl.reciprocal(x, approx=True)

    def recip_rf(x):         # approx + 1 Newton refinement ~= full f32 accuracy
        y = pl.reciprocal(x, approx=True)
        return y * (f32(2.0) - x * y)

    z0 = z0_ref[...]         # (n, 8, 128): batch in (sublane, lane), n as major dim
    mu = mu_ref[...]
    dg = dg_ref[...]
    d2g = d2g_ref[...]

    zero_row = jnp.zeros_like(z0[0])                 # one full (8,128) vreg
    big_row = jnp.full_like(zero_row, f32(1e10))     # hoisted (no per-call broadcast)

    # loop-invariant per-row constants (hoisted out of the IPM loop)
    q_rows = [jnp.maximum(d2g[j] + f32(1.0), f32(1e-6)) for j in range(n)]
    p_rows = [dg[j] - d2g[j] * z0[j] - mu[j] for j in range(n)]

    def body(carry):
        it, done, z, su, sl, lu, ll = carry

        # residuals (row-wise; every row is one full vreg, zero shuffles)
        w = [z[i] - z[i + 1] for i in range(nm1)]                 # D z
        dl = [lu[i] - ll[i] for i in range(nm1)]                  # lam_u - lam_l
        rd = [None] * n                                           # q z + p + D^T dl
        rd[0] = q_rows[0] * z[0] + p_rows[0] + dl[0]
        for j in range(1, nm1):
            rd[j] = q_rows[j] * z[j] + p_rows[j] + (dl[j] - dl[j - 1])
        rd[n - 1] = q_rows[n - 1] * z[n - 1] + p_rows[n - 1] - dl[nm1 - 1]
        rpu = [w[i] + su[i] - c for i in range(nm1)]
        rpl = [sl[i] - w[i] - c for i in range(nm1)]

        gap = su[0] * lu[0] + sl[0] * ll[0]
        for i in range(1, nm1):
            gap = gap + su[i] * lu[i] + sl[i] * ll[i]
        mu_gap = gap * f32(1.0 / m)
        rd_max = jnp.abs(rd[0])
        for j in range(1, n):
            rd_max = jnp.maximum(rd_max, jnp.abs(rd[j]))
        converged = (mu_gap < f32(_EXIT_MU_TOL)) & (rd_max < f32(_EXIT_RD_TOL))

        inv_su = [recip_rf(jnp.maximum(su[i], eps)) for i in range(nm1)]
        inv_sl = [recip_rf(jnp.maximum(sl[i], eps)) for i in range(nm1)]
        e = [jnp.minimum(lu[i] * inv_su[i], f32(_D_CAP))
             + jnp.minimum(ll[i] * inv_sl[i], f32(_D_CAP)) for i in range(nm1)]

        # --- factor H = diag(q) + D^T diag(e) D ONCE per iteration (tridiagonal).
        # Cancellation-free Thomas pivots: t_0 = q_0, piv_j = t_j + e_j (last: t_j),
        #   t_j = q_j + t_{j-1} * (e_{j-1} / piv_{j-1}); all terms positive.
        inv_piv = [None] * n
        gfac = [None] * n          # gfac[j] = e[j-1] * inv_piv[j]  (forward subst)
        wfac = [None] * nm1        # wfac[j] = e[j]   * inv_piv[j]  (backward subst)
        t = q_rows[0]
        inv_piv[0] = recip_rf(t + e[0])
        wfac[0] = e[0] * inv_piv[0]
        for j in range(1, n):
            t = q_rows[j] + t * wfac[j - 1]
            piv = t + e[j] if j < nm1 else t
            inv_piv[j] = recip_rf(piv)
            gfac[j] = e[j - 1] * inv_piv[j]
            if j < nm1:
                wfac[j] = e[j] * inv_piv[j]

        def solve(rhs):            # forward/backward substitution only (reuses factor)
            rr = [rhs[j] * inv_piv[j] for j in range(n)]   # off the serial chain
            dp = [None] * n
            dp[0] = rr[0]
            for j in range(1, n):
                dp[j] = rr[j] + gfac[j] * dp[j - 1]
            x = [None] * n
            x[n - 1] = dp[n - 1]
            for j in range(n - 2, -1, -1):
                x[j] = dp[j] + wfac[j] * x[j + 1]
            return x

        def newton(rcu, rcl):
            tu = [(lu[i] * rpu[i] - rcu[i]) * inv_su[i] for i in range(nm1)]
            tl = [(ll[i] * rpl[i] - rcl[i]) * inv_sl[i] for i in range(nm1)]
            td = [tu[i] - tl[i] for i in range(nm1)]
            rhs = [None] * n                                   # -(r_dual + D^T td)
            rhs[0] = -(rd[0] + td[0])
            for j in range(1, nm1):
                rhs[j] = -(rd[j] + (td[j] - td[j - 1]))
            rhs[n - 1] = -(rd[n - 1] - td[nm1 - 1])
            dz = solve(rhs)
            ddz = [dz[i] - dz[i + 1] for i in range(nm1)]      # D dz
            dlu = [(lu[i] * (rpu[i] + ddz[i]) - rcu[i]) * inv_su[i] for i in range(nm1)]
            dll = [(ll[i] * (rpl[i] - ddz[i]) - rcl[i]) * inv_sl[i] for i in range(nm1)]
            dsu = [-rpu[i] - ddz[i] for i in range(nm1)]
            dsl = [ddz[i] - rpl[i] for i in range(nm1)]
            return dz, dlu, dll, dsu, dsl

        def min_ratio(v, dv):      # largest a with v + a*dv >= 0, per batch column
            r = None
            for i in range(len(v)):
                ri = jnp.where(dv[i] < -eps,
                               v[i] * recip(jnp.maximum(-dv[i], eps)), big_row)
                r = ri if r is None else jnp.minimum(r, ri)
            return r

        # Mehrotra predictor (affine step)
        rcu_a = [lu[i] * su[i] for i in range(nm1)]
        rcl_a = [ll[i] * sl[i] for i in range(nm1)]
        dz_a, dlu_a, dll_a, dsu_a, dsl_a = newton(rcu_a, rcl_a)
        a_aff = jnp.minimum(
            f32(1.0),
            jnp.minimum(jnp.minimum(min_ratio(su, dsu_a), min_ratio(sl, dsl_a)),
                        jnp.minimum(min_ratio(lu, dlu_a), min_ratio(ll, dll_a))))
        gap_aff = None
        for i in range(nm1):
            gi = ((su[i] + a_aff * dsu_a[i]) * (lu[i] + a_aff * dlu_a[i])
                  + (sl[i] + a_aff * dsl_a[i]) * (ll[i] + a_aff * dll_a[i]))
            gap_aff = gi if gap_aff is None else gap_aff + gi
        mu_aff = gap_aff * f32(1.0 / m)
        sigma = jnp.clip(mu_aff * recip(jnp.maximum(mu_gap, eps)),
                         f32(0.0), f32(1.0)) ** 3
        sm = sigma * mu_gap

        # corrector / combined step (reuses the same factorization)
        rcu_c = [rcu_a[i] + dsu_a[i] * dlu_a[i] - sm for i in range(nm1)]
        rcl_c = [rcl_a[i] + dsl_a[i] * dll_a[i] - sm for i in range(nm1)]
        dz, dlu, dll, dsu, dsl = newton(rcu_c, rcl_c)
        alpha = jnp.minimum(
            f32(1.0),
            f32(0.99) * jnp.minimum(
                jnp.minimum(min_ratio(su, dsu), min_ratio(sl, dsl)),
                jnp.minimum(min_ratio(lu, dlu), min_ratio(ll, dll))))

        def upd(v, dv):  # freeze converged columns; stale directions can never leak in
            return jnp.where(converged, v, v + alpha * dv)

        z_n = tuple(upd(z[j], dz[j]) for j in range(n))
        su_n = tuple(upd(su[i], dsu[i]) for i in range(nm1))
        sl_n = tuple(upd(sl[i], dsl[i]) for i in range(nm1))
        lu_n = tuple(upd(lu[i], dlu[i]) for i in range(nm1))
        ll_n = tuple(upd(ll[i], dll[i]) for i in range(nm1))

        unconv = jnp.max(jnp.where(converged, f32(0.0), f32(1.0)))
        done_n = (unconv == f32(0.0)).astype(jnp.int32)
        return (it + 1, done_n, z_n, su_n, sl_n, lu_n, ll_n)

    def cond(carry):
        it, done = carry[0], carry[1]
        return jnp.logical_and(it < n_iters, done == 0)

    # strictly feasible start: z = 0  =>  D z = 0, slacks = c_ramp > 0
    c_row = jnp.full_like(zero_row, c)
    one_row = jnp.full_like(zero_row, f32(1.0))
    carry0 = (jnp.int32(0), jnp.int32(0),
              tuple(zero_row for _ in range(n)),
              tuple(c_row for _ in range(nm1)),
              tuple(c_row for _ in range(nm1)),
              tuple(one_row for _ in range(nm1)),
              tuple(one_row for _ in range(nm1)))
    final = lax.while_loop(cond, body, carry0)
    z_rows = final[2]
    for j in range(n):                       # lane-dense, unmasked full-vreg stores
        out_ref[j] = z_rows[j]


class SolveSchedulingQPPallas:
    """Pallas-TPU implementation of SolveSchedulingQP.forward."""

    def __init__(self, params):
        self.c_ramp = float(params["c_ramp"])
        self.n = int(params["n"])

    def __call__(self, z0, mu, dg, d2g):
        B, n = z0.shape
        assert n == self.n
        f32 = jnp.float32
        n_tiles = max(1, (B + B_TILE - 1) // B_TILE)   # >= 2 tiles when B > 1024
        Bp = n_tiles * B_TILE

        def prep(x):
            # (B, n) -> (n_tiles*n, 8, 128); padded columns solve a trivial QP.
            xt = jnp.transpose(x.astype(f32))                       # (n, B)
            xt = jnp.pad(xt, ((0, 0), (0, Bp - B)))                 # (n, Bp)
            xt = xt.reshape(n, n_tiles, SUBLANES, LANES)
            return jnp.transpose(xt, (1, 0, 2, 3)).reshape(n_tiles * n, SUBLANES, LANES)

        args = tuple(prep(a) for a in (z0, mu, dg, d2g))

        kern = functools.partial(_qp_kernel, c_ramp=self.c_ramp, n_iters=N_ITERS)
        spec = pl.BlockSpec((n, SUBLANES, LANES), lambda i: (i, 0, 0))
        out = pl.pallas_call(
            kern,
            out_shape=jax.ShapeDtypeStruct((n_tiles * n, SUBLANES, LANES), f32),
            grid=(n_tiles,),
            in_specs=[spec] * 4,
            out_specs=spec,
            compiler_params=pltpu.CompilerParams(
                dimension_semantics=("parallel",)),
        )(*args)

        out = out.reshape(n_tiles, n, SUBLANES, LANES)
        out = jnp.transpose(out, (1, 0, 2, 3)).reshape(n, Bp)
        # TODO(synk): qpth/QPFunction solves in float64; this TPU kernel runs the IPM in float32.
        return out[:, :B].T


def _reference_qp_np(z0, mu, dg, d2g, c_ramp, iters=60):
    """float64 dense-IPM reference (mirrors qpth's pdipm on the same QP)."""
    z0, mu, dg, d2g = [np.asarray(a, np.float64) for a in (z0, mu, dg, d2g)]
    B, n = z0.shape
    D = np.eye(n - 1, n) - np.eye(n - 1, n, k=1)
    G = np.vstack([D, -D])
    m = G.shape[0]
    h = np.full(m, c_ramp)
    qd = d2g + 1.0
    pd = dg - d2g * z0 - mu
    out = np.zeros((B, n))
    for b in range(B):
        Q = np.diag(qd[b]); pb = pd[b]
        z = np.zeros(n); s = h.copy(); lam = np.ones(m)
        for _ in range(iters):
            r_dual = Q @ z + pb + G.T @ lam
            r_prim = G @ z + s - h
            mu_gap = float(s @ lam) / m
            if mu_gap < 1e-12:
                break
            d = lam / s
            H = Q + G.T @ (d[:, None] * G)

            def newton(r_cent):
                tmp = (lam * r_prim - r_cent) / s
                dz = np.linalg.solve(H, -(r_dual + G.T @ tmp))
                Gdz = G @ dz
                dlam = (lam * (r_prim + Gdz) - r_cent) / s
                ds = -r_prim - Gdz
                return dz, dlam, ds

            def max_step(v, dv):
                neg = dv < 0
                return float(np.min(-v[neg] / dv[neg])) if np.any(neg) else 1e10

            dz_a, dlam_a, ds_a = newton(lam * s)
            a_aff = min(1.0, max_step(s, ds_a), max_step(lam, dlam_a))
            mu_aff = float((s + a_aff * ds_a) @ (lam + a_aff * dlam_a)) / m
            sigma = min(max(mu_aff / mu_gap, 0.0), 1.0) ** 3
            r_cent = lam * s + ds_a * dlam_a - sigma * mu_gap
            dz, dlam, ds = newton(r_cent)
            alpha = min(1.0, 0.99 * min(max_step(s, ds), max_step(lam, dlam)))
            z = z + alpha * dz; s = s + alpha * ds; lam = lam + alpha * dlam
        out[b] = z
    return out


if __name__ == "__main__":
    params = {"c_ramp": 0.3, "n": 8}
    B, n = 2, params["n"]

    key = jax.random.PRNGKey(0)
    k1, k2, k3, k4 = jax.random.split(key, 4)
    z0 = jax.random.normal(k1, (B, n), jnp.float32)
    mu = 0.1 * jax.random.normal(k2, (B, n), jnp.float32)
    dg = jax.random.normal(k3, (B, n), jnp.float32)
    # d2g is the (positive) curvature of the convex loss -> Q = diag(d2g + 1) is SPD
    d2g = jnp.abs(jax.random.normal(k4, (B, n), jnp.float32)) + 0.1

    solver = SolveSchedulingQPPallas(params)
    out = jax.block_until_ready(solver(z0, mu, dg, d2g))

    assert out.shape == (B, n)
    assert bool(jnp.all(jnp.isfinite(out)))

    # ramp constraints |z_i - z_{i+1}| <= c_ramp (small IPM slack allowed)
    viol = float(jnp.max(jnp.abs(out[:, :-1] - out[:, 1:]))) - params["c_ramp"]
    assert viol < 1e-3, f"ramp violation {viol}"

    # compare against a float64 dense-IPM reference
    ref = _reference_qp_np(np.asarray(z0), np.asarray(mu), np.asarray(dg),
                           np.asarray(d2g), params["c_ramp"])
    err = float(np.max(np.abs(np.asarray(out, np.float64) - ref)))
    assert err < 5e-3, f"max |pallas - ref| = {err}"

    print("KERNEL_OK")
</pallas_src>

<mosaic_0001>
module attributes {stable_mosaic.version = 11 : i64} {
  func.func @_qp_kernel(%arg0: i32, %arg1: memref<8x8x128xf32, #tpu.memory_space<vmem>>, %arg2: memref<8x8x128xf32, #tpu.memory_space<vmem>>, %arg3: memref<8x8x128xf32, #tpu.memory_space<vmem>>, %arg4: memref<8x8x128xf32, #tpu.memory_space<vmem>>, %arg5: memref<8x8x128xf32, #tpu.memory_space<vmem>>) attributes {dimension_semantics = [#tpu.dimension_semantics<parallel>], iteration_bounds = array<i64: 1>, scalar_prefetch = 0 : i64, scratch_operands = 0 : i64, tpu.core_type = #tpu.core_type<tc>, window_params = [{transform_indices = @transform_0, window_bounds = array<i64: 8, 8, 128>}, {transform_indices = @transform_1, window_bounds = array<i64: 8, 8, 128>}, {transform_indices = @transform_2, window_bounds = array<i64: 8, 8, 128>}, {transform_indices = @transform_3, window_bounds = array<i64: 8, 8, 128>}, {transform_indices = @transform_4, window_bounds = array<i64: 8, 8, 128>}]} {
    %c0 = arith.constant 0 : index
    %c0_0 = arith.constant 0 : index
    %c0_1 = arith.constant 0 : index
    %0 = vector.load %arg1[%c0, %c0_0, %c0_1] : memref<8x8x128xf32, #tpu.memory_space<vmem>>, vector<8x8x128xf32>
    %c0_2 = arith.constant 0 : index
    %c0_3 = arith.constant 0 : index
    %c0_4 = arith.constant 0 : index
    %1 = vector.load %arg2[%c0_2, %c0_3, %c0_4] : memref<8x8x128xf32, #tpu.memory_space<vmem>>, vector<8x8x128xf32>
    %c0_5 = arith.constant 0 : index
    %c0_6 = arith.constant 0 : index
    %c0_7 = arith.constant 0 : index
    %2 = vector.load %arg3[%c0_5, %c0_6, %c0_7] : memref<8x8x128xf32, #tpu.memory_space<vmem>>, vector<8x8x128xf32>
    %c0_8 = arith.constant 0 : index
    %c0_9 = arith.constant 0 : index
    %c0_10 = arith.constant 0 : index
    %3 = vector.load %arg4[%c0_8, %c0_9, %c0_10] : memref<8x8x128xf32, #tpu.memory_space<vmem>>, vector<8x8x128xf32>
    %cst = arith.constant 0.000000e+00 : f32
    %4 = vector.broadcast %cst : f32 to vector<8x128xf32>
    %cst_11 = arith.constant 1.000000e+10 : f32
    %5 = vector.broadcast %cst_11 : f32 to vector<8x128xf32>
    %6 = vector.extract_strided_slice %3 {offsets = [0, 0, 0], sizes = [1, 8, 128], strides = [1, 1, 1]} : vector<8x8x128xf32> to vector<1x8x128xf32>
    %7 = vector.shape_cast %6 : vector<1x8x128xf32> to vector<8x128xf32>
    %cst_12 = arith.constant 1.000000e+00 : f32
    %8 = vector.broadcast %cst_12 : f32 to vector<8x128xf32>
    %9 = arith.addf %7, %8 : vector<8x128xf32>
    %cst_13 = arith.constant 9.99999997E-7 : f32
    %10 = vector.broadcast %cst_13 : f32 to vector<8x128xf32>
    %11 = arith.maximumf %9, %10 : vector<8x128xf32>
    %12 = vector.extract_strided_slice %3 {offsets = [1, 0, 0], sizes = [1, 8, 128], strides = [1, 1, 1]} : vector<8x8x128xf32> to vector<1x8x128xf32>
    %13 = vector.shape_cast %12 : vector<1x8x128xf32> to vector<8x128xf32>
    %cst_14 = arith.constant 1.000000e+00 : f32
    %14 = vector.broadcast %cst_14 : f32 to vector<8x128xf32>
    %15 = arith.addf %13, %14 : vector<8x128xf32>
    %cst_15 = arith.constant 9.99999997E-7 : f32
    %16 = vector.broadcast %cst_15 : f32 to vector<8x128xf32>
    %17 = arith.maximumf %15, %16 : vector<8x128xf32>
    %18 = vector.extract_strided_slice %3 {offsets = [2, 0, 0], sizes = [1, 8, 128], strides = [1, 1, 1]} : vector<8x8x128xf32> to vector<1x8x128xf32>
    %19 = vector.shape_cast %18 : vector<1x8x128xf32> to vector<8x128xf32>
    %cst_16 = arith.constant 1.000000e+00 : f32
    %20 = vector.broadcast %cst_16 : f32 to vector<8x128xf32>
    %21 = arith.addf %19, %20 : vector<8x128xf32>
    %cst_17 = arith.constant 9.99999997E-7 : f32
    %22 = vector.broadcast %cst_17 : f32 to vector<8x128xf32>
    %23 = arith.maximumf %21, %22 : vector<8x128xf32>
    %24 = vector.extract_strided_slice %3 {offsets = [3, 0, 0], sizes = [1, 8, 128], strides = [1, 1, 1]} : vector<8x8x128xf32> to vector<1x8x128xf32>
    %25 = vector.shape_cast %24 : vector<1x8x128xf32> to vector<8x128xf32>
    %cst_18 = arith.constant 1.000000e+00 : f32
    %26 = vector.broadcast %cst_18 : f32 to vector<8x128xf32>
    %27 = arith.addf %25, %26 : vector<8x128xf32>
    %cst_19 = arith.constant 9.99999997E-7 : f32
    %28 = vector.broadcast %cst_19 : f32 to vector<8x128xf32>
    %29 = arith.maximumf %27, %28 : vector<8x128xf32>
    %30 = vector.extract_strided_slice %3 {offsets = [4, 0, 0], sizes = [1, 8, 128], strides = [1, 1, 1]} : vector<8x8x128xf32> to vector<1x8x128xf32>
    %31 = vector.shape_cast %30 : vector<1x8x128xf32> to vector<8x128xf32>
    %cst_20 = arith.constant 1.000000e+00 : f32
    %32 = vector.broadcast %cst_20 : f32 to vector<8x128xf32>
    %33 = arith.addf %31, %32 : vector<8x128xf32>
    %cst_21 = arith.constant 9.99999997E-7 : f32
    %34 = vector.broadcast %cst_21 : f32 to vector<8x128xf32>
    %35 = arith.maximumf %33, %34 : vector<8x128xf32>
    %36 = vector.extract_strided_slice %3 {offsets = [5, 0, 0], sizes = [1, 8, 128], strides = [1, 1, 1]} : vector<8x8x128xf32> to vector<1x8x128xf32>
    %37 = vector.shape_cast %36 : vector<1x8x128xf32> to vector<8x128xf32>
    %cst_22 = arith.constant 1.000000e+00 : f32
    %38 = vector.broadcast %cst_22 : f32 to vector<8x128xf32>
    %39 = arith.addf %37, %38 : vector<8x128xf32>
    %cst_23 = arith.constant 9.99999997E-7 : f32
    %40 = vector.broadcast %cst_23 : f32 to vector<8x128xf32>
    %41 = arith.maximumf %39, %40 : vector<8x128xf32>
    %42 = vector.extract_strided_slice %3 {offsets = [6, 0, 0], sizes = [1, 8, 128], strides = [1, 1, 1]} : vector<8x8x128xf32> to vector<1x8x128xf32>
    %43 = vector.shape_cast %42 : vector<1x8x128xf32> to vector<8x128xf32>
    %cst_24 = arith.constant 1.000000e+00 : f32
    %44 = vector.broadcast %cst_24 : f32 to vector<8x128xf32>
    %45 = arith.addf %43, %44 : vector<8x128xf32>
    %cst_25 = arith.constant 9.99999997E-7 : f32
    %46 = vector.broadcast %cst_25 : f32 to vector<8x128xf32>
    %47 = arith.maximumf %45, %46 : vector<8x128xf32>
    %48 = vector.extract_strided_slice %3 {offsets = [7, 0, 0], sizes = [1, 8, 128], strides = [1, 1, 1]} : vector<8x8x128xf32> to vector<1x8x128xf32>
    %49 = vector.shape_cast %48 : vector<1x8x128xf32> to vector<8x128xf32>
    %cst_26 = arith.constant 1.000000e+00 : f32
    %50 = vector.broadcast %cst_26 : f32 to vector<8x128xf32>
    %51 = arith.addf %49, %50 : vector<8x128xf32>
    %cst_27 = arith.constant 9.99999997E-7 : f32
    %52 = vector.broadcast %cst_27 : f32 to vector<8x128xf32>
    %53 = arith.maximumf %51, %52 : vector<8x128xf32>
    %54 = vector.extract_strided_slice %2 {offsets = [0, 0, 0], sizes = [1, 8, 128], strides = [1, 1, 1]} : vector<8x8x128xf32> to vector<1x8x128xf32>
    %55 = vector.shape_cast %54 : vector<1x8x128xf32> to vector<8x128xf32>
    %56 = vector.extract_strided_slice %3 {offsets = [0, 0, 0], sizes = [1, 8, 128], strides = [1, 1, 1]} : vector<8x8x128xf32> to vector<1x8x128xf32>
    %57 = vector.shape_cast %56 : vector<1x8x128xf32> to vector<8x128xf32>
    %58 = vector.extract_strided_slice %0 {offsets = [0, 0, 0], sizes = [1, 8, 128], strides = [1, 1, 1]} : vector<8x8x128xf32> to vector<1x8x128xf32>
    %59 = vector.shape_cast %58 : vector<1x8x128xf32> to vector<8x128xf32>
    %60 = arith.mulf %57, %59 : vector<8x128xf32>
    %61 = arith.subf %55, %60 : vector<8x128xf32>
    %62 = vector.extract_strided_slice %1 {offsets = [0, 0, 0], sizes = [1, 8, 128], strides = [1, 1, 1]} : vector<8x8x128xf32> to vector<1x8x128xf32>
    %63 = vector.shape_cast %62 : vector<1x8x128xf32> to vector<8x128xf32>
    %64 = arith.subf %61, %63 : vector<8x128xf32>
    %65 = vector.extract_strided_slice %2 {offsets = [1, 0, 0], sizes = [1, 8, 128], strides = [1, 1, 1]} : vector<8x8x128xf32> to vector<1x8x128xf32>
    %66 = vector.shape_cast %65 : vector<1x8x128xf32> to vector<8x128xf32>
    %67 = vector.extract_strided_slice %3 {offsets = [1, 0, 0], sizes = [1, 8, 128], strides = [1, 1, 1]} : vector<8x8x128xf32> to vector<1x8x128xf32>
    %68 = vector.shape_cast %67 : vector<1x8x128xf32> to vector<8x128xf32>
    %69 = vector.extract_strided_slice %0 {offsets = [1, 0, 0], sizes = [1, 8, 128], strides = [1, 1, 1]} : vector<8x8x128xf32> to vector<1x8x128xf32>
    %70 = vector.shape_cast %69 : vector<1x8x128xf32> to vector<8x128xf32>
    %71 = arith.mulf %68, %70 : vector<8x128xf32>
    %72 = arith.subf %66, %71 : vector<8x128xf32>
    %73 = vector.extract_strided_slice %1 {offsets = [1, 0, 0], sizes = [1, 8, 128], strides = [1, 1, 1]} : vector<8x8x128xf32> to vector<1x8x128xf32>
    %74 = vector.shape_cast %73 : vector<1x8x128xf32> to vector<8x128xf32>
    %75 = arith.subf %72, %74 : vector<8x128xf32>
    %76 = vector.extract_strided_slice %2 {offsets = [2, 0, 0], sizes = [1, 8, 128], strides = [1, 1, 1]} : vector<8x8x128xf32> to vector<1x8x128xf32>
    %77 = vector.shape_cast %76 : vector<1x8x128xf32> to vector<8x128xf32>
    %78 = vector.extract_strided_slice %3 {offsets = [2, 0, 0], sizes = [1, 8, 128], strides = [1, 1, 1]} : vector<8x8x128xf32> to vector<1x8x128xf32>
    %79 = vector.shape_cast %78 : vector<1x8x128xf32> to vector<8x128xf32>
    %80 = vector.extract_strided_slice %0 {offsets = [2, 0, 0], sizes = [1, 8, 128], strides = [1, 1, 1]} : vector<8x8x128xf32> to vector<1x8x128xf32>
    %81 = vector.shape_cast %80 : vector<1x8x128xf32> to vector<8x128xf32>
    %82 = arith.mulf %79, %81 : vector<8x128xf32>
    %83 = arith.subf %77, %82 : vector<8x128xf32>
    %84 = vector.extract_strided_slice %1 {offsets = [2, 0, 0], sizes = [1, 8, 128], strides = [1, 1, 1]} : vector<8x8x128xf32> to vector<1x8x128xf32>
    %85 = vector.shape_cast %84 : vector<1x8x128xf32> to vector<8x128xf32>
    %86 = arith.subf %83, %85 : vector<8x128xf32>
    %87 = vector.extract_strided_slice %2 {offsets = [3, 0, 0], sizes = [1, 8, 128], strides = [1, 1, 1]} : vector<8x8x128xf32> to vector<1x8x128xf32>
    %88 = vector.shape_cast %87 : vector<1x8x128xf32> to vector<8x128xf32>
    %89 = vector.extract_strided_slice %3 {offsets = [3, 0, 0], sizes = [1, 8, 128], strides = [1, 1, 1]} : vector<8x8x128xf32> to vector<1x8x128xf32>
    %90 = vector.shape_cast %89 : vector<1x8x128xf32> to vector<8x128xf32>
    %91 = vector.extract_strided_slice %0 {offsets = [3, 0, 0], sizes = [1, 8, 128], strides = [1, 1, 1]} : vector<8x8x128xf32> to vector<1x8x128xf32>
    %92 = vector.shape_cast %91 : vector<1x8x128xf32> to vector<8x128xf32>
    %93 = arith.mulf %90, %92 : vector<8x128xf32>
    %94 = arith.subf %88, %93 : vector<8x128xf32>
    %95 = vector.extract_strided_slice %1 {offsets = [3, 0, 0], sizes = [1, 8, 128], strides = [1, 1, 1]} : vector<8x8x128xf32> to vector<1x8x128xf32>
    %96 = vector.shape_cast %95 : vector<1x8x128xf32> to vector<8x128xf32>
    %97 = arith.subf %94, %96 : vector<8x128xf32>
    %98 = vector.extract_strided_slice %2 {offsets = [4, 0, 0], sizes = [1, 8, 128], strides = [1, 1, 1]} : vector<8x8x128xf32> to vector<1x8x128xf32>
    %99 = vector.shape_cast %98 : vector<1x8x128xf32> to vector<8x128xf32>
    %100 = vector.extract_strided_slice %3 {offsets = [4, 0, 0], sizes = [1, 8, 128], strides = [1, 1, 1]} : vector<8x8x128xf32> to vector<1x8x128xf32>
    %101 = vector.shape_cast %100 : vector<1x8x128xf32> to vector<8x128xf32>
    %102 = vector.extract_strided_slice %0 {offsets = [4, 0, 0], sizes = [1, 8, 128], strides = [1, 1, 1]} : vector<8x8x128xf32> to vector<1x8x128xf32>
    %103 = vector.shape_cast %102 : vector<1x8x128xf32> to vector<8x128xf32>
    %104 = arith.mulf %101, %103 : vector<8x128xf32>
    %105 = arith.subf %99, %104 : vector<8x128xf32>
    %106 = vector.extract_strided_slice %1 {offsets = [4, 0, 0], sizes = [1, 8, 128], strides = [1, 1, 1]} : vector<8x8x128xf32> to vector<1x8x128xf32>
    %107 = vector.shape_cast %106 : vector<1x8x128xf32> to vector<8x128xf32>
    %108 = arith.subf %105, %107 : vector<8x128xf32>
    %109 = vector.extract_strided_slice %2 {offsets = [5, 0, 0], sizes = [1, 8, 128], strides = [1, 1, 1]} : vector<8x8x128xf32> to vector<1x8x128xf32>
    %110 = vector.shape_cast %109 : vector<1x8x128xf32> to vector<8x128xf32>
    %111 = vector.extract_strided_slice %3 {offsets = [5, 0, 0], sizes = [1, 8, 128], strides = [1, 1, 1]} : vector<8x8x128xf32> to vector<1x8x128xf32>
    %112 = vector.shape_cast %111 : vector<1x8x128xf32> to vector<8x128xf32>
    %113 = vector.extract_strided_slice %0 {offsets = [5, 0, 0], sizes = [1, 8, 128], strides = [1, 1, 1]} : vector<8x8x128xf32> to vector<1x8x128xf32>
    %114 = vector.shape_cast %113 : vector<1x8x128xf32> to vector<8x128xf32>
    %115 = arith.mulf %112, %114 : vector<8x128xf32>
    %116 = arith.subf %110, %115 : vector<8x128xf32>
    %117 = vector.extract_strided_slice %1 {offsets = [5, 0, 0], sizes = [1, 8, 128], strides = [1, 1, 1]} : vector<8x8x128xf32> to vector<1x8x128xf32>
    %118 = vector.shape_cast %117 : vector<1x8x128xf32> to vector<8x128xf32>
    %119 = arith.subf %116, %118 : vector<8x128xf32>
    %120 = vector.extract_strided_slice %2 {offsets = [6, 0, 0], sizes = [1, 8, 128], strides = [1, 1, 1]} : vector<8x8x128xf32> to vector<1x8x128xf32>
    %121 = vector.shape_cast %120 : vector<1x8x128xf32> to vector<8x128xf32>
    %122 = vector.extract_strided_slice %3 {offsets = [6, 0, 0], sizes = [1, 8, 128], strides = [1, 1, 1]} : vector<8x8x128xf32> to vector<1x8x128xf32>
    %123 = vector.shape_cast %122 : vector<1x8x128xf32> to vector<8x128xf32>
    %124 = vector.extract_strided_slice %0 {offsets = [6, 0, 0], sizes = [1, 8, 128], strides = [1, 1, 1]} : vector<8x8x128xf32> to vector<1x8x128xf32>
    %125 = vector.shape_cast %124 : vector<1x8x128xf32> to vector<8x128xf32>
    %126 = arith.mulf %123, %125 : vector<8x128xf32>
    %127 = arith.subf %121, %126 : vector<8x128xf32>
    %128 = vector.extract_strided_slice %1 {offsets = [6, 0, 0], sizes = [1, 8, 128], strides = [1, 1, 1]} : vector<8x8x128xf32> to vector<1x8x128xf32>
    %129 = vector.shape_cast %128 : vector<1x8x128xf32> to vector<8x128xf32>
    %130 = arith.subf %127, %129 : vector<8x128xf32>
    %131 = vector.extract_strided_slice %2 {offsets = [7, 0, 0], sizes = [1, 8, 128], strides = [1, 1, 1]} : vector<8x8x128xf32> to vector<1x8x128xf32>
    %132 = vector.shape_cast %131 : vector<1x8x128xf32> to vector<8x128xf32>
    %133 = vector.extract_strided_slice %3 {offsets = [7, 0, 0], sizes = [1, 8, 128], strides = [1, 1, 1]} : vector<8x8x128xf32> to vector<1x8x128xf32>
    %134 = vector.shape_cast %133 : vector<1x8x128xf32> to vector<8x128xf32>
    %135 = vector.extract_strided_slice %0 {offsets = [7, 0, 0], sizes = [1, 8, 128], strides = [1, 1, 1]} : vector<8x8x128xf32> to vector<1x8x128xf32>
    %136 = vector.shape_cast %135 : vector<1x8x128xf32> to vector<8x128xf32>
    %137 = arith.mulf %134, %136 : vector<8x128xf32>
    %138 = arith.subf %132, %137 : vector<8x128xf32>
    %139 = vector.extract_strided_slice %1 {offsets = [7, 0, 0], sizes = [1, 8, 128], strides = [1, 1, 1]} : vector<8x8x128xf32> to vector<1x8x128xf32>
    %140 = vector.shape_cast %139 : vector<1x8x128xf32> to vector<8x128xf32>
    %141 = arith.subf %138, %140 : vector<8x128xf32>
    %cst_28 = arith.constant 3.000000e-01 : f32
    %142 = vector.broadcast %cst_28 : f32 to vector<8x128xf32>
    %cst_29 = arith.constant 1.000000e+00 : f32
    %143 = vector.broadcast %cst_29 : f32 to vector<8x128xf32>
    %cst_30 = arith.constant 3.000000e-01 : f32
    %cst_31 = arith.constant 9.99999996E-13 : f32
    %c0_i32 = arith.constant 0 : i32
    %c0_i32_32 = arith.constant 0 : i32
    %144:38 = scf.while (%arg6 = %c0_i32, %arg7 = %c0_i32_32, %arg8 = %4, %arg9 = %4, %arg10 = %4, %arg11 = %4, %arg12 = %4, %arg13 = %4, %arg14 = %4, %arg15 = %4, %arg16 = %142, %arg17 = %142, %arg18 = %142, %arg19 = %142, %arg20 = %142, %arg21 = %142, %arg22 = %142, %arg23 = %142, %arg24 = %142, %arg25 = %142, %arg26 = %142, %arg27 = %142, %arg28 = %142, %arg29 = %142, %arg30 = %143, %arg31 = %143, %arg32 = %143, %arg33 = %143, %arg34 = %143, %arg35 = %143, %arg36 = %143, %arg37 = %143, %arg38 = %143, %arg39 = %143, %arg40 = %143, %arg41 = %143, %arg42 = %143, %arg43 = %143) : (i32, i32, vector<8x128xf32>, vector<8x128xf32>, vector<8x128xf32>, vector<8x128xf32>, vector<8x128xf32>, vector<8x128xf32>, vector<8x128xf32>, vector<8x128xf32>, vector<8x128xf32>, vector<8x128xf32>, vector<8x128xf32>, vector<8x128xf32>, vector<8x128xf32>, vector<8x128xf32>, vector<8x128xf32>, vector<8x128xf32>, vector<8x128xf32>, vector<8x128xf32>, vector<8x128xf32>, vector<8x128xf32>, vector<8x128xf32>, vector<8x128xf32>, vector<8x128xf32>, vector<8x128xf32>, vector<8x128xf32>, vector<8x128xf32>, vector<8x128xf32>, vector<8x128xf32>, vector<8x128xf32>, vector<8x128xf32>, vector<8x128xf32>, vector<8x128xf32>, vector<8x128xf32>, vector<8x128xf32>, vector<8x128xf32>, vector<8x128xf32>) -> (i32, i32, vector<8x128xf32>, vector<8x128xf32>, vector<8x128xf32>, vector<8x128xf32>, vector<8x128xf32>, vector<8x128xf32>, vector<8x128xf32>, vector<8x128xf32>, vector<8x128xf32>, vector<8x128xf32>, vector<8x128xf32>, vector<8x128xf32>, vector<8x128xf32>, vector<8x128xf32>, vector<8x128xf32>, vector<8x128xf32>, vector<8x128xf32>, vector<8x128xf32>, vector<8x128xf32>, vector<8x128xf32>, vector<8x128xf32>, vector<8x128xf32>, vector<8x128xf32>, vector<8x128xf32>, vector<8x128xf32>, vector<8x128xf32>, vector<8x128xf32>, vector<8x128xf32>, vector<8x128xf32>, vector<8x128xf32>, vector<8x128xf32>, vector<8x128xf32>, vector<8x128xf32>, vector<8x128xf32>, vector<8x128xf32>, vector<8x128xf32>) {
      %c30_i32 = arith.constant 30 : i32
      %169 = arith.cmpi slt, %arg6, %c30_i32 : i32
      %c0_i32_50 = arith.constant 0 : i32
      %170 = arith.cmpi eq, %arg7, %c0_i32_50 : i32
      %171 = arith.andi %169, %170 : i1
      scf.condition(%171) %arg6, %arg7, %arg8, %arg9, %arg10, %arg11, %arg12, %arg13, %arg14, %arg15, %arg16, %arg17, %arg18, %arg19, %arg20, %arg21, %arg22, %arg23, %arg24, %arg25, %arg26, %arg27, %arg28, %arg29, %arg30, %arg31, %arg32, %arg33, %arg34, %arg35, %arg36, %arg37, %arg38, %arg39, %arg40, %arg41, %arg42, %arg43 : i32, i32, vector<8x128xf32>, vector<8x128xf32>, vector<8x128xf32>, vector<8x128xf32>, vector<8x128xf32>, vector<8x128xf32>, vector<8x128xf32>, vector<8x128xf32>, vector<8x128xf32>, vector<8x128xf32>, vector<8x128xf32>, vector<8x128xf32>, vector<8x128xf32>, vector<8x128xf32>, vector<8x128xf32>, vector<8x128xf32>, vector<8x128xf32>, vector<8x128xf32>, vector<8x128xf32>, vector<8x128xf32>, vector<8x128xf32>, vector<8x128xf32>, vector<8x128xf32>, vector<8x128xf32>, vector<8x128xf32>, vector<8x128xf32>, vector<8x128xf32>, vector<8x128xf32>, vector<8x128xf32>, vector<8x128xf32>, vector<8x128xf32>, vector<8x128xf32>, vector<8x128xf32>, vector<8x128xf32>, vector<8x128xf32>, vector<8x128xf32>
    } do {
    ^bb0(%arg6: i32, %arg7: i32, %arg8: vector<8x128xf32>, %arg9: vector<8x128xf32>, %arg10: vector<8x128xf32>, %arg11: vector<8x128xf32>, %arg12: vector<8x128xf32>, %arg13: vector<8x128xf32>, %arg14: vector<8x128xf32>, %arg15: vector<8x128xf32>, %arg16: vector<8x128xf32>, %arg17: vector<8x128xf32>, %arg18: vector<8x128xf32>, %arg19: vector<8x128xf32>, %arg20: vector<8x128xf32>, %arg21: vector<8x128xf32>, %arg22: vector<8x128xf32>, %arg23: vector<8x128xf32>, %arg24: vector<8x128xf32>, %arg25: vector<8x128xf32>, %arg26: vector<8x128xf32>, %arg27: vector<8x128xf32>, %arg28: vector<8x128xf32>, %arg29: vector<8x128xf32>, %arg30: vector<8x128xf32>, %arg31: vector<8x128xf32>, %arg32: vector<8x128xf32>, %arg33: vector<8x128xf32>, %arg34: vector<8x128xf32>, %arg35: vector<8x128xf32>, %arg36: vector<8x128xf32>, %arg37: vector<8x128xf32>, %arg38: vector<8x128xf32>, %arg39: vector<8x128xf32>, %arg40: vector<8x128xf32>, %arg41: vector<8x128xf32>, %arg42: vector<8x128xf32>, %arg43: vector<8x128xf32>):
      %169 = arith.subf %arg8, %arg9 : vector<8x128xf32>
      %170 = arith.subf %arg9, %arg10 : vector<8x128xf32>
      %171 = arith.subf %arg10, %arg11 : vector<8x128xf32>
      %172 = arith.subf %arg11, %arg12 : vector<8x128xf32>
      %173 = arith.subf %arg12, %arg13 : vector<8x128xf32>
      %174 = arith.subf %arg13, %arg14 : vector<8x128xf32>
      %175 = arith.subf %arg14, %arg15 : vector<8x128xf32>
      %176 = arith.subf %arg30, %arg37 : vector<8x128xf32>
      %177 = arith.subf %arg31, %arg38 : vector<8x128xf32>
      %178 = arith.subf %arg32, %arg39 : vector<8x128xf32>
      %179 = arith.subf %arg33, %arg40 : vector<8x128xf32>
      %180 = arith.subf %arg34, %arg41 : vector<8x128xf32>
      %181 = arith.subf %arg35, %arg42 : vector<8x128xf32>
      %182 = arith.subf %arg36, %arg43 : vector<8x128xf32>
      %183 = arith.mulf %11, %arg8 : vector<8x128xf32>
      %184 = arith.addf %183, %64 : vector<8x128xf32>
      %185 = arith.addf %184, %176 : vector<8x128xf32>
      %186 = arith.mulf %17, %arg9 : vector<8x128xf32>
      %187 = arith.addf %186, %75 : vector<8x128xf32>
      %188 = arith.subf %177, %176 : vector<8x128xf32>
      %189 = arith.addf %187, %188 : vector<8x128xf32>
      %190 = arith.mulf %23, %arg10 : vector<8x128xf32>
      %191 = arith.addf %190, %86 : vector<8x128xf32>
      %192 = arith.subf %178, %177 : vector<8x128xf32>
      %193 = arith.addf %191, %192 : vector<8x128xf32>
      %194 = arith.mulf %29, %arg11 : vector<8x128xf32>
      %195 = arith.addf %194, %97 : vector<8x128xf32>
      %196 = arith.subf %179, %178 : vector<8x128xf32>
      %197 = arith.addf %195, %196 : vector<8x128xf32>
      %198 = arith.mulf %35, %arg12 : vector<8x128xf32>
      %199 = arith.addf %198, %108 : vector<8x128xf32>
      %200 = arith.subf %180, %179 : vector<8x128xf32>
      %201 = arith.addf %199, %200 : vector<8x128xf32>
      %202 = arith.mulf %41, %arg13 : vector<8x128xf32>
      %203 = arith.addf %202, %119 : vector<8x128xf32>
      %204 = arith.subf %181, %180 : vector<8x128xf32>
      %205 = arith.addf %203, %204 : vector<8x128xf32>
      %206 = arith.mulf %47, %arg14 : vector<8x128xf32>
      %207 = arith.addf %206, %130 : vector<8x128xf32>
      %208 = arith.subf %182, %181 : vector<8x128xf32>
      %209 = arith.addf %207, %208 : vector<8x128xf32>
      %210 = arith.mulf %53, %arg15 : vector<8x128xf32>
      %211 = arith.addf %210, %141 : vector<8x128xf32>
      %212 = arith.subf %211, %182 : vector<8x128xf32>
      %213 = arith.addf %169, %arg16 : vector<8x128xf32>
      %214 = vector.broadcast %cst_30 : f32 to vector<8x128xf32>
      %215 = arith.subf %213, %214 : vector<8x128xf32>
      %216 = arith.addf %170, %arg17 : vector<8x128xf32>
      %217 = vector.broadcast %cst_30 : f32 to vector<8x128xf32>
      %218 = arith.subf %216, %217 : vector<8x128xf32>
      %219 = arith.addf %171, %arg18 : vector<8x128xf32>
      %220 = vector.broadcast %cst_30 : f32 to vector<8x128xf32>
      %221 = arith.subf %219, %220 : vector<8x128xf32>
      %222 = arith.addf %172, %arg19 : vector<8x128xf32>
      %223 = vector.broadcast %cst_30 : f32 to vector<8x128xf32>
      %224 = arith.subf %222, %223 : vector<8x128xf32>
      %225 = arith.addf %173, %arg20 : vector<8x128xf32>
      %226 = vector.broadcast %cst_30 : f32 to vector<8x128xf32>
      %227 = arith.subf %225, %226 : vector<8x128xf32>
      %228 = arith.addf %174, %arg21 : vector<8x128xf32>
      %229 = vector.broadcast %cst_30 : f32 to vector<8x128xf32>
      %230 = arith.subf %228, %229 : vector<8x128xf32>
      %231 = arith.addf %175, %arg22 : vector<8x128xf32>
      %232 = vector.broadcast %cst_30 : f32 to vector<8x128xf32>
      %233 = arith.subf %231, %232 : vector<8x128xf32>
      %234 = arith.subf %arg23, %169 : vector<8x128xf32>
      %235 = vector.broadcast %cst_30 : f32 to vector<8x128xf32>
      %236 = arith.subf %234, %235 : vector<8x128xf32>
      %237 = arith.subf %arg24, %170 : vector<8x128xf32>
      %238 = vector.broadcast %cst_30 : f32 to vector<8x128xf32>
      %239 = arith.subf %237, %238 : vector<8x128xf32>
      %240 = arith.subf %arg25, %171 : vector<8x128xf32>
      %241 = vector.broadcast %cst_30 : f32 to vector<8x128xf32>
      %242 = arith.subf %240, %241 : vector<8x128xf32>
      %243 = arith.subf %arg26, %172 : vector<8x128xf32>
      %244 = vector.broadcast %cst_30 : f32 to vector<8x128xf32>
      %245 = arith.subf %243, %244 : vector<8x128xf32>
      %246 = arith.subf %arg27, %173 : vector<8x128xf32>
      %247 = vector.broadcast %cst_30 : f32 to vector<8x128xf32>
      %248 = arith.subf %246, %247 : vector<8x128xf32>
      %249 = arith.subf %arg28, %174 : vector<8x128xf32>
      %250 = vector.broadcast %cst_30 : f32 to vector<8x128xf32>
      %251 = arith.subf %249, %250 : vector<8x128xf32>
      %252 = arith.subf %arg29, %175 : vector<8x128xf32>
      %253 = vector.broadcast %cst_30 : f32 to vector<8x128xf32>
      %254 = arith.subf %252, %253 : vector<8x128xf32>
      %255 = arith.mulf %arg16, %arg30 : vector<8x128xf32>
      %256 = arith.mulf %arg23, %arg37 : vector<8x128xf32>
      %257 = arith.addf %255, %256 : vector<8x128xf32>
      %258 = arith.mulf %arg17, %arg31 : vector<8x128xf32>
      %259 = arith.addf %257, %258 : vector<8x128xf32>
      %260 = arith.mulf %arg24, %arg38 : vector<8x128xf32>
      %261 = arith.addf %259, %260 : vector<8x128xf32>
      %262 = arith.mulf %arg18, %arg32 : vector<8x128xf32>
      %263 = arith.addf %261, %262 : vector<8x128xf32>
      %264 = arith.mulf %arg25, %arg39 : vector<8x128xf32>
      %265 = arith.addf %263, %264 : vector<8x128xf32>
      %266 = arith.mulf %arg19, %arg33 : vector<8x128xf32>
      %267 = arith.addf %265, %266 : vector<8x128xf32>
      %268 = arith.mulf %arg26, %arg40 : vector<8x128xf32>
      %269 = arith.addf %267, %268 : vector<8x128xf32>
      %270 = arith.mulf %arg20, %arg34 : vector<8x128xf32>
      %271 = arith.addf %269, %270 : vector<8x128xf32>
      %272 = arith.mulf %arg27, %arg41 : vector<8x128xf32>
      %273 = arith.addf %271, %272 : vector<8x128xf32>
      %274 = arith.mulf %arg21, %arg35 : vector<8x128xf32>
      %275 = arith.addf %273, %274 : vector<8x128xf32>
      %276 = arith.mulf %arg28, %arg42 : vector<8x128xf32>
      %277 = arith.addf %275, %276 : vector<8x128xf32>
      %278 = arith.mulf %arg22, %arg36 : vector<8x128xf32>
      %279 = arith.addf %277, %278 : vector<8x128xf32>
      %280 = arith.mulf %arg29, %arg43 : vector<8x128xf32>
      %281 = arith.addf %279, %280 : vector<8x128xf32>
      %cst_50 = arith.constant 0.0714285746 : f32
      %282 = vector.broadcast %cst_50 : f32 to vector<8x128xf32>
      %283 = arith.mulf %281, %282 : vector<8x128xf32>
      %284 = math.absf %185 : vector<8x128xf32>
      %285 = math.absf %189 : vector<8x128xf32>
      %286 = arith.maximumf %284, %285 : vector<8x128xf32>
      %287 = math.absf %193 : vector<8x128xf32>
      %288 = arith.maximumf %286, %287 : vector<8x128xf32>
      %289 = math.absf %197 : vector<8x128xf32>
      %290 = arith.maximumf %288, %289 : vector<8x128xf32>
      %291 = math.absf %201 : vector<8x128xf32>
      %292 = arith.maximumf %290, %291 : vector<8x128xf32>
      %293 = math.absf %205 : vector<8x128xf32>
      %294 = arith.maximumf %292, %293 : vector<8x128xf32>
      %295 = math.absf %209 : vector<8x128xf32>
      %296 = arith.maximumf %294, %295 : vector<8x128xf32>
      %297 = math.absf %212 : vector<8x128xf32>
      %298 = arith.maximumf %296, %297 : vector<8x128xf32>
      %cst_51 = arith.constant 1.000000e-07 : f32
      %299 = vector.broadcast %cst_51 : f32 to vector<8x128xf32>
      %300 = arith.cmpf olt, %283, %299 : vector<8x128xf32>
      %cst_52 = arith.constant 9.99999974E-6 : f32
      %301 = vector.broadcast %cst_52 : f32 to vector<8x128xf32>
      %302 = arith.cmpf olt, %298, %301 : vector<8x128xf32>
      %303 = arith.andi %300, %302 : vector<8x128xi1>
      %304 = vector.broadcast %cst_31 : f32 to vector<8x128xf32>
      %305 = arith.maximumf %arg16, %304 : vector<8x128xf32>
      %306 = tpu.reciprocal %305 {approx = true} : vector<8x128xf32> -> vector<8x128xf32>
      %307 = arith.mulf %305, %306 : vector<8x128xf32>
      %cst_53 = arith.constant 2.000000e+00 : f32
      %308 = vector.broadcast %cst_53 : f32 to vector<8x128xf32>
      %309 = arith.subf %308, %307 : vector<8x128xf32>
      %310 = arith.mulf %306, %309 : vector<8x128xf32>
      %311 = vector.broadcast %cst_31 : f32 to vector<8x128xf32>
      %312 = arith.maximumf %arg17, %311 : vector<8x128xf32>
      %313 = tpu.reciprocal %312 {approx = true} : vector<8x128xf32> -> vector<8x128xf32>
      %314 = arith.mulf %312, %313 : vector<8x128xf32>
      %cst_54 = arith.constant 2.000000e+00 : f32
      %315 = vector.broadcast %cst_54 : f32 to vector<8x128xf32>
      %316 = arith.subf %315, %314 : vector<8x128xf32>
      %317 = arith.mulf %313, %316 : vector<8x128xf32>
      %318 = vector.broadcast %cst_31 : f32 to vector<8x128xf32>
      %319 = arith.maximumf %arg18, %318 : vector<8x128xf32>
      %320 = tpu.reciprocal %319 {approx = true} : vector<8x128xf32> -> vector<8x128xf32>
      %321 = arith.mulf %319, %320 : vector<8x128xf32>
      %cst_55 = arith.constant 2.000000e+00 : f32
      %322 = vector.broadcast %cst_55 : f32 to vector<8x128xf32>
      %323 = arith.subf %322, %321 : vector<8x128xf32>
      %324 = arith.mulf %320, %323 : vector<8x128xf32>
      %325 = vector.broadcast %cst_31 : f32 to vector<8x128xf32>
      %326 = arith.maximumf %arg19, %325 : vector<8x128xf32>
      %327 = tpu.reciprocal %326 {approx = true} : vector<8x128xf32> -> vector<8x128xf32>
      %328 = arith.mulf %326, %327 : vector<8x128xf32>
      %cst_56 = arith.constant 2.000000e+00 : f32
      %329 = vector.broadcast %cst_56 : f32 to vector<8x128xf32>
      %330 = arith.subf %329, %328 : vector<8x128xf32>
      %331 = arith.mulf %327, %330 : vector<8x128xf32>
      %332 = vector.broadcast %cst_31 : f32 to vector<8x128xf32>
      %333 = arith.maximumf %arg20, %332 : vector<8x128xf32>
      %334 = tpu.reciprocal %333 {approx = true} : vector<8x128xf32> -> vector<8x128xf32>
      %335 = arith.mulf %333, %334 : vector<8x128xf32>
      %cst_57 = arith.constant 2.000000e+00 : f32
      %336 = vector.broadcast %cst_57 : f32 to vector<8x128xf32>
      %337 = arith.subf %336, %335 : vector<8x128xf32>
      %338 = arith.mulf %334, %337 : vector<8x128xf32>
      %339 = vector.broadcast %cst_31 : f32 to vector<8x128xf32>
      %340 = arith.maximumf %arg21, %339 : vector<8x128xf32>
      %341 = tpu.reciprocal %340 {approx = true} : vector<8x128xf32> -> vector<8x128xf32>
      %342 = arith.mulf %340, %341 : vector<8x128xf32>
      %cst_58 = arith.constant 2.000000e+00 : f32
      %343 = vector.broadcast %cst_58 : f32 to vector<8x128xf32>
      %344 = arith.subf %343, %342 : vector<8x128xf32>
      %345 = arith.mulf %341, %344 : vector<8x128xf32>
      %346 = vector.broadcast %cst_31 : f32 to vector<8x128xf32>
      %347 = arith.maximumf %arg22, %346 : vector<8x128xf32>
      %348 = tpu.reciprocal %347 {approx = true} : vector<8x128xf32> -> vector<8x128xf32>
      %349 = arith.mulf %347, %348 : vector<8x128xf32>
      %cst_59 = arith.constant 2.000000e+00 : f32
      %350 = vector.broadcast %cst_59 : f32 to vector<8x128xf32>
      %351 = arith.subf %350, %349 : vector<8x128xf32>
      %352 = arith.mulf %348, %351 : vector<8x128xf32>
      %353 = vector.broadcast %cst_31 : f32 to vector<8x128xf32>
      %354 = arith.maximumf %arg23, %353 : vector<8x128xf32>
      %355 = tpu.reciprocal %354 {approx = true} : vector<8x128xf32> -> vector<8x128xf32>
      %356 = arith.mulf %354, %355 : vector<8x128xf32>
      %cst_60 = arith.constant 2.000000e+00 : f32
      %357 = vector.broadcast %cst_60 : f32 to vector<8x128xf32>
      %358 = arith.subf %357, %356 : vector<8x128xf32>
      %359 = arith.mulf %355, %358 : vector<8x128xf32>
      %360 = vector.broadcast %cst_31 : f32 to vector<8x128xf32>
      %361 = arith.maximumf %arg24, %360 : vector<8x128xf32>
      %362 = tpu.reciprocal %361 {approx = true} : vector<8x128xf32> -> vector<8x128xf32>
      %363 = arith.mulf %361, %362 : vector<8x128xf32>
      %cst_61 = arith.constant 2.000000e+00 : f32
      %364 = vector.broadcast %cst_61 : f32 to vector<8x128xf32>
      %365 = arith.subf %364, %363 : vector<8x128xf32>
      %366 = arith.mulf %362, %365 : vector<8x128xf32>
      %367 = vector.broadcast %cst_31 : f32 to vector<8x128xf32>
      %368 = arith.maximumf %arg25, %367 : vector<8x128xf32>
      %369 = tpu.reciprocal %368 {approx = true} : vector<8x128xf32> -> vector<8x128xf32>
      %370 = arith.mulf %368, %369 : vector<8x128xf32>
      %cst_62 = arith.constant 2.000000e+00 : f32
      %371 = vector.broadcast %cst_62 : f32 to vector<8x128xf32>
      %372 = arith.subf %371, %370 : vector<8x128xf32>
      %373 = arith.mulf %369, %372 : vector<8x128xf32>
      %374 = vector.broadcast %cst_31 : f32 to vector<8x128xf32>
      %375 = arith.maximumf %arg26, %374 : vector<8x128xf32>
      %376 = tpu.reciprocal %375 {approx = true} : vector<8x128xf32> -> vector<8x128xf32>
      %377 = arith.mulf %375, %376 : vector<8x128xf32>
      %cst_63 = arith.constant 2.000000e+00 : f32
      %378 = vector.broadcast %cst_63 : f32 to vector<8x128xf32>
      %379 = arith.subf %378, %377 : vector<8x128xf32>
      %380 = arith.mulf %376, %379 : vector<8x128xf32>
      %381 = vector.broadcast %cst_31 : f32 to vector<8x128xf32>
      %382 = arith.maximumf %arg27, %381 : vector<8x128xf32>
      %383 = tpu.reciprocal %382 {approx = true} : vector<8x128xf32> -> vector<8x128xf32>
      %384 = arith.mulf %382, %383 : vector<8x128xf32>
      %cst_64 = arith.constant 2.000000e+00 : f32
      %385 = vector.broadcast %cst_64 : f32 to vector<8x128xf32>
      %386 = arith.subf %385, %384 : vector<8x128xf32>
      %387 = arith.mulf %383, %386 : vector<8x128xf32>
      %388 = vector.broadcast %cst_31 : f32 to vector<8x128xf32>
      %389 = arith.maximumf %arg28, %388 : vector<8x128xf32>
      %390 = tpu.reciprocal %389 {approx = true} : vector<8x128xf32> -> vector<8x128xf32>
      %391 = arith.mulf %389, %390 : vector<8x128xf32>
      %cst_65 = arith.constant 2.000000e+00 : f32
      %392 = vector.broadcast %cst_65 : f32 to vector<8x128xf32>
      %393 = arith.subf %392, %391 : vector<8x128xf32>
      %394 = arith.mulf %390, %393 : vector<8x128xf32>
      %395 = vector.broadcast %cst_31 : f32 to vector<8x128xf32>
      %396 = arith.maximumf %arg29, %395 : vector<8x128xf32>
      %397 = tpu.reciprocal %396 {approx = true} : vector<8x128xf32> -> vector<8x128xf32>
      %398 = arith.mulf %396, %397 : vector<8x128xf32>
      %cst_66 = arith.constant 2.000000e+00 : f32
      %399 = vector.broadcast %cst_66 : f32 to vector<8x128xf32>
      %400 = arith.subf %399, %398 : vector<8x128xf32>
      %401 = arith.mulf %397, %400 : vector<8x128xf32>
      %402 = arith.mulf %arg30, %310 : vector<8x128xf32>
      %cst_67 = arith.constant 1.000000e+07 : f32
      %403 = vector.broadcast %cst_67 : f32 to vector<8x128xf32>
      %404 = arith.minimumf %402, %403 : vector<8x128xf32>
      %405 = arith.mulf %arg37, %359 : vector<8x128xf32>
      %cst_68 = arith.constant 1.000000e+07 : f32
      %406 = vector.broadcast %cst_68 : f32 to vector<8x128xf32>
      %407 = arith.minimumf %405, %406 : vector<8x128xf32>
      %408 = arith.addf %404, %407 : vector<8x128xf32>
      %409 = arith.mulf %arg31, %317 : vector<8x128xf32>
      %cst_69 = arith.constant 1.000000e+07 : f32
      %410 = vector.broadcast %cst_69 : f32 to vector<8x128xf32>
      %411 = arith.minimumf %409, %410 : vector<8x128xf32>
      %412 = arith.mulf %arg38, %366 : vector<8x128xf32>
      %cst_70 = arith.constant 1.000000e+07 : f32
      %413 = vector.broadcast %cst_70 : f32 to vector<8x128xf32>
      %414 = arith.minimumf %412, %413 : vector<8x128xf32>
      %415 = arith.addf %411, %414 : vector<8x128xf32>
      %416 = arith.mulf %arg32, %324 : vector<8x128xf32>
      %cst_71 = arith.constant 1.000000e+07 : f32
      %417 = vector.broadcast %cst_71 : f32 to vector<8x128xf32>
      %418 = arith.minimumf %416, %417 : vector<8x128xf32>
      %419 = arith.mulf %arg39, %373 : vector<8x128xf32>
      %cst_72 = arith.constant 1.000000e+07 : f32
      %420 = vector.broadcast %cst_72 : f32 to vector<8x128xf32>
      %421 = arith.minimumf %419, %420 : vector<8x128xf32>
      %422 = arith.addf %418, %421 : vector<8x128xf32>
      %423 = arith.mulf %arg33, %331 : vector<8x128xf32>
      %cst_73 = arith.constant 1.000000e+07 : f32
      %424 = vector.broadcast %cst_73 : f32 to vector<8x128xf32>
      %425 = arith.minimumf %423, %424 : vector<8x128xf32>
      %426 = arith.mulf %arg40, %380 : vector<8x128xf32>
      %cst_74 = arith.constant 1.000000e+07 : f32
      %427 = vector.broadcast %cst_74 : f32 to vector<8x128xf32>
      %428 = arith.minimumf %426, %427 : vector<8x128xf32>
      %429 = arith.addf %425, %428 : vector<8x128xf32>
      %430 = arith.mulf %arg34, %338 : vector<8x128xf32>
      %cst_75 = arith.constant 1.000000e+07 : f32
      %431 = vector.broadcast %cst_75 : f32 to vector<8x128xf32>
      %432 = arith.minimumf %430, %431 : vector<8x128xf32>
      %433 = arith.mulf %arg41, %387 : vector<8x128xf32>
      %cst_76 = arith.constant 1.000000e+07 : f32
      %434 = vector.broadcast %cst_76 : f32 to vector<8x128xf32>
      %435 = arith.minimumf %433, %434 : vector<8x128xf32>
      %436 = arith.addf %432, %435 : vector<8x128xf32>
      %437 = arith.mulf %arg35, %345 : vector<8x128xf32>
      %cst_77 = arith.constant 1.000000e+07 : f32
      %438 = vector.broadcast %cst_77 : f32 to vector<8x128xf32>
      %439 = arith.minimumf %437, %438 : vector<8x128xf32>
      %440 = arith.mulf %arg42, %394 : vector<8x128xf32>
      %cst_78 = arith.constant 1.000000e+07 : f32
      %441 = vector.broadcast %cst_78 : f32 to vector<8x128xf32>
      %442 = arith.minimumf %440, %441 : vector<8x128xf32>
      %443 = arith.addf %439, %442 : vector<8x128xf32>
      %444 = arith.mulf %arg36, %352 : vector<8x128xf32>
      %cst_79 = arith.constant 1.000000e+07 : f32
      %445 = vector.broadcast %cst_79 : f32 to vector<8x128xf32>
      %446 = arith.minimumf %444, %445 : vector<8x128xf32>
      %447 = arith.mulf %arg43, %401 : vector<8x128xf32>
      %cst_80 = arith.constant 1.000000e+07 : f32
      %448 = vector.broadcast %cst_80 : f32 to vector<8x128xf32>
      %449 = arith.minimumf %447, %448 : vector<8x128xf32>
      %450 = arith.addf %446, %449 : vector<8x128xf32>
      %451 = arith.addf %11, %408 : vector<8x128xf32>
      %452 = tpu.reciprocal %451 {approx = true} : vector<8x128xf32> -> vector<8x128xf32>
      %453 = arith.mulf %451, %452 : vector<8x128xf32>
      %cst_81 = arith.constant 2.000000e+00 : f32
      %454 = vector.broadcast %cst_81 : f32 to vector<8x128xf32>
      %455 = arith.subf %454, %453 : vector<8x128xf32>
      %456 = arith.mulf %452, %455 : vector<8x128xf32>
      %457 = arith.mulf %408, %456 : vector<8x128xf32>
      %458 = arith.mulf %11, %457 : vector<8x128xf32>
      %459 = arith.addf %17, %458 : vector<8x128xf32>
      %460 = arith.addf %459, %415 : vector<8x128xf32>
      %461 = tpu.reciprocal %460 {approx = true} : vector<8x128xf32> -> vector<8x128xf32>
      %462 = arith.mulf %460, %461 : vector<8x128xf32>
      %cst_82 = arith.constant 2.000000e+00 : f32
      %463 = vector.broadcast %cst_82 : f32 to vector<8x128xf32>
      %464 = arith.subf %463, %462 : vector<8x128xf32>
      %465 = arith.mulf %461, %464 : vector<8x128xf32>
      %466 = arith.mulf %408, %465 : vector<8x128xf32>
      %467 = arith.mulf %415, %465 : vector<8x128xf32>
      %468 = arith.mulf %459, %467 : vector<8x128xf32>
      %469 = arith.addf %23, %468 : vector<8x128xf32>
      %470 = arith.addf %469, %422 : vector<8x128xf32>
      %471 = tpu.reciprocal %470 {approx = true} : vector<8x128xf32> -> vector<8x128xf32>
      %472 = arith.mulf %470, %471 : vector<8x128xf32>
      %cst_83 = arith.constant 2.000000e+00 : f32
      %473 = vector.broadcast %cst_83 : f32 to vector<8x128xf32>
      %474 = arith.subf %473, %472 : vector<8x128xf32>
      %475 = arith.mulf %471, %474 : vector<8x128xf32>
      %476 = arith.mulf %415, %475 : vector<8x128xf32>
      %477 = arith.mulf %422, %475 : vector<8x128xf32>
      %478 = arith.mulf %469, %477 : vector<8x128xf32>
      %479 = arith.addf %29, %478 : vector<8x128xf32>
      %480 = arith.addf %479, %429 : vector<8x128xf32>
      %481 = tpu.reciprocal %480 {approx = true} : vector<8x128xf32> -> vector<8x128xf32>
      %482 = arith.mulf %480, %481 : vector<8x128xf32>
      %cst_84 = arith.constant 2.000000e+00 : f32
      %483 = vector.broadcast %cst_84 : f32 to vector<8x128xf32>
      %484 = arith.subf %483, %482 : vector<8x128xf32>
      %485 = arith.mulf %481, %484 : vector<8x128xf32>
      %486 = arith.mulf %422, %485 : vector<8x128xf32>
      %487 = arith.mulf %429, %485 : vector<8x128xf32>
      %488 = arith.mulf %479, %487 : vector<8x128xf32>
      %489 = arith.addf %35, %488 : vector<8x128xf32>
      %490 = arith.addf %489, %436 : vector<8x128xf32>
      %491 = tpu.reciprocal %490 {approx = true} : vector<8x128xf32> -> vector<8x128xf32>
      %492 = arith.mulf %490, %491 : vector<8x128xf32>
      %cst_85 = arith.constant 2.000000e+00 : f32
      %493 = vector.broadcast %cst_85 : f32 to vector<8x128xf32>
      %494 = arith.subf %493, %492 : vector<8x128xf32>
      %495 = arith.mulf %491, %494 : vector<8x128xf32>
      %496 = arith.mulf %429, %495 : vector<8x128xf32>
      %497 = arith.mulf %436, %495 : vector<8x128xf32>
      %498 = arith.mulf %489, %497 : vector<8x128xf32>
      %499 = arith.addf %41, %498 : vector<8x128xf32>
      %500 = arith.addf %499, %443 : vector<8x128xf32>
      %501 = tpu.reciprocal %500 {approx = true} : vector<8x128xf32> -> vector<8x128xf32>
      %502 = arith.mulf %500, %501 : vector<8x128xf32>
      %cst_86 = arith.constant 2.000000e+00 : f32
      %503 = vector.broadcast %cst_86 : f32 to vector<8x128xf32>
      %504 = arith.subf %503, %502 : vector<8x128xf32>
      %505 = arith.mulf %501, %504 : vector<8x128xf32>
      %506 = arith.mulf %436, %505 : vector<8x128xf32>
      %507 = arith.mulf %443, %505 : vector<8x128xf32>
      %508 = arith.mulf %499, %507 : vector<8x128xf32>
      %509 = arith.addf %47, %508 : vector<8x128xf32>
      %510 = arith.addf %509, %450 : vector<8x128xf32>
      %511 = tpu.reciprocal %510 {approx = true} : vector<8x128xf32> -> vector<8x128xf32>
      %512 = arith.mulf %510, %511 : vector<8x128xf32>
      %cst_87 = arith.constant 2.000000e+00 : f32
      %513 = vector.broadcast %cst_87 : f32 to vector<8x128xf32>
      %514 = arith.subf %513, %512 : vector<8x128xf32>
      %515 = arith.mulf %511, %514 : vector<8x128xf32>
      %516 = arith.mulf %443, %515 : vector<8x128xf32>
      %517 = arith.mulf %450, %515 : vector<8x128xf32>
      %518 = arith.mulf %509, %517 : vector<8x128xf32>
      %519 = arith.addf %53, %518 : vector<8x128xf32>
      %520 = tpu.reciprocal %519 {approx = true} : vector<8x128xf32> -> vector<8x128xf32>
      %521 = arith.mulf %519, %520 : vector<8x128xf32>
      %cst_88 = arith.constant 2.000000e+00 : f32
      %522 = vector.broadcast %cst_88 : f32 to vector<8x128xf32>
      %523 = arith.subf %522, %521 : vector<8x128xf32>
      %524 = arith.mulf %520, %523 : vector<8x128xf32>
      %525 = arith.mulf %450, %524 : vector<8x128xf32>
      %526 = arith.mulf %arg30, %arg16 : vector<8x128xf32>
      %527 = arith.mulf %arg31, %arg17 : vector<8x128xf32>
      %528 = arith.mulf %arg32, %arg18 : vector<8x128xf32>
      %529 = arith.mulf %arg33, %arg19 : vector<8x128xf32>
      %530 = arith.mulf %arg34, %arg20 : vector<8x128xf32>
      %531 = arith.mulf %arg35, %arg21 : vector<8x128xf32>
      %532 = arith.mulf %arg36, %arg22 : vector<8x128xf32>
      %533 = arith.mulf %arg37, %arg23 : vector<8x128xf32>
      %534 = arith.mulf %arg38, %arg24 : vector<8x128xf32>
      %535 = arith.mulf %arg39, %arg25 : vector<8x128xf32>
      %536 = arith.mulf %arg40, %arg26 : vector<8x128xf32>
      %537 = arith.mulf %arg41, %arg27 : vector<8x128xf32>
      %538 = arith.mulf %arg42, %arg28 : vector<8x128xf32>
      %539 = arith.mulf %arg43, %arg29 : vector<8x128xf32>
      %540 = arith.mulf %arg30, %215 : vector<8x128xf32>
      %541 = arith.subf %540, %526 : vector<8x128xf32>
      %542 = arith.mulf %541, %310 : vector<8x128xf32>
      %543 = arith.mulf %arg31, %218 : vector<8x128xf32>
      %544 = arith.subf %543, %527 : vector<8x128xf32>
      %545 = arith.mulf %544, %317 : vector<8x128xf32>
      %546 = arith.mulf %arg32, %221 : vector<8x128xf32>
      %547 = arith.subf %546, %528 : vector<8x128xf32>
      %548 = arith.mulf %547, %324 : vector<8x128xf32>
      %549 = arith.mulf %arg33, %224 : vector<8x128xf32>
      %550 = arith.subf %549, %529 : vector<8x128xf32>
      %551 = arith.mulf %550, %331 : vector<8x128xf32>
      %552 = arith.mulf %arg34, %227 : vector<8x128xf32>
      %553 = arith.subf %552, %530 : vector<8x128xf32>
      %554 = arith.mulf %553, %338 : vector<8x128xf32>
      %555 = arith.mulf %arg35, %230 : vector<8x128xf32>
      %556 = arith.subf %555, %531 : vector<8x128xf32>
      %557 = arith.mulf %556, %345 : vector<8x128xf32>
      %558 = arith.mulf %arg36, %233 : vector<8x128xf32>
      %559 = arith.subf %558, %532 : vector<8x128xf32>
      %560 = arith.mulf %559, %352 : vector<8x128xf32>
      %561 = arith.mulf %arg37, %236 : vector<8x128xf32>
      %562 = arith.subf %561, %533 : vector<8x128xf32>
      %563 = arith.mulf %562, %359 : vector<8x128xf32>
      %564 = arith.mulf %arg38, %239 : vector<8x128xf32>
      %565 = arith.subf %564, %534 : vector<8x128xf32>
      %566 = arith.mulf %565, %366 : vector<8x128xf32>
      %567 = arith.mulf %arg39, %242 : vector<8x128xf32>
      %568 = arith.subf %567, %535 : vector<8x128xf32>
      %569 = arith.mulf %568, %373 : vector<8x128xf32>
      %570 = arith.mulf %arg40, %245 : vector<8x128xf32>
      %571 = arith.subf %570, %536 : vector<8x128xf32>
      %572 = arith.mulf %571, %380 : vector<8x128xf32>
      %573 = arith.mulf %arg41, %248 : vector<8x128xf32>
      %574 = arith.subf %573, %537 : vector<8x128xf32>
      %575 = arith.mulf %574, %387 : vector<8x128xf32>
      %576 = arith.mulf %arg42, %251 : vector<8x128xf32>
      %577 = arith.subf %576, %538 : vector<8x128xf32>
      %578 = arith.mulf %577, %394 : vector<8x128xf32>
      %579 = arith.mulf %arg43, %254 : vector<8x128xf32>
      %580 = arith.subf %579, %539 : vector<8x128xf32>
      %581 = arith.mulf %580, %401 : vector<8x128xf32>
      %582 = arith.subf %542, %563 : vector<8x128xf32>
      %583 = arith.subf %545, %566 : vector<8x128xf32>
      %584 = arith.subf %548, %569 : vector<8x128xf32>
      %585 = arith.subf %551, %572 : vector<8x128xf32>
      %586 = arith.subf %554, %575 : vector<8x128xf32>
      %587 = arith.subf %557, %578 : vector<8x128xf32>
      %588 = arith.subf %560, %581 : vector<8x128xf32>
      %589 = arith.addf %185, %582 : vector<8x128xf32>
      %cst_89 = arith.constant 0.000000e+00 : f32
      %590 = vector.broadcast %cst_89 : f32 to vector<8x128xf32>
      %591 = arith.subf %590, %589 : vector<8x128xf32>
      %592 = arith.subf %583, %582 : vector<8x128xf32>
      %593 = arith.addf %189, %592 : vector<8x128xf32>
      %cst_90 = arith.constant 0.000000e+00 : f32
      %594 = vector.broadcast %cst_90 : f32 to vector<8x128xf32>
      %595 = arith.subf %594, %593 : vector<8x128xf32>
      %596 = arith.subf %584, %583 : vector<8x128xf32>
      %597 = arith.addf %193, %596 : vector<8x128xf32>
      %cst_91 = arith.constant 0.000000e+00 : f32
      %598 = vector.broadcast %cst_91 : f32 to vector<8x128xf32>
      %599 = arith.subf %598, %597 : vector<8x128xf32>
      %600 = arith.subf %585, %584 : vector<8x128xf32>
      %601 = arith.addf %197, %600 : vector<8x128xf32>
      %cst_92 = arith.constant 0.000000e+00 : f32
      %602 = vector.broadcast %cst_92 : f32 to vector<8x128xf32>
      %603 = arith.subf %602, %601 : vector<8x128xf32>
      %604 = arith.subf %586, %585 : vector<8x128xf32>
      %605 = arith.addf %201, %604 : vector<8x128xf32>
      %cst_93 = arith.constant 0.000000e+00 : f32
      %606 = vector.broadcast %cst_93 : f32 to vector<8x128xf32>
      %607 = arith.subf %606, %605 : vector<8x128xf32>
      %608 = arith.subf %587, %586 : vector<8x128xf32>
      %609 = arith.addf %205, %608 : vector<8x128xf32>
      %cst_94 = arith.constant 0.000000e+00 : f32
      %610 = vector.broadcast %cst_94 : f32 to vector<8x128xf32>
      %611 = arith.subf %610, %609 : vector<8x128xf32>
      %612 = arith.subf %588, %587 : vector<8x128xf32>
      %613 = arith.addf %209, %612 : vector<8x128xf32>
      %cst_95 = arith.constant 0.000000e+00 : f32
      %614 = vector.broadcast %cst_95 : f32 to vector<8x128xf32>
      %615 = arith.subf %614, %613 : vector<8x128xf32>
      %616 = arith.subf %212, %588 : vector<8x128xf32>
      %cst_96 = arith.constant 0.000000e+00 : f32
      %617 = vector.broadcast %cst_96 : f32 to vector<8x128xf32>
      %618 = arith.subf %617, %616 : vector<8x128xf32>
      %619 = arith.mulf %591, %456 : vector<8x128xf32>
      %620 = arith.mulf %595, %465 : vector<8x128xf32>
      %621 = arith.mulf %599, %475 : vector<8x128xf32>
      %622 = arith.mulf %603, %485 : vector<8x128xf32>
      %623 = arith.mulf %607, %495 : vector<8x128xf32>
      %624 = arith.mulf %611, %505 : vector<8x128xf32>
      %625 = arith.mulf %615, %515 : vector<8x128xf32>
      %626 = arith.mulf %618, %524 : vector<8x128xf32>
      %627 = arith.mulf %466, %619 : vector<8x128xf32>
      %628 = arith.addf %620, %627 : vector<8x128xf32>
      %629 = arith.mulf %476, %628 : vector<8x128xf32>
      %630 = arith.addf %621, %629 : vector<8x128xf32>
      %631 = arith.mulf %486, %630 : vector<8x128xf32>
      %632 = arith.addf %622, %631 : vector<8x128xf32>
      %633 = arith.mulf %496, %632 : vector<8x128xf32>
      %634 = arith.addf %623, %633 : vector<8x128xf32>
      %635 = arith.mulf %506, %634 : vector<8x128xf32>
      %636 = arith.addf %624, %635 : vector<8x128xf32>
      %637 = arith.mulf %516, %636 : vector<8x128xf32>
      %638 = arith.addf %625, %637 : vector<8x128xf32>
      %639 = arith.mulf %525, %638 : vector<8x128xf32>
      %640 = arith.addf %626, %639 : vector<8x128xf32>
      %641 = arith.mulf %517, %640 : vector<8x128xf32>
      %642 = arith.addf %638, %641 : vector<8x128xf32>
      %643 = arith.mulf %507, %642 : vector<8x128xf32>
      %644 = arith.addf %636, %643 : vector<8x128xf32>
      %645 = arith.mulf %497, %644 : vector<8x128xf32>
      %646 = arith.addf %634, %645 : vector<8x128xf32>
      %647 = arith.mulf %487, %646 : vector<8x128xf32>
      %648 = arith.addf %632, %647 : vector<8x128xf32>
      %649 = arith.mulf %477, %648 : vector<8x128xf32>
      %650 = arith.addf %630, %649 : vector<8x128xf32>
      %651 = arith.mulf %467, %650 : vector<8x128xf32>
      %652 = arith.addf %628, %651 : vector<8x128xf32>
      %653 = arith.mulf %457, %652 : vector<8x128xf32>
      %654 = arith.addf %619, %653 : vector<8x128xf32>
      %655 = arith.subf %654, %652 : vector<8x128xf32>
      %656 = arith.subf %652, %650 : vector<8x128xf32>
      %657 = arith.subf %650, %648 : vector<8x128xf32>
      %658 = arith.subf %648, %646 : vector<8x128xf32>
      %659 = arith.subf %646, %644 : vector<8x128xf32>
      %660 = arith.subf %644, %642 : vector<8x128xf32>
      %661 = arith.subf %642, %640 : vector<8x128xf32>
      %662 = arith.addf %215, %655 : vector<8x128xf32>
      %663 = arith.mulf %arg30, %662 : vector<8x128xf32>
      %664 = arith.subf %663, %526 : vector<8x128xf32>
      %665 = arith.mulf %664, %310 : vector<8x128xf32>
      %666 = arith.addf %218, %656 : vector<8x128xf32>
      %667 = arith.mulf %arg31, %666 : vector<8x128xf32>
      %668 = arith.subf %667, %527 : vector<8x128xf32>
      %669 = arith.mulf %668, %317 : vector<8x128xf32>
      %670 = arith.addf %221, %657 : vector<8x128xf32>
      %671 = arith.mulf %arg32, %670 : vector<8x128xf32>
      %672 = arith.subf %671, %528 : vector<8x128xf32>
      %673 = arith.mulf %672, %324 : vector<8x128xf32>
      %674 = arith.addf %224, %658 : vector<8x128xf32>
      %675 = arith.mulf %arg33, %674 : vector<8x128xf32>
      %676 = arith.subf %675, %529 : vector<8x128xf32>
      %677 = arith.mulf %676, %331 : vector<8x128xf32>
      %678 = arith.addf %227, %659 : vector<8x128xf32>
      %679 = arith.mulf %arg34, %678 : vector<8x128xf32>
      %680 = arith.subf %679, %530 : vector<8x128xf32>
      %681 = arith.mulf %680, %338 : vector<8x128xf32>
      %682 = arith.addf %230, %660 : vector<8x128xf32>
      %683 = arith.mulf %arg35, %682 : vector<8x128xf32>
      %684 = arith.subf %683, %531 : vector<8x128xf32>
      %685 = arith.mulf %684, %345 : vector<8x128xf32>
      %686 = arith.addf %233, %661 : vector<8x128xf32>
      %687 = arith.mulf %arg36, %686 : vector<8x128xf32>
      %688 = arith.subf %687, %532 : vector<8x128xf32>
      %689 = arith.mulf %688, %352 : vector<8x128xf32>
      %690 = arith.subf %236, %655 : vector<8x128xf32>
      %691 = arith.mulf %arg37, %690 : vector<8x128xf32>
      %692 = arith.subf %691, %533 : vector<8x128xf32>
      %693 = arith.mulf %692, %359 : vector<8x128xf32>
      %694 = arith.subf %239, %656 : vector<8x128xf32>
      %695 = arith.mulf %arg38, %694 : vector<8x128xf32>
      %696 = arith.subf %695, %534 : vector<8x128xf32>
      %697 = arith.mulf %696, %366 : vector<8x128xf32>
      %698 = arith.subf %242, %657 : vector<8x128xf32>
      %699 = arith.mulf %arg39, %698 : vector<8x128xf32>
      %700 = arith.subf %699, %535 : vector<8x128xf32>
      %701 = arith.mulf %700, %373 : vector<8x128xf32>
      %702 = arith.subf %245, %658 : vector<8x128xf32>
      %703 = arith.mulf %arg40, %702 : vector<8x128xf32>
      %704 = arith.subf %703, %536 : vector<8x128xf32>
      %705 = arith.mulf %704, %380 : vector<8x128xf32>
      %706 = arith.subf %248, %659 : vector<8x128xf32>
      %707 = arith.mulf %arg41, %706 : vector<8x128xf32>
      %708 = arith.subf %707, %537 : vector<8x128xf32>
      %709 = arith.mulf %708, %387 : vector<8x128xf32>
      %710 = arith.subf %251, %660 : vector<8x128xf32>
      %711 = arith.mulf %arg42, %710 : vector<8x128xf32>
      %712 = arith.subf %711, %538 : vector<8x128xf32>
      %713 = arith.mulf %712, %394 : vector<8x128xf32>
      %714 = arith.subf %254, %661 : vector<8x128xf32>
      %715 = arith.mulf %arg43, %714 : vector<8x128xf32>
      %716 = arith.subf %715, %539 : vector<8x128xf32>
      %717 = arith.mulf %716, %401 : vector<8x128xf32>
      %cst_97 = arith.constant 0.000000e+00 : f32
      %718 = vector.broadcast %cst_97 : f32 to vector<8x128xf32>
      %719 = arith.subf %718, %215 : vector<8x128xf32>
      %720 = arith.subf %719, %655 : vector<8x128xf32>
      %cst_98 = arith.constant 0.000000e+00 : f32
      %721 = vector.broadcast %cst_98 : f32 to vector<8x128xf32>
      %722 = arith.subf %721, %218 : vector<8x128xf32>
      %723 = arith.subf %722, %656 : vector<8x128xf32>
      %cst_99 = arith.constant 0.000000e+00 : f32
      %724 = vector.broadcast %cst_99 : f32 to vector<8x128xf32>
      %725 = arith.subf %724, %221 : vector<8x128xf32>
      %726 = arith.subf %725, %657 : vector<8x128xf32>
      %cst_100 = arith.constant 0.000000e+00 : f32
      %727 = vector.broadcast %cst_100 : f32 to vector<8x128xf32>
      %728 = arith.subf %727, %224 : vector<8x128xf32>
      %729 = arith.subf %728, %658 : vector<8x128xf32>
      %cst_101 = arith.constant 0.000000e+00 : f32
      %730 = vector.broadcast %cst_101 : f32 to vector<8x128xf32>
      %731 = arith.subf %730, %227 : vector<8x128xf32>
      %732 = arith.subf %731, %659 : vector<8x128xf32>
      %cst_102 = arith.constant 0.000000e+00 : f32
      %733 = vector.broadcast %cst_102 : f32 to vector<8x128xf32>
      %734 = arith.subf %733, %230 : vector<8x128xf32>
      %735 = arith.subf %734, %660 : vector<8x128xf32>
      %cst_103 = arith.constant 0.000000e+00 : f32
      %736 = vector.broadcast %cst_103 : f32 to vector<8x128xf32>
      %737 = arith.subf %736, %233 : vector<8x128xf32>
      %738 = arith.subf %737, %661 : vector<8x128xf32>
      %739 = arith.subf %655, %236 : vector<8x128xf32>
      %740 = arith.subf %656, %239 : vector<8x128xf32>
      %741 = arith.subf %657, %242 : vector<8x128xf32>
      %742 = arith.subf %658, %245 : vector<8x128xf32>
      %743 = arith.subf %659, %248 : vector<8x128xf32>
      %744 = arith.subf %660, %251 : vector<8x128xf32>
      %745 = arith.subf %661, %254 : vector<8x128xf32>
      %cst_104 = arith.constant 0.000000e+00 : f32
      %746 = arith.subf %cst_104, %cst_31 : f32
      %747 = vector.broadcast %746 : f32 to vector<8x128xf32>
      %748 = arith.cmpf olt, %720, %747 : vector<8x128xf32>
      %cst_105 = arith.constant 0.000000e+00 : f32
      %749 = vector.broadcast %cst_105 : f32 to vector<8x128xf32>
      %750 = arith.subf %749, %720 : vector<8x128xf32>
      %751 = vector.broadcast %cst_31 : f32 to vector<8x128xf32>
      %752 = arith.maximumf %750, %751 : vector<8x128xf32>
      %753 = tpu.reciprocal %752 {approx = true} : vector<8x128xf32> -> vector<8x128xf32>
      %754 = arith.mulf %arg16, %753 : vector<8x128xf32>
      %755 = arith.select %748, %754, %5 : vector<8x128xi1>, vector<8x128xf32>
      %cst_106 = arith.constant 0.000000e+00 : f32
      %756 = arith.subf %cst_106, %cst_31 : f32
      %757 = vector.broadcast %756 : f32 to vector<8x128xf32>
      %758 = arith.cmpf olt, %723, %757 : vector<8x128xf32>
      %cst_107 = arith.constant 0.000000e+00 : f32
      %759 = vector.broadcast %cst_107 : f32 to vector<8x128xf32>
      %760 = arith.subf %759, %723 : vector<8x128xf32>
      %761 = vector.broadcast %cst_31 : f32 to vector<8x128xf32>
      %762 = arith.maximumf %760, %761 : vector<8x128xf32>
      %763 = tpu.reciprocal %762 {approx = true} : vector<8x128xf32> -> vector<8x128xf32>
      %764 = arith.mulf %arg17, %763 : vector<8x128xf32>
      %765 = arith.select %758, %764, %5 : vector<8x128xi1>, vector<8x128xf32>
      %766 = arith.minimumf %755, %765 : vector<8x128xf32>
      %cst_108 = arith.constant 0.000000e+00 : f32
      %767 = arith.subf %cst_108, %cst_31 : f32
      %768 = vector.broadcast %767 : f32 to vector<8x128xf32>
      %769 = arith.cmpf olt, %726, %768 : vector<8x128xf32>
      %cst_109 = arith.constant 0.000000e+00 : f32
      %770 = vector.broadcast %cst_109 : f32 to vector<8x128xf32>
      %771 = arith.subf %770, %726 : vector<8x128xf32>
      %772 = vector.broadcast %cst_31 : f32 to vector<8x128xf32>
      %773 = arith.maximumf %771, %772 : vector<8x128xf32>
      %774 = tpu.reciprocal %773 {approx = true} : vector<8x128xf32> -> vector<8x128xf32>
      %775 = arith.mulf %arg18, %774 : vector<8x128xf32>
      %776 = arith.select %769, %775, %5 : vector<8x128xi1>, vector<8x128xf32>
      %777 = arith.minimumf %766, %776 : vector<8x128xf32>
      %cst_110 = arith.constant 0.000000e+00 : f32
      %778 = arith.subf %cst_110, %cst_31 : f32
      %779 = vector.broadcast %778 : f32 to vector<8x128xf32>
      %780 = arith.cmpf olt, %729, %779 : vector<8x128xf32>
      %cst_111 = arith.constant 0.000000e+00 : f32
      %781 = vector.broadcast %cst_111 : f32 to vector<8x128xf32>
      %782 = arith.subf %781, %729 : vector<8x128xf32>
      %783 = vector.broadcast %cst_31 : f32 to vector<8x128xf32>
      %784 = arith.maximumf %782, %783 : vector<8x128xf32>
      %785 = tpu.reciprocal %784 {approx = true} : vector<8x128xf32> -> vector<8x128xf32>
      %786 = arith.mulf %arg19, %785 : vector<8x128xf32>
      %787 = arith.select %780, %786, %5 : vector<8x128xi1>, vector<8x128xf32>
      %788 = arith.minimumf %777, %787 : vector<8x128xf32>
      %cst_112 = arith.constant 0.000000e+00 : f32
      %789 = arith.subf %cst_112, %cst_31 : f32
      %790 = vector.broadcast %789 : f32 to vector<8x128xf32>
      %791 = arith.cmpf olt, %732, %790 : vector<8x128xf32>
      %cst_113 = arith.constant 0.000000e+00 : f32
      %792 = vector.broadcast %cst_113 : f32 to vector<8x128xf32>
      %793 = arith.subf %792, %732 : vector<8x128xf32>
      %794 = vector.broadcast %cst_31 : f32 to vector<8x128xf32>
      %795 = arith.maximumf %793, %794 : vector<8x128xf32>
      %796 = tpu.reciprocal %795 {approx = true} : vector<8x128xf32> -> vector<8x128xf32>
      %797 = arith.mulf %arg20, %796 : vector<8x128xf32>
      %798 = arith.select %791, %797, %5 : vector<8x128xi1>, vector<8x128xf32>
      %799 = arith.minimumf %788, %798 : vector<8x128xf32>
      %cst_114 = arith.constant 0.000000e+00 : f32
      %800 = arith.subf %cst_114, %cst_31 : f32
      %801 = vector.broadcast %800 : f32 to vector<8x128xf32>
      %802 = arith.cmpf olt, %735, %801 : vector<8x128xf32>
      %cst_115 = arith.constant 0.000000e+00 : f32
      %803 = vector.broadcast %cst_115 : f32 to vector<8x128xf32>
      %804 = arith.subf %803, %735 : vector<8x128xf32>
      %805 = vector.broadcast %cst_31 : f32 to vector<8x128xf32>
      %806 = arith.maximumf %804, %805 : vector<8x128xf32>
      %807 = tpu.reciprocal %806 {approx = true} : vector<8x128xf32> -> vector<8x128xf32>
      %808 = arith.mulf %arg21, %807 : vector<8x128xf32>
      %809 = arith.select %802, %808, %5 : vector<8x128xi1>, vector<8x128xf32>
      %810 = arith.minimumf %799, %809 : vector<8x128xf32>
      %cst_116 = arith.constant 0.000000e+00 : f32
      %811 = arith.subf %cst_116, %cst_31 : f32
      %812 = vector.broadcast %811 : f32 to vector<8x128xf32>
      %813 = arith.cmpf olt, %738, %812 : vector<8x128xf32>
      %cst_117 = arith.constant 0.000000e+00 : f32
      %814 = vector.broadcast %cst_117 : f32 to vector<8x128xf32>
      %815 = arith.subf %814, %738 : vector<8x128xf32>
      %816 = vector.broadcast %cst_31 : f32 to vector<8x128xf32>
      %817 = arith.maximumf %815, %816 : vector<8x128xf32>
      %818 = tpu.reciprocal %817 {approx = true} : vector<8x128xf32> -> vector<8x128xf32>
      %819 = arith.mulf %arg22, %818 : vector<8x128xf32>
      %820 = arith.select %813, %819, %5 : vector<8x128xi1>, vector<8x128xf32>
      %821 = arith.minimumf %810, %820 : vector<8x128xf32>
      %cst_118 = arith.constant 0.000000e+00 : f32
      %822 = arith.subf %cst_118, %cst_31 : f32
      %823 = vector.broadcast %822 : f32 to vector<8x128xf32>
      %824 = arith.cmpf olt, %739, %823 : vector<8x128xf32>
      %cst_119 = arith.constant 0.000000e+00 : f32
      %825 = vector.broadcast %cst_119 : f32 to vector<8x128xf32>
      %826 = arith.subf %825, %739 : vector<8x128xf32>
      %827 = vector.broadcast %cst_31 : f32 to vector<8x128xf32>
      %828 = arith.maximumf %826, %827 : vector<8x128xf32>
      %829 = tpu.reciprocal %828 {approx = true} : vector<8x128xf32> -> vector<8x128xf32>
      %830 = arith.mulf %arg23, %829 : vector<8x128xf32>
      %831 = arith.select %824, %830, %5 : vector<8x128xi1>, vector<8x128xf32>
      %cst_120 = arith.constant 0.000000e+00 : f32
      %832 = arith.subf %cst_120, %cst_31 : f32
      %833 = vector.broadcast %832 : f32 to vector<8x128xf32>
      %834 = arith.cmpf olt, %740, %833 : vector<8x128xf32>
      %cst_121 = arith.constant 0.000000e+00 : f32
      %835 = vector.broadcast %cst_121 : f32 to vector<8x128xf32>
      %836 = arith.subf %835, %740 : vector<8x128xf32>
      %837 = vector.broadcast %cst_31 : f32 to vector<8x128xf32>
      %838 = arith.maximumf %836, %837 : vector<8x128xf32>
      %839 = tpu.reciprocal %838 {approx = true} : vector<8x128xf32> -> vector<8x128xf32>
      %840 = arith.mulf %arg24, %839 : vector<8x128xf32>
      %841 = arith.select %834, %840, %5 : vector<8x128xi1>, vector<8x128xf32>
      %842 = arith.minimumf %831, %841 : vector<8x128xf32>
      %cst_122 = arith.constant 0.000000e+00 : f32
      %843 = arith.subf %cst_122, %cst_31 : f32
      %844 = vector.broadcast %843 : f32 to vector<8x128xf32>
      %845 = arith.cmpf olt, %741, %844 : vector<8x128xf32>
      %cst_123 = arith.constant 0.000000e+00 : f32
      %846 = vector.broadcast %cst_123 : f32 to vector<8x128xf32>
      %847 = arith.subf %846, %741 : vector<8x128xf32>
      %848 = vector.broadcast %cst_31 : f32 to vector<8x128xf32>
      %849 = arith.maximumf %847, %848 : vector<8x128xf32>
      %850 = tpu.reciprocal %849 {approx = true} : vector<8x128xf32> -> vector<8x128xf32>
      %851 = arith.mulf %arg25, %850 : vector<8x128xf32>
      %852 = arith.select %845, %851, %5 : vector<8x128xi1>, vector<8x128xf32>
      %853 = arith.minimumf %842, %852 : vector<8x128xf32>
      %cst_124 = arith.constant 0.000000e+00 : f32
      %854 = arith.subf %cst_124, %cst_31 : f32
      %855 = vector.broadcast %854 : f32 to vector<8x128xf32>
      %856 = arith.cmpf olt, %742, %855 : vector<8x128xf32>
      %cst_125 = arith.constant 0.000000e+00 : f32
      %857 = vector.broadcast %cst_125 : f32 to vector<8x128xf32>
      %858 = arith.subf %857, %742 : vector<8x128xf32>
      %859 = vector.broadcast %cst_31 : f32 to vector<8x128xf32>
      %860 = arith.maximumf %858, %859 : vector<8x128xf32>
      %861 = tpu.reciprocal %860 {approx = true} : vector<8x128xf32> -> vector<8x128xf32>
      %862 = arith.mulf %arg26, %861 : vector<8x128xf32>
      %863 = arith.select %856, %862, %5 : vector<8x128xi1>, vector<8x128xf32>
      %864 = arith.minimumf %853, %863 : vector<8x128xf32>
      %cst_126 = arith.constant 0.000000e+00 : f32
      %865 = arith.subf %cst_126, %cst_31 : f32
      %866 = vector.broadcast %865 : f32 to vector<8x128xf32>
      %867 = arith.cmpf olt, %743, %866 : vector<8x128xf32>
      %cst_127 = arith.constant 0.000000e+00 : f32
      %868 = vector.broadcast %cst_127 : f32 to vector<8x128xf32>
      %869 = arith.subf %868, %743 : vector<8x128xf32>
      %870 = vector.broadcast %cst_31 : f32 to vector<8x128xf32>
      %871 = arith.maximumf %869, %870 : vector<8x128xf32>
      %872 = tpu.reciprocal %871 {approx = true} : vector<8x128xf32> -> vector<8x128xf32>
      %873 = arith.mulf %arg27, %872 : vector<8x128xf32>
      %874 = arith.select %867, %873, %5 : vector<8x128xi1>, vector<8x128xf32>
      %875 = arith.minimumf %864, %874 : vector<8x128xf32>
      %cst_128 = arith.constant 0.000000e+00 : f32
      %876 = arith.subf %cst_128, %cst_31 : f32
      %877 = vector.broadcast %876 : f32 to vector<8x128xf32>
      %878 = arith.cmpf olt, %744, %877 : vector<8x128xf32>
      %cst_129 = arith.constant 0.000000e+00 : f32
      %879 = vector.broadcast %cst_129 : f32 to vector<8x128xf32>
      %880 = arith.subf %879, %744 : vector<8x128xf32>
      %881 = vector.broadcast %cst_31 : f32 to vector<8x128xf32>
      %882 = arith.maximumf %880, %881 : vector<8x128xf32>
      %883 = tpu.reciprocal %882 {approx = true} : vector<8x128xf32> -> vector<8x128xf32>
      %884 = arith.mulf %arg28, %883 : vector<8x128xf32>
      %885 = arith.select %878, %884, %5 : vector<8x128xi1>, vector<8x128xf32>
      %886 = arith.minimumf %875, %885 : vector<8x128xf32>
      %cst_130 = arith.constant 0.000000e+00 : f32
      %887 = arith.subf %cst_130, %cst_31 : f32
      %888 = vector.broadcast %887 : f32 to vector<8x128xf32>
      %889 = arith.cmpf olt, %745, %888 : vector<8x128xf32>
      %cst_131 = arith.constant 0.000000e+00 : f32
      %890 = vector.broadcast %cst_131 : f32 to vector<8x128xf32>
      %891 = arith.subf %890, %745 : vector<8x128xf32>
      %892 = vector.broadcast %cst_31 : f32 to vector<8x128xf32>
      %893 = arith.maximumf %891, %892 : vector<8x128xf32>
      %894 = tpu.reciprocal %893 {approx = true} : vector<8x128xf32> -> vector<8x128xf32>
      %895 = arith.mulf %arg29, %894 : vector<8x128xf32>
      %896 = arith.select %889, %895, %5 : vector<8x128xi1>, vector<8x128xf32>
      %897 = arith.minimumf %886, %896 : vector<8x128xf32>
      %898 = arith.minimumf %821, %897 : vector<8x128xf32>
      %cst_132 = arith.constant 0.000000e+00 : f32
      %899 = arith.subf %cst_132, %cst_31 : f32
      %900 = vector.broadcast %899 : f32 to vector<8x128xf32>
      %901 = arith.cmpf olt, %665, %900 : vector<8x128xf32>
      %cst_133 = arith.constant 0.000000e+00 : f32
      %902 = vector.broadcast %cst_133 : f32 to vector<8x128xf32>
      %903 = arith.subf %902, %665 : vector<8x128xf32>
      %904 = vector.broadcast %cst_31 : f32 to vector<8x128xf32>
      %905 = arith.maximumf %903, %904 : vector<8x128xf32>
      %906 = tpu.reciprocal %905 {approx = true} : vector<8x128xf32> -> vector<8x128xf32>
      %907 = arith.mulf %arg30, %906 : vector<8x128xf32>
      %908 = arith.select %901, %907, %5 : vector<8x128xi1>, vector<8x128xf32>
      %cst_134 = arith.constant 0.000000e+00 : f32
      %909 = arith.subf %cst_134, %cst_31 : f32
      %910 = vector.broadcast %909 : f32 to vector<8x128xf32>
      %911 = arith.cmpf olt, %669, %910 : vector<8x128xf32>
      %cst_135 = arith.constant 0.000000e+00 : f32
      %912 = vector.broadcast %cst_135 : f32 to vector<8x128xf32>
      %913 = arith.subf %912, %669 : vector<8x128xf32>
      %914 = vector.broadcast %cst_31 : f32 to vector<8x128xf32>
      %915 = arith.maximumf %913, %914 : vector<8x128xf32>
      %916 = tpu.reciprocal %915 {approx = true} : vector<8x128xf32> -> vector<8x128xf32>
      %917 = arith.mulf %arg31, %916 : vector<8x128xf32>
      %918 = arith.select %911, %917, %5 : vector<8x128xi1>, vector<8x128xf32>
      %919 = arith.minimumf %908, %918 : vector<8x128xf32>
      %cst_136 = arith.constant 0.000000e+00 : f32
      %920 = arith.subf %cst_136, %cst_31 : f32
      %921 = vector.broadcast %920 : f32 to vector<8x128xf32>
      %922 = arith.cmpf olt, %673, %921 : vector<8x128xf32>
      %cst_137 = arith.constant 0.000000e+00 : f32
      %923 = vector.broadcast %cst_137 : f32 to vector<8x128xf32>
      %924 = arith.subf %923, %673 : vector<8x128xf32>
      %925 = vector.broadcast %cst_31 : f32 to vector<8x128xf32>
      %926 = arith.maximumf %924, %925 : vector<8x128xf32>
      %927 = tpu.reciprocal %926 {approx = true} : vector<8x128xf32> -> vector<8x128xf32>
      %928 = arith.mulf %arg32, %927 : vector<8x128xf32>
      %929 = arith.select %922, %928, %5 : vector<8x128xi1>, vector<8x128xf32>
      %930 = arith.minimumf %919, %929 : vector<8x128xf32>
      %cst_138 = arith.constant 0.000000e+00 : f32
      %931 = arith.subf %cst_138, %cst_31 : f32
      %932 = vector.broadcast %931 : f32 to vector<8x128xf32>
      %933 = arith.cmpf olt, %677, %932 : vector<8x128xf32>
      %cst_139 = arith.constant 0.000000e+00 : f32
      %934 = vector.broadcast %cst_139 : f32 to vector<8x128xf32>
      %935 = arith.subf %934, %677 : vector<8x128xf32>
      %936 = vector.broadcast %cst_31 : f32 to vector<8x128xf32>
      %937 = arith.maximumf %935, %936 : vector<8x128xf32>
      %938 = tpu.reciprocal %937 {approx = true} : vector<8x128xf32> -> vector<8x128xf32>
      %939 = arith.mulf %arg33, %938 : vector<8x128xf32>
      %940 = arith.select %933, %939, %5 : vector<8x128xi1>, vector<8x128xf32>
      %941 = arith.minimumf %930, %940 : vector<8x128xf32>
      %cst_140 = arith.constant 0.000000e+00 : f32
      %942 = arith.subf %cst_140, %cst_31 : f32
      %943 = vector.broadcast %942 : f32 to vector<8x128xf32>
      %944 = arith.cmpf olt, %681, %943 : vector<8x128xf32>
      %cst_141 = arith.constant 0.000000e+00 : f32
      %945 = vector.broadcast %cst_141 : f32 to vector<8x128xf32>
      %946 = arith.subf %945, %681 : vector<8x128xf32>
      %947 = vector.broadcast %cst_31 : f32 to vector<8x128xf32>
      %948 = arith.maximumf %946, %947 : vector<8x128xf32>
      %949 = tpu.reciprocal %948 {approx = true} : vector<8x128xf32> -> vector<8x128xf32>
      %950 = arith.mulf %arg34, %949 : vector<8x128xf32>
      %951 = arith.select %944, %950, %5 : vector<8x128xi1>, vector<8x128xf32>
      %952 = arith.minimumf %941, %951 : vector<8x128xf32>
      %cst_142 = arith.constant 0.000000e+00 : f32
      %953 = arith.subf %cst_142, %cst_31 : f32
      %954 = vector.broadcast %953 : f32 to vector<8x128xf32>
      %955 = arith.cmpf olt, %685, %954 : vector<8x128xf32>
      %cst_143 = arith.constant 0.000000e+00 : f32
      %956 = vector.broadcast %cst_143 : f32 to vector<8x128xf32>
      %957 = arith.subf %956, %685 : vector<8x128xf32>
      %958 = vector.broadcast %cst_31 : f32 to vector<8x128xf32>
      %959 = arith.maximumf %957, %958 : vector<8x128xf32>
      %960 = tpu.reciprocal %959 {approx = true} : vector<8x128xf32> -> vector<8x128xf32>
      %961 = arith.mulf %arg35, %960 : vector<8x128xf32>
      %962 = arith.select %955, %961, %5 : vector<8x128xi1>, vector<8x128xf32>
      %963 = arith.minimumf %952, %962 : vector<8x128xf32>
      %cst_144 = arith.constant 0.000000e+00 : f32
      %964 = arith.subf %cst_144, %cst_31 : f32
      %965 = vector.broadcast %964 : f32 to vector<8x128xf32>
      %966 = arith.cmpf olt, %689, %965 : vector<8x128xf32>
      %cst_145 = arith.constant 0.000000e+00 : f32
      %967 = vector.broadcast %cst_145 : f32 to vector<8x128xf32>
      %968 = arith.subf %967, %689 : vector<8x128xf32>
      %969 = vector.broadcast %cst_31 : f32 to vector<8x128xf32>
      %970 = arith.maximumf %968, %969 : vector<8x128xf32>
      %971 = tpu.reciprocal %970 {approx = true} : vector<8x128xf32> -> vector<8x128xf32>
      %972 = arith.mulf %arg36, %971 : vector<8x128xf32>
      %973 = arith.select %966, %972, %5 : vector<8x128xi1>, vector<8x128xf32>
      %974 = arith.minimumf %963, %973 : vector<8x128xf32>
      %cst_146 = arith.constant 0.000000e+00 : f32
      %975 = arith.subf %cst_146, %cst_31 : f32
      %976 = vector.broadcast %975 : f32 to vector<8x128xf32>
      %977 = arith.cmpf olt, %693, %976 : vector<8x128xf32>
      %cst_147 = arith.constant 0.000000e+00 : f32
      %978 = vector.broadcast %cst_147 : f32 to vector<8x128xf32>
      %979 = arith.subf %978, %693 : vector<8x128xf32>
      %980 = vector.broadcast %cst_31 : f32 to vector<8x128xf32>
      %981 = arith.maximumf %979, %980 : vector<8x128xf32>
      %982 = tpu.reciprocal %981 {approx = true} : vector<8x128xf32> -> vector<8x128xf32>
      %983 = arith.mulf %arg37, %982 : vector<8x128xf32>
      %984 = arith.select %977, %983, %5 : vector<8x128xi1>, vector<8x128xf32>
      %cst_148 = arith.constant 0.000000e+00 : f32
      %985 = arith.subf %cst_148, %cst_31 : f32
      %986 = vector.broadcast %985 : f32 to vector<8x128xf32>
      %987 = arith.cmpf olt, %697, %986 : vector<8x128xf32>
      %cst_149 = arith.constant 0.000000e+00 : f32
      %988 = vector.broadcast %cst_149 : f32 to vector<8x128xf32>
      %989 = arith.subf %988, %697 : vector<8x128xf32>
      %990 = vector.broadcast %cst_31 : f32 to vector<8x128xf32>
      %991 = arith.maximumf %989, %990 : vector<8x128xf32>
      %992 = tpu.reciprocal %991 {approx = true} : vector<8x128xf32> -> vector<8x128xf32>
      %993 = arith.mulf %arg38, %992 : vector<8x128xf32>
      %994 = arith.select %987, %993, %5 : vector<8x128xi1>, vector<8x128xf32>
      %995 = arith.minimumf %984, %994 : vector<8x128xf32>
      %cst_150 = arith.constant 0.000000e+00 : f32
      %996 = arith.subf %cst_150, %cst_31 : f32
      %997 = vector.broadcast %996 : f32 to vector<8x128xf32>
      %998 = arith.cmpf olt, %701, %997 : vector<8x128xf32>
      %cst_151 = arith.constant 0.000000e+00 : f32
      %999 = vector.broadcast %cst_151 : f32 to vector<8x128xf32>
      %1000 = arith.subf %999, %701 : vector<8x128xf32>
      %1001 = vector.broadcast %cst_31 : f32 to vector<8x128xf32>
      %1002 = arith.maximumf %1000, %1001 : vector<8x128xf32>
      %1003 = tpu.reciprocal %1002 {approx = true} : vector<8x128xf32> -> vector<8x128xf32>
      %1004 = arith.mulf %arg39, %1003 : vector<8x128xf32>
      %1005 = arith.select %998, %1004, %5 : vector<8x128xi1>, vector<8x128xf32>
      %1006 = arith.minimumf %995, %1005 : vector<8x128xf32>
      %cst_152 = arith.constant 0.000000e+00 : f32
      %1007 = arith.subf %cst_152, %cst_31 : f32
      %1008 = vector.broadcast %1007 : f32 to vector<8x128xf32>
      %1009 = arith.cmpf olt, %705, %1008 : vector<8x128xf32>
      %cst_153 = arith.constant 0.000000e+00 : f32
      %1010 = vector.broadcast %cst_153 : f32 to vector<8x128xf32>
      %1011 = arith.subf %1010, %705 : vector<8x128xf32>
      %1012 = vector.broadcast %cst_31 : f32 to vector<8x128xf32>
      %1013 = arith.maximumf %1011, %1012 : vector<8x128xf32>
      %1014 = tpu.reciprocal %1013 {approx = true} : vector<8x128xf32> -> vector<8x128xf32>
      %1015 = arith.mulf %arg40, %1014 : vector<8x128xf32>
      %1016 = arith.select %1009, %1015, %5 : vector<8x128xi1>, vector<8x128xf32>
      %1017 = arith.minimumf %1006, %1016 : vector<8x128xf32>
      %cst_154 = arith.constant 0.000000e+00 : f32
      %1018 = arith.subf %cst_154, %cst_31 : f32
      %1019 = vector.broadcast %1018 : f32 to vector<8x128xf32>
      %1020 = arith.cmpf olt, %709, %1019 : vector<8x128xf32>
      %cst_155 = arith.constant 0.000000e+00 : f32
      %1021 = vector.broadcast %cst_155 : f32 to vector<8x128xf32>
      %1022 = arith.subf %1021, %709 : vector<8x128xf32>
      %1023 = vector.broadcast %cst_31 : f32 to vector<8x128xf32>
      %1024 = arith.maximumf %1022, %1023 : vector<8x128xf32>
      %1025 = tpu.reciprocal %1024 {approx = true} : vector<8x128xf32> -> vector<8x128xf32>
      %1026 = arith.mulf %arg41, %1025 : vector<8x128xf32>
      %1027 = arith.select %1020, %1026, %5 : vector<8x128xi1>, vector<8x128xf32>
      %1028 = arith.minimumf %1017, %1027 : vector<8x128xf32>
      %cst_156 = arith.constant 0.000000e+00 : f32
      %1029 = arith.subf %cst_156, %cst_31 : f32
      %1030 = vector.broadcast %1029 : f32 to vector<8x128xf32>
      %1031 = arith.cmpf olt, %713, %1030 : vector<8x128xf32>
      %cst_157 = arith.constant 0.000000e+00 : f32
      %1032 = vector.broadcast %cst_157 : f32 to vector<8x128xf32>
      %1033 = arith.subf %1032, %713 : vector<8x128xf32>
      %1034 = vector.broadcast %cst_31 : f32 to vector<8x128xf32>
      %1035 = arith.maximumf %1033, %1034 : vector<8x128xf32>
      %1036 = tpu.reciprocal %1035 {approx = true} : vector<8x128xf32> -> vector<8x128xf32>
      %1037 = arith.mulf %arg42, %1036 : vector<8x128xf32>
      %1038 = arith.select %1031, %1037, %5 : vector<8x128xi1>, vector<8x128xf32>
      %1039 = arith.minimumf %1028, %1038 : vector<8x128xf32>
      %cst_158 = arith.constant 0.000000e+00 : f32
      %1040 = arith.subf %cst_158, %cst_31 : f32
      %1041 = vector.broadcast %1040 : f32 to vector<8x128xf32>
      %1042 = arith.cmpf olt, %717, %1041 : vector<8x128xf32>
      %cst_159 = arith.constant 0.000000e+00 : f32
      %1043 = vector.broadcast %cst_159 : f32 to vector<8x128xf32>
      %1044 = arith.subf %1043, %717 : vector<8x128xf32>
      %1045 = vector.broadcast %cst_31 : f32 to vector<8x128xf32>
      %1046 = arith.maximumf %1044, %1045 : vector<8x128xf32>
      %1047 = tpu.reciprocal %1046 {approx = true} : vector<8x128xf32> -> vector<8x128xf32>
      %1048 = arith.mulf %arg43, %1047 : vector<8x128xf32>
      %1049 = arith.select %1042, %1048, %5 : vector<8x128xi1>, vector<8x128xf32>
      %1050 = arith.minimumf %1039, %1049 : vector<8x128xf32>
      %1051 = arith.minimumf %974, %1050 : vector<8x128xf32>
      %1052 = arith.minimumf %898, %1051 : vector<8x128xf32>
      %cst_160 = arith.constant 1.000000e+00 : f32
      %1053 = vector.broadcast %cst_160 : f32 to vector<8x128xf32>
      %1054 = arith.minimumf %1053, %1052 : vector<8x128xf32>
      %1055 = arith.mulf %1054, %720 : vector<8x128xf32>
      %1056 = arith.addf %arg16, %1055 : vector<8x128xf32>
      %1057 = arith.mulf %1054, %665 : vector<8x128xf32>
      %1058 = arith.addf %arg30, %1057 : vector<8x128xf32>
      %1059 = arith.mulf %1056, %1058 : vector<8x128xf32>
      %1060 = arith.mulf %1054, %739 : vector<8x128xf32>
      %1061 = arith.addf %arg23, %1060 : vector<8x128xf32>
      %1062 = arith.mulf %1054, %693 : vector<8x128xf32>
      %1063 = arith.addf %arg37, %1062 : vector<8x128xf32>
      %1064 = arith.mulf %1061, %1063 : vector<8x128xf32>
      %1065 = arith.addf %1059, %1064 : vector<8x128xf32>
      %1066 = arith.mulf %1054, %723 : vector<8x128xf32>
      %1067 = arith.addf %arg17, %1066 : vector<8x128xf32>
      %1068 = arith.mulf %1054, %669 : vector<8x128xf32>
      %1069 = arith.addf %arg31, %1068 : vector<8x128xf32>
      %1070 = arith.mulf %1067, %1069 : vector<8x128xf32>
      %1071 = arith.mulf %1054, %740 : vector<8x128xf32>
      %1072 = arith.addf %arg24, %1071 : vector<8x128xf32>
      %1073 = arith.mulf %1054, %697 : vector<8x128xf32>
      %1074 = arith.addf %arg38, %1073 : vector<8x128xf32>
      %1075 = arith.mulf %1072, %1074 : vector<8x128xf32>
      %1076 = arith.addf %1070, %1075 : vector<8x128xf32>
      %1077 = arith.addf %1065, %1076 : vector<8x128xf32>
      %1078 = arith.mulf %1054, %726 : vector<8x128xf32>
      %1079 = arith.addf %arg18, %1078 : vector<8x128xf32>
      %1080 = arith.mulf %1054, %673 : vector<8x128xf32>
      %1081 = arith.addf %arg32, %1080 : vector<8x128xf32>
      %1082 = arith.mulf %1079, %1081 : vector<8x128xf32>
      %1083 = arith.mulf %1054, %741 : vector<8x128xf32>
      %1084 = arith.addf %arg25, %1083 : vector<8x128xf32>
      %1085 = arith.mulf %1054, %701 : vector<8x128xf32>
      %1086 = arith.addf %arg39, %1085 : vector<8x128xf32>
      %1087 = arith.mulf %1084, %1086 : vector<8x128xf32>
      %1088 = arith.addf %1082, %1087 : vector<8x128xf32>
      %1089 = arith.addf %1077, %1088 : vector<8x128xf32>
      %1090 = arith.mulf %1054, %729 : vector<8x128xf32>
      %1091 = arith.addf %arg19, %1090 : vector<8x128xf32>
      %1092 = arith.mulf %1054, %677 : vector<8x128xf32>
      %1093 = arith.addf %arg33, %1092 : vector<8x128xf32>
      %1094 = arith.mulf %1091, %1093 : vector<8x128xf32>
      %1095 = arith.mulf %1054, %742 : vector<8x128xf32>
      %1096 = arith.addf %arg26, %1095 : vector<8x128xf32>
      %1097 = arith.mulf %1054, %705 : vector<8x128xf32>
      %1098 = arith.addf %arg40, %1097 : vector<8x128xf32>
      %1099 = arith.mulf %1096, %1098 : vector<8x128xf32>
      %1100 = arith.addf %1094, %1099 : vector<8x128xf32>
      %1101 = arith.addf %1089, %1100 : vector<8x128xf32>
      %1102 = arith.mulf %1054, %732 : vector<8x128xf32>
      %1103 = arith.addf %arg20, %1102 : vector<8x128xf32>
      %1104 = arith.mulf %1054, %681 : vector<8x128xf32>
      %1105 = arith.addf %arg34, %1104 : vector<8x128xf32>
      %1106 = arith.mulf %1103, %1105 : vector<8x128xf32>
      %1107 = arith.mulf %1054, %743 : vector<8x128xf32>
      %1108 = arith.addf %arg27, %1107 : vector<8x128xf32>
      %1109 = arith.mulf %1054, %709 : vector<8x128xf32>
      %1110 = arith.addf %arg41, %1109 : vector<8x128xf32>
      %1111 = arith.mulf %1108, %1110 : vector<8x128xf32>
      %1112 = arith.addf %1106, %1111 : vector<8x128xf32>
      %1113 = arith.addf %1101, %1112 : vector<8x128xf32>
      %1114 = arith.mulf %1054, %735 : vector<8x128xf32>
      %1115 = arith.addf %arg21, %1114 : vector<8x128xf32>
      %1116 = arith.mulf %1054, %685 : vector<8x128xf32>
      %1117 = arith.addf %arg35, %1116 : vector<8x128xf32>
      %1118 = arith.mulf %1115, %1117 : vector<8x128xf32>
      %1119 = arith.mulf %1054, %744 : vector<8x128xf32>
      %1120 = arith.addf %arg28, %1119 : vector<8x128xf32>
      %1121 = arith.mulf %1054, %713 : vector<8x128xf32>
      %1122 = arith.addf %arg42, %1121 : vector<8x128xf32>
      %1123 = arith.mulf %1120, %1122 : vector<8x128xf32>
      %1124 = arith.addf %1118, %1123 : vector<8x128xf32>
      %1125 = arith.addf %1113, %1124 : vector<8x128xf32>
      %1126 = arith.mulf %1054, %738 : vector<8x128xf32>
      %1127 = arith.addf %arg22, %1126 : vector<8x128xf32>
      %1128 = arith.mulf %1054, %689 : vector<8x128xf32>
      %1129 = arith.addf %arg36, %1128 : vector<8x128xf32>
      %1130 = arith.mulf %1127, %1129 : vector<8x128xf32>
      %1131 = arith.mulf %1054, %745 : vector<8x128xf32>
      %1132 = arith.addf %arg29, %1131 : vector<8x128xf32>
      %1133 = arith.mulf %1054, %717 : vector<8x128xf32>
      %1134 = arith.addf %arg43, %1133 : vector<8x128xf32>
      %1135 = arith.mulf %1132, %1134 : vector<8x128xf32>
      %1136 = arith.addf %1130, %1135 : vector<8x128xf32>
      %1137 = arith.addf %1125, %1136 : vector<8x128xf32>
      %cst_161 = arith.constant 0.0714285746 : f32
      %1138 = vector.broadcast %cst_161 : f32 to vector<8x128xf32>
      %1139 = arith.mulf %1137, %1138 : vector<8x128xf32>
      %1140 = vector.broadcast %cst_31 : f32 to vector<8x128xf32>
      %1141 = arith.maximumf %283, %1140 : vector<8x128xf32>
      %1142 = tpu.reciprocal %1141 {approx = true} : vector<8x128xf32> -> vector<8x128xf32>
      %1143 = arith.mulf %1139, %1142 : vector<8x128xf32>
      %cst_162 = arith.constant 0.000000e+00 : f32
      %cst_163 = arith.constant 1.000000e+00 : f32
      %1144 = vector.broadcast %cst_162 : f32 to vector<8x128xf32>
      %1145 = arith.maximumf %1144, %1143 : vector<8x128xf32>
      %1146 = vector.broadcast %cst_163 : f32 to vector<8x128xf32>
      %1147 = arith.minimumf %1146, %1145 : vector<8x128xf32>
      %1148 = arith.mulf %1147, %1147 : vector<8x128xf32>
      %1149 = arith.mulf %1147, %1148 : vector<8x128xf32>
      %1150 = arith.mulf %1149, %283 : vector<8x128xf32>
      %1151 = arith.mulf %720, %665 : vector<8x128xf32>
      %1152 = arith.addf %526, %1151 : vector<8x128xf32>
      %1153 = arith.subf %1152, %1150 : vector<8x128xf32>
      %1154 = arith.mulf %723, %669 : vector<8x128xf32>
      %1155 = arith.addf %527, %1154 : vector<8x128xf32>
      %1156 = arith.subf %1155, %1150 : vector<8x128xf32>
      %1157 = arith.mulf %726, %673 : vector<8x128xf32>
      %1158 = arith.addf %528, %1157 : vector<8x128xf32>
      %1159 = arith.subf %1158, %1150 : vector<8x128xf32>
      %1160 = arith.mulf %729, %677 : vector<8x128xf32>
      %1161 = arith.addf %529, %1160 : vector<8x128xf32>
      %1162 = arith.subf %1161, %1150 : vector<8x128xf32>
      %1163 = arith.mulf %732, %681 : vector<8x128xf32>
      %1164 = arith.addf %530, %1163 : vector<8x128xf32>
      %1165 = arith.subf %1164, %1150 : vector<8x128xf32>
      %1166 = arith.mulf %735, %685 : vector<8x128xf32>
      %1167 = arith.addf %531, %1166 : vector<8x128xf32>
      %1168 = arith.subf %1167, %1150 : vector<8x128xf32>
      %1169 = arith.mulf %738, %689 : vector<8x128xf32>
      %1170 = arith.addf %532, %1169 : vector<8x128xf32>
      %1171 = arith.subf %1170, %1150 : vector<8x128xf32>
      %1172 = arith.mulf %739, %693 : vector<8x128xf32>
      %1173 = arith.addf %533, %1172 : vector<8x128xf32>
      %1174 = arith.subf %1173, %1150 : vector<8x128xf32>
      %1175 = arith.mulf %740, %697 : vector<8x128xf32>
      %1176 = arith.addf %534, %1175 : vector<8x128xf32>
      %1177 = arith.subf %1176, %1150 : vector<8x128xf32>
      %1178 = arith.mulf %741, %701 : vector<8x128xf32>
      %1179 = arith.addf %535, %1178 : vector<8x128xf32>
      %1180 = arith.subf %1179, %1150 : vector<8x128xf32>
      %1181 = arith.mulf %742, %705 : vector<8x128xf32>
      %1182 = arith.addf %536, %1181 : vector<8x128xf32>
      %1183 = arith.subf %1182, %1150 : vector<8x128xf32>
      %1184 = arith.mulf %743, %709 : vector<8x128xf32>
      %1185 = arith.addf %537, %1184 : vector<8x128xf32>
      %1186 = arith.subf %1185, %1150 : vector<8x128xf32>
      %1187 = arith.mulf %744, %713 : vector<8x128xf32>
      %1188 = arith.addf %538, %1187 : vector<8x128xf32>
      %1189 = arith.subf %1188, %1150 : vector<8x128xf32>
      %1190 = arith.mulf %745, %717 : vector<8x128xf32>
      %1191 = arith.addf %539, %1190 : vector<8x128xf32>
      %1192 = arith.subf %1191, %1150 : vector<8x128xf32>
      %1193 = arith.mulf %arg30, %215 : vector<8x128xf32>
      %1194 = arith.subf %1193, %1153 : vector<8x128xf32>
      %1195 = arith.mulf %1194, %310 : vector<8x128xf32>
      %1196 = arith.mulf %arg31, %218 : vector<8x128xf32>
      %1197 = arith.subf %1196, %1156 : vector<8x128xf32>
      %1198 = arith.mulf %1197, %317 : vector<8x128xf32>
      %1199 = arith.mulf %arg32, %221 : vector<8x128xf32>
      %1200 = arith.subf %1199, %1159 : vector<8x128xf32>
      %1201 = arith.mulf %1200, %324 : vector<8x128xf32>
      %1202 = arith.mulf %arg33, %224 : vector<8x128xf32>
      %1203 = arith.subf %1202, %1162 : vector<8x128xf32>
      %1204 = arith.mulf %1203, %331 : vector<8x128xf32>
      %1205 = arith.mulf %arg34, %227 : vector<8x128xf32>
      %1206 = arith.subf %1205, %1165 : vector<8x128xf32>
      %1207 = arith.mulf %1206, %338 : vector<8x128xf32>
      %1208 = arith.mulf %arg35, %230 : vector<8x128xf32>
      %1209 = arith.subf %1208, %1168 : vector<8x128xf32>
      %1210 = arith.mulf %1209, %345 : vector<8x128xf32>
      %1211 = arith.mulf %arg36, %233 : vector<8x128xf32>
      %1212 = arith.subf %1211, %1171 : vector<8x128xf32>
      %1213 = arith.mulf %1212, %352 : vector<8x128xf32>
      %1214 = arith.mulf %arg37, %236 : vector<8x128xf32>
      %1215 = arith.subf %1214, %1174 : vector<8x128xf32>
      %1216 = arith.mulf %1215, %359 : vector<8x128xf32>
      %1217 = arith.mulf %arg38, %239 : vector<8x128xf32>
      %1218 = arith.subf %1217, %1177 : vector<8x128xf32>
      %1219 = arith.mulf %1218, %366 : vector<8x128xf32>
      %1220 = arith.mulf %arg39, %242 : vector<8x128xf32>
      %1221 = arith.subf %1220, %1180 : vector<8x128xf32>
      %1222 = arith.mulf %1221, %373 : vector<8x128xf32>
      %1223 = arith.mulf %arg40, %245 : vector<8x128xf32>
      %1224 = arith.subf %1223, %1183 : vector<8x128xf32>
      %1225 = arith.mulf %1224, %380 : vector<8x128xf32>
      %1226 = arith.mulf %arg41, %248 : vector<8x128xf32>
      %1227 = arith.subf %1226, %1186 : vector<8x128xf32>
      %1228 = arith.mulf %1227, %387 : vector<8x128xf32>
      %1229 = arith.mulf %arg42, %251 : vector<8x128xf32>
      %1230 = arith.subf %1229, %1189 : vector<8x128xf32>
      %1231 = arith.mulf %1230, %394 : vector<8x128xf32>
      %1232 = arith.mulf %arg43, %254 : vector<8x128xf32>
      %1233 = arith.subf %1232, %1192 : vector<8x128xf32>
      %1234 = arith.mulf %1233, %401 : vector<8x128xf32>
      %1235 = arith.subf %1195, %1216 : vector<8x128xf32>
      %1236 = arith.subf %1198, %1219 : vector<8x128xf32>
      %1237 = arith.subf %1201, %1222 : vector<8x128xf32>
      %1238 = arith.subf %1204, %1225 : vector<8x128xf32>
      %1239 = arith.subf %1207, %1228 : vector<8x128xf32>
      %1240 = arith.subf %1210, %1231 : vector<8x128xf32>
      %1241 = arith.subf %1213, %1234 : vector<8x128xf32>
      %1242 = arith.addf %185, %1235 : vector<8x128xf32>
      %cst_164 = arith.constant 0.000000e+00 : f32
      %1243 = vector.broadcast %cst_164 : f32 to vector<8x128xf32>
      %1244 = arith.subf %1243, %1242 : vector<8x128xf32>
      %1245 = arith.subf %1236, %1235 : vector<8x128xf32>
      %1246 = arith.addf %189, %1245 : vector<8x128xf32>
      %cst_165 = arith.constant 0.000000e+00 : f32
      %1247 = vector.broadcast %cst_165 : f32 to vector<8x128xf32>
      %1248 = arith.subf %1247, %1246 : vector<8x128xf32>
      %1249 = arith.subf %1237, %1236 : vector<8x128xf32>
      %1250 = arith.addf %193, %1249 : vector<8x128xf32>
      %cst_166 = arith.constant 0.000000e+00 : f32
      %1251 = vector.broadcast %cst_166 : f32 to vector<8x128xf32>
      %1252 = arith.subf %1251, %1250 : vector<8x128xf32>
      %1253 = arith.subf %1238, %1237 : vector<8x128xf32>
      %1254 = arith.addf %197, %1253 : vector<8x128xf32>
      %cst_167 = arith.constant 0.000000e+00 : f32
      %1255 = vector.broadcast %cst_167 : f32 to vector<8x128xf32>
      %1256 = arith.subf %1255, %1254 : vector<8x128xf32>
      %1257 = arith.subf %1239, %1238 : vector<8x128xf32>
      %1258 = arith.addf %201, %1257 : vector<8x128xf32>
      %cst_168 = arith.constant 0.000000e+00 : f32
      %1259 = vector.broadcast %cst_168 : f32 to vector<8x128xf32>
      %1260 = arith.subf %1259, %1258 : vector<8x128xf32>
      %1261 = arith.subf %1240, %1239 : vector<8x128xf32>
      %1262 = arith.addf %205, %1261 : vector<8x128xf32>
      %cst_169 = arith.constant 0.000000e+00 : f32
      %1263 = vector.broadcast %cst_169 : f32 to vector<8x128xf32>
      %1264 = arith.subf %1263, %1262 : vector<8x128xf32>
      %1265 = arith.subf %1241, %1240 : vector<8x128xf32>
      %1266 = arith.addf %209, %1265 : vector<8x128xf32>
      %cst_170 = arith.constant 0.000000e+00 : f32
      %1267 = vector.broadcast %cst_170 : f32 to vector<8x128xf32>
      %1268 = arith.subf %1267, %1266 : vector<8x128xf32>
      %1269 = arith.subf %212, %1241 : vector<8x128xf32>
      %cst_171 = arith.constant 0.000000e+00 : f32
      %1270 = vector.broadcast %cst_171 : f32 to vector<8x128xf32>
      %1271 = arith.subf %1270, %1269 : vector<8x128xf32>
      %1272 = arith.mulf %1244, %456 : vector<8x128xf32>
      %1273 = arith.mulf %1248, %465 : vector<8x128xf32>
      %1274 = arith.mulf %1252, %475 : vector<8x128xf32>
      %1275 = arith.mulf %1256, %485 : vector<8x128xf32>
      %1276 = arith.mulf %1260, %495 : vector<8x128xf32>
      %1277 = arith.mulf %1264, %505 : vector<8x128xf32>
      %1278 = arith.mulf %1268, %515 : vector<8x128xf32>
      %1279 = arith.mulf %1271, %524 : vector<8x128xf32>
      %1280 = arith.mulf %466, %1272 : vector<8x128xf32>
      %1281 = arith.addf %1273, %1280 : vector<8x128xf32>
      %1282 = arith.mulf %476, %1281 : vector<8x128xf32>
      %1283 = arith.addf %1274, %1282 : vector<8x128xf32>
      %1284 = arith.mulf %486, %1283 : vector<8x128xf32>
      %1285 = arith.addf %1275, %1284 : vector<8x128xf32>
      %1286 = arith.mulf %496, %1285 : vector<8x128xf32>
      %1287 = arith.addf %1276, %1286 : vector<8x128xf32>
      %1288 = arith.mulf %506, %1287 : vector<8x128xf32>
      %1289 = arith.addf %1277, %1288 : vector<8x128xf32>
      %1290 = arith.mulf %516, %1289 : vector<8x128xf32>
      %1291 = arith.addf %1278, %1290 : vector<8x128xf32>
      %1292 = arith.mulf %525, %1291 : vector<8x128xf32>
      %1293 = arith.addf %1279, %1292 : vector<8x128xf32>
      %1294 = arith.mulf %517, %1293 : vector<8x128xf32>
      %1295 = arith.addf %1291, %1294 : vector<8x128xf32>
      %1296 = arith.mulf %507, %1295 : vector<8x128xf32>
      %1297 = arith.addf %1289, %1296 : vector<8x128xf32>
      %1298 = arith.mulf %497, %1297 : vector<8x128xf32>
      %1299 = arith.addf %1287, %1298 : vector<8x128xf32>
      %1300 = arith.mulf %487, %1299 : vector<8x128xf32>
      %1301 = arith.addf %1285, %1300 : vector<8x128xf32>
      %1302 = arith.mulf %477, %1301 : vector<8x128xf32>
      %1303 = arith.addf %1283, %1302 : vector<8x128xf32>
      %1304 = arith.mulf %467, %1303 : vector<8x128xf32>
      %1305 = arith.addf %1281, %1304 : vector<8x128xf32>
      %1306 = arith.mulf %457, %1305 : vector<8x128xf32>
      %1307 = arith.addf %1272, %1306 : vector<8x128xf32>
      %1308 = arith.subf %1307, %1305 : vector<8x128xf32>
      %1309 = arith.subf %1305, %1303 : vector<8x128xf32>
      %1310 = arith.subf %1303, %1301 : vector<8x128xf32>
      %1311 = arith.subf %1301, %1299 : vector<8x128xf32>
      %1312 = arith.subf %1299, %1297 : vector<8x128xf32>
      %1313 = arith.subf %1297, %1295 : vector<8x128xf32>
      %1314 = arith.subf %1295, %1293 : vector<8x128xf32>
      %1315 = arith.addf %215, %1308 : vector<8x128xf32>
      %1316 = arith.mulf %arg30, %1315 : vector<8x128xf32>
      %1317 = arith.subf %1316, %1153 : vector<8x128xf32>
      %1318 = arith.mulf %1317, %310 : vector<8x128xf32>
      %1319 = arith.addf %218, %1309 : vector<8x128xf32>
      %1320 = arith.mulf %arg31, %1319 : vector<8x128xf32>
      %1321 = arith.subf %1320, %1156 : vector<8x128xf32>
      %1322 = arith.mulf %1321, %317 : vector<8x128xf32>
      %1323 = arith.addf %221, %1310 : vector<8x128xf32>
      %1324 = arith.mulf %arg32, %1323 : vector<8x128xf32>
      %1325 = arith.subf %1324, %1159 : vector<8x128xf32>
      %1326 = arith.mulf %1325, %324 : vector<8x128xf32>
      %1327 = arith.addf %224, %1311 : vector<8x128xf32>
      %1328 = arith.mulf %arg33, %1327 : vector<8x128xf32>
      %1329 = arith.subf %1328, %1162 : vector<8x128xf32>
      %1330 = arith.mulf %1329, %331 : vector<8x128xf32>
      %1331 = arith.addf %227, %1312 : vector<8x128xf32>
      %1332 = arith.mulf %arg34, %1331 : vector<8x128xf32>
      %1333 = arith.subf %1332, %1165 : vector<8x128xf32>
      %1334 = arith.mulf %1333, %338 : vector<8x128xf32>
      %1335 = arith.addf %230, %1313 : vector<8x128xf32>
      %1336 = arith.mulf %arg35, %1335 : vector<8x128xf32>
      %1337 = arith.subf %1336, %1168 : vector<8x128xf32>
      %1338 = arith.mulf %1337, %345 : vector<8x128xf32>
      %1339 = arith.addf %233, %1314 : vector<8x128xf32>
      %1340 = arith.mulf %arg36, %1339 : vector<8x128xf32>
      %1341 = arith.subf %1340, %1171 : vector<8x128xf32>
      %1342 = arith.mulf %1341, %352 : vector<8x128xf32>
      %1343 = arith.subf %236, %1308 : vector<8x128xf32>
      %1344 = arith.mulf %arg37, %1343 : vector<8x128xf32>
      %1345 = arith.subf %1344, %1174 : vector<8x128xf32>
      %1346 = arith.mulf %1345, %359 : vector<8x128xf32>
      %1347 = arith.subf %239, %1309 : vector<8x128xf32>
      %1348 = arith.mulf %arg38, %1347 : vector<8x128xf32>
      %1349 = arith.subf %1348, %1177 : vector<8x128xf32>
      %1350 = arith.mulf %1349, %366 : vector<8x128xf32>
      %1351 = arith.subf %242, %1310 : vector<8x128xf32>
      %1352 = arith.mulf %arg39, %1351 : vector<8x128xf32>
      %1353 = arith.subf %1352, %1180 : vector<8x128xf32>
      %1354 = arith.mulf %1353, %373 : vector<8x128xf32>
      %1355 = arith.subf %245, %1311 : vector<8x128xf32>
      %1356 = arith.mulf %arg40, %1355 : vector<8x128xf32>
      %1357 = arith.subf %1356, %1183 : vector<8x128xf32>
      %1358 = arith.mulf %1357, %380 : vector<8x128xf32>
      %1359 = arith.subf %248, %1312 : vector<8x128xf32>
      %1360 = arith.mulf %arg41, %1359 : vector<8x128xf32>
      %1361 = arith.subf %1360, %1186 : vector<8x128xf32>
      %1362 = arith.mulf %1361, %387 : vector<8x128xf32>
      %1363 = arith.subf %251, %1313 : vector<8x128xf32>
      %1364 = arith.mulf %arg42, %1363 : vector<8x128xf32>
      %1365 = arith.subf %1364, %1189 : vector<8x128xf32>
      %1366 = arith.mulf %1365, %394 : vector<8x128xf32>
      %1367 = arith.subf %254, %1314 : vector<8x128xf32>
      %1368 = arith.mulf %arg43, %1367 : vector<8x128xf32>
      %1369 = arith.subf %1368, %1192 : vector<8x128xf32>
      %1370 = arith.mulf %1369, %401 : vector<8x128xf32>
      %cst_172 = arith.constant 0.000000e+00 : f32
      %1371 = vector.broadcast %cst_172 : f32 to vector<8x128xf32>
      %1372 = arith.subf %1371, %215 : vector<8x128xf32>
      %1373 = arith.subf %1372, %1308 : vector<8x128xf32>
      %cst_173 = arith.constant 0.000000e+00 : f32
      %1374 = vector.broadcast %cst_173 : f32 to vector<8x128xf32>
      %1375 = arith.subf %1374, %218 : vector<8x128xf32>
      %1376 = arith.subf %1375, %1309 : vector<8x128xf32>
      %cst_174 = arith.constant 0.000000e+00 : f32
      %1377 = vector.broadcast %cst_174 : f32 to vector<8x128xf32>
      %1378 = arith.subf %1377, %221 : vector<8x128xf32>
      %1379 = arith.subf %1378, %1310 : vector<8x128xf32>
      %cst_175 = arith.constant 0.000000e+00 : f32
      %1380 = vector.broadcast %cst_175 : f32 to vector<8x128xf32>
      %1381 = arith.subf %1380, %224 : vector<8x128xf32>
      %1382 = arith.subf %1381, %1311 : vector<8x128xf32>
      %cst_176 = arith.constant 0.000000e+00 : f32
      %1383 = vector.broadcast %cst_176 : f32 to vector<8x128xf32>
      %1384 = arith.subf %1383, %227 : vector<8x128xf32>
      %1385 = arith.subf %1384, %1312 : vector<8x128xf32>
      %cst_177 = arith.constant 0.000000e+00 : f32
      %1386 = vector.broadcast %cst_177 : f32 to vector<8x128xf32>
      %1387 = arith.subf %1386, %230 : vector<8x128xf32>
      %1388 = arith.subf %1387, %1313 : vector<8x128xf32>
      %cst_178 = arith.constant 0.000000e+00 : f32
      %1389 = vector.broadcast %cst_178 : f32 to vector<8x128xf32>
      %1390 = arith.subf %1389, %233 : vector<8x128xf32>
      %1391 = arith.subf %1390, %1314 : vector<8x128xf32>
      %1392 = arith.subf %1308, %236 : vector<8x128xf32>
      %1393 = arith.subf %1309, %239 : vector<8x128xf32>
      %1394 = arith.subf %1310, %242 : vector<8x128xf32>
      %1395 = arith.subf %1311, %245 : vector<8x128xf32>
      %1396 = arith.subf %1312, %248 : vector<8x128xf32>
      %1397 = arith.subf %1313, %251 : vector<8x128xf32>
      %1398 = arith.subf %1314, %254 : vector<8x128xf32>
      %cst_179 = arith.constant 0.000000e+00 : f32
      %1399 = arith.subf %cst_179, %cst_31 : f32
      %1400 = vector.broadcast %1399 : f32 to vector<8x128xf32>
      %1401 = arith.cmpf olt, %1373, %1400 : vector<8x128xf32>
      %cst_180 = arith.constant 0.000000e+00 : f32
      %1402 = vector.broadcast %cst_180 : f32 to vector<8x128xf32>
      %1403 = arith.subf %1402, %1373 : vector<8x128xf32>
      %1404 = vector.broadcast %cst_31 : f32 to vector<8x128xf32>
      %1405 = arith.maximumf %1403, %1404 : vector<8x128xf32>
      %1406 = tpu.reciprocal %1405 {approx = true} : vector<8x128xf32> -> vector<8x128xf32>
      %1407 = arith.mulf %arg16, %1406 : vector<8x128xf32>
      %1408 = arith.select %1401, %1407, %5 : vector<8x128xi1>, vector<8x128xf32>
      %cst_181 = arith.constant 0.000000e+00 : f32
      %1409 = arith.subf %cst_181, %cst_31 : f32
      %1410 = vector.broadcast %1409 : f32 to vector<8x128xf32>
      %1411 = arith.cmpf olt, %1376, %1410 : vector<8x128xf32>
      %cst_182 = arith.constant 0.000000e+00 : f32
      %1412 = vector.broadcast %cst_182 : f32 to vector<8x128xf32>
      %1413 = arith.subf %1412, %1376 : vector<8x128xf32>
      %1414 = vector.broadcast %cst_31 : f32 to vector<8x128xf32>
      %1415 = arith.maximumf %1413, %1414 : vector<8x128xf32>
      %1416 = tpu.reciprocal %1415 {approx = true} : vector<8x128xf32> -> vector<8x128xf32>
      %1417 = arith.mulf %arg17, %1416 : vector<8x128xf32>
      %1418 = arith.select %1411, %1417, %5 : vector<8x128xi1>, vector<8x128xf32>
      %1419 = arith.minimumf %1408, %1418 : vector<8x128xf32>
      %cst_183 = arith.constant 0.000000e+00 : f32
      %1420 = arith.subf %cst_183, %cst_31 : f32
      %1421 = vector.broadcast %1420 : f32 to vector<8x128xf32>
      %1422 = arith.cmpf olt, %1379, %1421 : vector<8x128xf32>
      %cst_184 = arith.constant 0.000000e+00 : f32
      %1423 = vector.broadcast %cst_184 : f32 to vector<8x128xf32>
      %1424 = arith.subf %1423, %1379 : vector<8x128xf32>
      %1425 = vector.broadcast %cst_31 : f32 to vector<8x128xf32>
      %1426 = arith.maximumf %1424, %1425 : vector<8x128xf32>
      %1427 = tpu.reciprocal %1426 {approx = true} : vector<8x128xf32> -> vector<8x128xf32>
      %1428 = arith.mulf %arg18, %1427 : vector<8x128xf32>
      %1429 = arith.select %1422, %1428, %5 : vector<8x128xi1>, vector<8x128xf32>
      %1430 = arith.minimumf %1419, %1429 : vector<8x128xf32>
      %cst_185 = arith.constant 0.000000e+00 : f32
      %1431 = arith.subf %cst_185, %cst_31 : f32
      %1432 = vector.broadcast %1431 : f32 to vector<8x128xf32>
      %1433 = arith.cmpf olt, %1382, %1432 : vector<8x128xf32>
      %cst_186 = arith.constant 0.000000e+00 : f32
      %1434 = vector.broadcast %cst_186 : f32 to vector<8x128xf32>
      %1435 = arith.subf %1434, %1382 : vector<8x128xf32>
      %1436 = vector.broadcast %cst_31 : f32 to vector<8x128xf32>
      %1437 = arith.maximumf %1435, %1436 : vector<8x128xf32>
      %1438 = tpu.reciprocal %1437 {approx = true} : vector<8x128xf32> -> vector<8x128xf32>
      %1439 = arith.mulf %arg19, %1438 : vector<8x128xf32>
      %1440 = arith.select %1433, %1439, %5 : vector<8x128xi1>, vector<8x128xf32>
      %1441 = arith.minimumf %1430, %1440 : vector<8x128xf32>
      %cst_187 = arith.constant 0.000000e+00 : f32
      %1442 = arith.subf %cst_187, %cst_31 : f32
      %1443 = vector.broadcast %1442 : f32 to vector<8x128xf32>
      %1444 = arith.cmpf olt, %1385, %1443 : vector<8x128xf32>
      %cst_188 = arith.constant 0.000000e+00 : f32
      %1445 = vector.broadcast %cst_188 : f32 to vector<8x128xf32>
      %1446 = arith.subf %1445, %1385 : vector<8x128xf32>
      %1447 = vector.broadcast %cst_31 : f32 to vector<8x128xf32>
      %1448 = arith.maximumf %1446, %1447 : vector<8x128xf32>
      %1449 = tpu.reciprocal %1448 {approx = true} : vector<8x128xf32> -> vector<8x128xf32>
      %1450 = arith.mulf %arg20, %1449 : vector<8x128xf32>
      %1451 = arith.select %1444, %1450, %5 : vector<8x128xi1>, vector<8x128xf32>
      %1452 = arith.minimumf %1441, %1451 : vector<8x128xf32>
      %cst_189 = arith.constant 0.000000e+00 : f32
      %1453 = arith.subf %cst_189, %cst_31 : f32
      %1454 = vector.broadcast %1453 : f32 to vector<8x128xf32>
      %1455 = arith.cmpf olt, %1388, %1454 : vector<8x128xf32>
      %cst_190 = arith.constant 0.000000e+00 : f32
      %1456 = vector.broadcast %cst_190 : f32 to vector<8x128xf32>
      %1457 = arith.subf %1456, %1388 : vector<8x128xf32>
      %1458 = vector.broadcast %cst_31 : f32 to vector<8x128xf32>
      %1459 = arith.maximumf %1457, %1458 : vector<8x128xf32>
      %1460 = tpu.reciprocal %1459 {approx = true} : vector<8x128xf32> -> vector<8x128xf32>
      %1461 = arith.mulf %arg21, %1460 : vector<8x128xf32>
      %1462 = arith.select %1455, %1461, %5 : vector<8x128xi1>, vector<8x128xf32>
      %1463 = arith.minimumf %1452, %1462 : vector<8x128xf32>
      %cst_191 = arith.constant 0.000000e+00 : f32
      %1464 = arith.subf %cst_191, %cst_31 : f32
      %1465 = vector.broadcast %1464 : f32 to vector<8x128xf32>
      %1466 = arith.cmpf olt, %1391, %1465 : vector<8x128xf32>
      %cst_192 = arith.constant 0.000000e+00 : f32
      %1467 = vector.broadcast %cst_192 : f32 to vector<8x128xf32>
      %1468 = arith.subf %1467, %1391 : vector<8x128xf32>
      %1469 = vector.broadcast %cst_31 : f32 to vector<8x128xf32>
      %1470 = arith.maximumf %1468, %1469 : vector<8x128xf32>
      %1471 = tpu.reciprocal %1470 {approx = true} : vector<8x128xf32> -> vector<8x128xf32>
      %1472 = arith.mulf %arg22, %1471 : vector<8x128xf32>
      %1473 = arith.select %1466, %1472, %5 : vector<8x128xi1>, vector<8x128xf32>
      %1474 = arith.minimumf %1463, %1473 : vector<8x128xf32>
      %cst_193 = arith.constant 0.000000e+00 : f32
      %1475 = arith.subf %cst_193, %cst_31 : f32
      %1476 = vector.broadcast %1475 : f32 to vector<8x128xf32>
      %1477 = arith.cmpf olt, %1392, %1476 : vector<8x128xf32>
      %cst_194 = arith.constant 0.000000e+00 : f32
      %1478 = vector.broadcast %cst_194 : f32 to vector<8x128xf32>
      %1479 = arith.subf %1478, %1392 : vector<8x128xf32>
      %1480 = vector.broadcast %cst_31 : f32 to vector<8x128xf32>
      %1481 = arith.maximumf %1479, %1480 : vector<8x128xf32>
      %1482 = tpu.reciprocal %1481 {approx = true} : vector<8x128xf32> -> vector<8x128xf32>
      %1483 = arith.mulf %arg23, %1482 : vector<8x128xf32>
      %1484 = arith.select %1477, %1483, %5 : vector<8x128xi1>, vector<8x128xf32>
      %cst_195 = arith.constant 0.000000e+00 : f32
      %1485 = arith.subf %cst_195, %cst_31 : f32
      %1486 = vector.broadcast %1485 : f32 to vector<8x128xf32>
      %1487 = arith.cmpf olt, %1393, %1486 : vector<8x128xf32>
      %cst_196 = arith.constant 0.000000e+00 : f32
      %1488 = vector.broadcast %cst_196 : f32 to vector<8x128xf32>
      %1489 = arith.subf %1488, %1393 : vector<8x128xf32>
      %1490 = vector.broadcast %cst_31 : f32 to vector<8x128xf32>
      %1491 = arith.maximumf %1489, %1490 : vector<8x128xf32>
      %1492 = tpu.reciprocal %1491 {approx = true} : vector<8x128xf32> -> vector<8x128xf32>
      %1493 = arith.mulf %arg24, %1492 : vector<8x128xf32>
      %1494 = arith.select %1487, %1493, %5 : vector<8x128xi1>, vector<8x128xf32>
      %1495 = arith.minimumf %1484, %1494 : vector<8x128xf32>
      %cst_197 = arith.constant 0.000000e+00 : f32
      %1496 = arith.subf %cst_197, %cst_31 : f32
      %1497 = vector.broadcast %1496 : f32 to vector<8x128xf32>
      %1498 = arith.cmpf olt, %1394, %1497 : vector<8x128xf32>
      %cst_198 = arith.constant 0.000000e+00 : f32
      %1499 = vector.broadcast %cst_198 : f32 to vector<8x128xf32>
      %1500 = arith.subf %1499, %1394 : vector<8x128xf32>
      %1501 = vector.broadcast %cst_31 : f32 to vector<8x128xf32>
      %1502 = arith.maximumf %1500, %1501 : vector<8x128xf32>
      %1503 = tpu.reciprocal %1502 {approx = true} : vector<8x128xf32> -> vector<8x128xf32>
      %1504 = arith.mulf %arg25, %1503 : vector<8x128xf32>
      %1505 = arith.select %1498, %1504, %5 : vector<8x128xi1>, vector<8x128xf32>
      %1506 = arith.minimumf %1495, %1505 : vector<8x128xf32>
      %cst_199 = arith.constant 0.000000e+00 : f32
      %1507 = arith.subf %cst_199, %cst_31 : f32
      %1508 = vector.broadcast %1507 : f32 to vector<8x128xf32>
      %1509 = arith.cmpf olt, %1395, %1508 : vector<8x128xf32>
      %cst_200 = arith.constant 0.000000e+00 : f32
      %1510 = vector.broadcast %cst_200 : f32 to vector<8x128xf32>
      %1511 = arith.subf %1510, %1395 : vector<8x128xf32>
      %1512 = vector.broadcast %cst_31 : f32 to vector<8x128xf32>
      %1513 = arith.maximumf %1511, %1512 : vector<8x128xf32>
      %1514 = tpu.reciprocal %1513 {approx = true} : vector<8x128xf32> -> vector<8x128xf32>
      %1515 = arith.mulf %arg26, %1514 : vector<8x128xf32>
      %1516 = arith.select %1509, %1515, %5 : vector<8x128xi1>, vector<8x128xf32>
      %1517 = arith.minimumf %1506, %1516 : vector<8x128xf32>
      %cst_201 = arith.constant 0.000000e+00 : f32
      %1518 = arith.subf %cst_201, %cst_31 : f32
      %1519 = vector.broadcast %1518 : f32 to vector<8x128xf32>
      %1520 = arith.cmpf olt, %1396, %1519 : vector<8x128xf32>
      %cst_202 = arith.constant 0.000000e+00 : f32
      %1521 = vector.broadcast %cst_202 : f32 to vector<8x128xf32>
      %1522 = arith.subf %1521, %1396 : vector<8x128xf32>
      %1523 = vector.broadcast %cst_31 : f32 to vector<8x128xf32>
      %1524 = arith.maximumf %1522, %1523 : vector<8x128xf32>
      %1525 = tpu.reciprocal %1524 {approx = true} : vector<8x128xf32> -> vector<8x128xf32>
      %1526 = arith.mulf %arg27, %1525 : vector<8x128xf32>
      %1527 = arith.select %1520, %1526, %5 : vector<8x128xi1>, vector<8x128xf32>
      %1528 = arith.minimumf %1517, %1527 : vector<8x128xf32>
      %cst_203 = arith.constant 0.000000e+00 : f32
      %1529 = arith.subf %cst_203, %cst_31 : f32
      %1530 = vector.broadcast %1529 : f32 to vector<8x128xf32>
      %1531 = arith.cmpf olt, %1397, %1530 : vector<8x128xf32>
      %cst_204 = arith.constant 0.000000e+00 : f32
      %1532 = vector.broadcast %cst_204 : f32 to vector<8x128xf32>
      %1533 = arith.subf %1532, %1397 : vector<8x128xf32>
      %1534 = vector.broadcast %cst_31 : f32 to vector<8x128xf32>
      %1535 = arith.maximumf %1533, %1534 : vector<8x128xf32>
      %1536 = tpu.reciprocal %1535 {approx = true} : vector<8x128xf32> -> vector<8x128xf32>
      %1537 = arith.mulf %arg28, %1536 : vector<8x128xf32>
      %1538 = arith.select %1531, %1537, %5 : vector<8x128xi1>, vector<8x128xf32>
      %1539 = arith.minimumf %1528, %1538 : vector<8x128xf32>
      %cst_205 = arith.constant 0.000000e+00 : f32
      %1540 = arith.subf %cst_205, %cst_31 : f32
      %1541 = vector.broadcast %1540 : f32 to vector<8x128xf32>
      %1542 = arith.cmpf olt, %1398, %1541 : vector<8x128xf32>
      %cst_206 = arith.constant 0.000000e+00 : f32
      %1543 = vector.broadcast %cst_206 : f32 to vector<8x128xf32>
      %1544 = arith.subf %1543, %1398 : vector<8x128xf32>
      %1545 = vector.broadcast %cst_31 : f32 to vector<8x128xf32>
      %1546 = arith.maximumf %1544, %1545 : vector<8x128xf32>
      %1547 = tpu.reciprocal %1546 {approx = true} : vector<8x128xf32> -> vector<8x128xf32>
      %1548 = arith.mulf %arg29, %1547 : vector<8x128xf32>
      %1549 = arith.select %1542, %1548, %5 : vector<8x128xi1>, vector<8x128xf32>
      %1550 = arith.minimumf %1539, %1549 : vector<8x128xf32>
      %1551 = arith.minimumf %1474, %1550 : vector<8x128xf32>
      %cst_207 = arith.constant 0.000000e+00 : f32
      %1552 = arith.subf %cst_207, %cst_31 : f32
      %1553 = vector.broadcast %1552 : f32 to vector<8x128xf32>
      %1554 = arith.cmpf olt, %1318, %1553 : vector<8x128xf32>
      %cst_208 = arith.constant 0.000000e+00 : f32
      %1555 = vector.broadcast %cst_208 : f32 to vector<8x128xf32>
      %1556 = arith.subf %1555, %1318 : vector<8x128xf32>
      %1557 = vector.broadcast %cst_31 : f32 to vector<8x128xf32>
      %1558 = arith.maximumf %1556, %1557 : vector<8x128xf32>
      %1559 = tpu.reciprocal %1558 {approx = true} : vector<8x128xf32> -> vector<8x128xf32>
      %1560 = arith.mulf %arg30, %1559 : vector<8x128xf32>
      %1561 = arith.select %1554, %1560, %5 : vector<8x128xi1>, vector<8x128xf32>
      %cst_209 = arith.constant 0.000000e+00 : f32
      %1562 = arith.subf %cst_209, %cst_31 : f32
      %1563 = vector.broadcast %1562 : f32 to vector<8x128xf32>
      %1564 = arith.cmpf olt, %1322, %1563 : vector<8x128xf32>
      %cst_210 = arith.constant 0.000000e+00 : f32
      %1565 = vector.broadcast %cst_210 : f32 to vector<8x128xf32>
      %1566 = arith.subf %1565, %1322 : vector<8x128xf32>
      %1567 = vector.broadcast %cst_31 : f32 to vector<8x128xf32>
      %1568 = arith.maximumf %1566, %1567 : vector<8x128xf32>
      %1569 = tpu.reciprocal %1568 {approx = true} : vector<8x128xf32> -> vector<8x128xf32>
      %1570 = arith.mulf %arg31, %1569 : vector<8x128xf32>
      %1571 = arith.select %1564, %1570, %5 : vector<8x128xi1>, vector<8x128xf32>
      %1572 = arith.minimumf %1561, %1571 : vector<8x128xf32>
      %cst_211 = arith.constant 0.000000e+00 : f32
      %1573 = arith.subf %cst_211, %cst_31 : f32
      %1574 = vector.broadcast %1573 : f32 to vector<8x128xf32>
      %1575 = arith.cmpf olt, %1326, %1574 : vector<8x128xf32>
      %cst_212 = arith.constant 0.000000e+00 : f32
      %1576 = vector.broadcast %cst_212 : f32 to vector<8x128xf32>
      %1577 = arith.subf %1576, %1326 : vector<8x128xf32>
      %1578 = vector.broadcast %cst_31 : f32 to vector<8x128xf32>
      %1579 = arith.maximumf %1577, %1578 : vector<8x128xf32>
      %1580 = tpu.reciprocal %1579 {approx = true} : vector<8x128xf32> -> vector<8x128xf32>
      %1581 = arith.mulf %arg32, %1580 : vector<8x128xf32>
      %1582 = arith.select %1575, %1581, %5 : vector<8x128xi1>, vector<8x128xf32>
      %1583 = arith.minimumf %1572, %1582 : vector<8x128xf32>
      %cst_213 = arith.constant 0.000000e+00 : f32
      %1584 = arith.subf %cst_213, %cst_31 : f32
      %1585 = vector.broadcast %1584 : f32 to vector<8x128xf32>
      %1586 = arith.cmpf olt, %1330, %1585 : vector<8x128xf32>
      %cst_214 = arith.constant 0.000000e+00 : f32
      %1587 = vector.broadcast %cst_214 : f32 to vector<8x128xf32>
      %1588 = arith.subf %1587, %1330 : vector<8x128xf32>
      %1589 = vector.broadcast %cst_31 : f32 to vector<8x128xf32>
      %1590 = arith.maximumf %1588, %1589 : vector<8x128xf32>
      %1591 = tpu.reciprocal %1590 {approx = true} : vector<8x128xf32> -> vector<8x128xf32>
      %1592 = arith.mulf %arg33, %1591 : vector<8x128xf32>
      %1593 = arith.select %1586, %1592, %5 : vector<8x128xi1>, vector<8x128xf32>
      %1594 = arith.minimumf %1583, %1593 : vector<8x128xf32>
      %cst_215 = arith.constant 0.000000e+00 : f32
      %1595 = arith.subf %cst_215, %cst_31 : f32
      %1596 = vector.broadcast %1595 : f32 to vector<8x128xf32>
      %1597 = arith.cmpf olt, %1334, %1596 : vector<8x128xf32>
      %cst_216 = arith.constant 0.000000e+00 : f32
      %1598 = vector.broadcast %cst_216 : f32 to vector<8x128xf32>
      %1599 = arith.subf %1598, %1334 : vector<8x128xf32>
      %1600 = vector.broadcast %cst_31 : f32 to vector<8x128xf32>
      %1601 = arith.maximumf %1599, %1600 : vector<8x128xf32>
      %1602 = tpu.reciprocal %1601 {approx = true} : vector<8x128xf32> -> vector<8x128xf32>
      %1603 = arith.mulf %arg34, %1602 : vector<8x128xf32>
      %1604 = arith.select %1597, %1603, %5 : vector<8x128xi1>, vector<8x128xf32>
      %1605 = arith.minimumf %1594, %1604 : vector<8x128xf32>
      %cst_217 = arith.constant 0.000000e+00 : f32
      %1606 = arith.subf %cst_217, %cst_31 : f32
      %1607 = vector.broadcast %1606 : f32 to vector<8x128xf32>
      %1608 = arith.cmpf olt, %1338, %1607 : vector<8x128xf32>
      %cst_218 = arith.constant 0.000000e+00 : f32
      %1609 = vector.broadcast %cst_218 : f32 to vector<8x128xf32>
      %1610 = arith.subf %1609, %1338 : vector<8x128xf32>
      %1611 = vector.broadcast %cst_31 : f32 to vector<8x128xf32>
      %1612 = arith.maximumf %1610, %1611 : vector<8x128xf32>
      %1613 = tpu.reciprocal %1612 {approx = true} : vector<8x128xf32> -> vector<8x128xf32>
      %1614 = arith.mulf %arg35, %1613 : vector<8x128xf32>
      %1615 = arith.select %1608, %1614, %5 : vector<8x128xi1>, vector<8x128xf32>
      %1616 = arith.minimumf %1605, %1615 : vector<8x128xf32>
      %cst_219 = arith.constant 0.000000e+00 : f32
      %1617 = arith.subf %cst_219, %cst_31 : f32
      %1618 = vector.broadcast %1617 : f32 to vector<8x128xf32>
      %1619 = arith.cmpf olt, %1342, %1618 : vector<8x128xf32>
      %cst_220 = arith.constant 0.000000e+00 : f32
      %1620 = vector.broadcast %cst_220 : f32 to vector<8x128xf32>
      %1621 = arith.subf %1620, %1342 : vector<8x128xf32>
      %1622 = vector.broadcast %cst_31 : f32 to vector<8x128xf32>
      %1623 = arith.maximumf %1621, %1622 : vector<8x128xf32>
      %1624 = tpu.reciprocal %1623 {approx = true} : vector<8x128xf32> -> vector<8x128xf32>
      %1625 = arith.mulf %arg36, %1624 : vector<8x128xf32>
      %1626 = arith.select %1619, %1625, %5 : vector<8x128xi1>, vector<8x128xf32>
      %1627 = arith.minimumf %1616, %1626 : vector<8x128xf32>
      %cst_221 = arith.constant 0.000000e+00 : f32
      %1628 = arith.subf %cst_221, %cst_31 : f32
      %1629 = vector.broadcast %1628 : f32 to vector<8x128xf32>
      %1630 = arith.cmpf olt, %1346, %1629 : vector<8x128xf32>
      %cst_222 = arith.constant 0.000000e+00 : f32
      %1631 = vector.broadcast %cst_222 : f32 to vector<8x128xf32>
      %1632 = arith.subf %1631, %1346 : vector<8x128xf32>
      %1633 = vector.broadcast %cst_31 : f32 to vector<8x128xf32>
      %1634 = arith.maximumf %1632, %1633 : vector<8x128xf32>
      %1635 = tpu.reciprocal %1634 {approx = true} : vector<8x128xf32> -> vector<8x128xf32>
      %1636 = arith.mulf %arg37, %1635 : vector<8x128xf32>
      %1637 = arith.select %1630, %1636, %5 : vector<8x128xi1>, vector<8x128xf32>
      %cst_223 = arith.constant 0.000000e+00 : f32
      %1638 = arith.subf %cst_223, %cst_31 : f32
      %1639 = vector.broadcast %1638 : f32 to vector<8x128xf32>
      %1640 = arith.cmpf olt, %1350, %1639 : vector<8x128xf32>
      %cst_224 = arith.constant 0.000000e+00 : f32
      %1641 = vector.broadcast %cst_224 : f32 to vector<8x128xf32>
      %1642 = arith.subf %1641, %1350 : vector<8x128xf32>
      %1643 = vector.broadcast %cst_31 : f32 to vector<8x128xf32>
      %1644 = arith.maximumf %1642, %1643 : vector<8x128xf32>
      %1645 = tpu.reciprocal %1644 {approx = true} : vector<8x128xf32> -> vector<8x128xf32>
      %1646 = arith.mulf %arg38, %1645 : vector<8x128xf32>
      %1647 = arith.select %1640, %1646, %5 : vector<8x128xi1>, vector<8x128xf32>
      %1648 = arith.minimumf %1637, %1647 : vector<8x128xf32>
      %cst_225 = arith.constant 0.000000e+00 : f32
      %1649 = arith.subf %cst_225, %cst_31 : f32
      %1650 = vector.broadcast %1649 : f32 to vector<8x128xf32>
      %1651 = arith.cmpf olt, %1354, %1650 : vector<8x128xf32>
      %cst_226 = arith.constant 0.000000e+00 : f32
      %1652 = vector.broadcast %cst_226 : f32 to vector<8x128xf32>
      %1653 = arith.subf %1652, %1354 : vector<8x128xf32>
      %1654 = vector.broadcast %cst_31 : f32 to vector<8x128xf32>
      %1655 = arith.maximumf %1653, %1654 : vector<8x128xf32>
      %1656 = tpu.reciprocal %1655 {approx = true} : vector<8x128xf32> -> vector<8x128xf32>
      %1657 = arith.mulf %arg39, %1656 : vector<8x128xf32>
      %1658 = arith.select %1651, %1657, %5 : vector<8x128xi1>, vector<8x128xf32>
      %1659 = arith.minimumf %1648, %1658 : vector<8x128xf32>
      %cst_227 = arith.constant 0.000000e+00 : f32
      %1660 = arith.subf %cst_227, %cst_31 : f32
      %1661 = vector.broadcast %1660 : f32 to vector<8x128xf32>
      %1662 = arith.cmpf olt, %1358, %1661 : vector<8x128xf32>
      %cst_228 = arith.constant 0.000000e+00 : f32
      %1663 = vector.broadcast %cst_228 : f32 to vector<8x128xf32>
      %1664 = arith.subf %1663, %1358 : vector<8x128xf32>
      %1665 = vector.broadcast %cst_31 : f32 to vector<8x128xf32>
      %1666 = arith.maximumf %1664, %1665 : vector<8x128xf32>
      %1667 = tpu.reciprocal %1666 {approx = true} : vector<8x128xf32> -> vector<8x128xf32>
      %1668 = arith.mulf %arg40, %1667 : vector<8x128xf32>
      %1669 = arith.select %1662, %1668, %5 : vector<8x128xi1>, vector<8x128xf32>
      %1670 = arith.minimumf %1659, %1669 : vector<8x128xf32>
      %cst_229 = arith.constant 0.000000e+00 : f32
      %1671 = arith.subf %cst_229, %cst_31 : f32
      %1672 = vector.broadcast %1671 : f32 to vector<8x128xf32>
      %1673 = arith.cmpf olt, %1362, %1672 : vector<8x128xf32>
      %cst_230 = arith.constant 0.000000e+00 : f32
      %1674 = vector.broadcast %cst_230 : f32 to vector<8x128xf32>
      %1675 = arith.subf %1674, %1362 : vector<8x128xf32>
      %1676 = vector.broadcast %cst_31 : f32 to vector<8x128xf32>
      %1677 = arith.maximumf %1675, %1676 : vector<8x128xf32>
      %1678 = tpu.reciprocal %1677 {approx = true} : vector<8x128xf32> -> vector<8x128xf32>
      %1679 = arith.mulf %arg41, %1678 : vector<8x128xf32>
      %1680 = arith.select %1673, %1679, %5 : vector<8x128xi1>, vector<8x128xf32>
      %1681 = arith.minimumf %1670, %1680 : vector<8x128xf32>
      %cst_231 = arith.constant 0.000000e+00 : f32
      %1682 = arith.subf %cst_231, %cst_31 : f32
      %1683 = vector.broadcast %1682 : f32 to vector<8x128xf32>
      %1684 = arith.cmpf olt, %1366, %1683 : vector<8x128xf32>
      %cst_232 = arith.constant 0.000000e+00 : f32
      %1685 = vector.broadcast %cst_232 : f32 to vector<8x128xf32>
      %1686 = arith.subf %1685, %1366 : vector<8x128xf32>
      %1687 = vector.broadcast %cst_31 : f32 to vector<8x128xf32>
      %1688 = arith.maximumf %1686, %1687 : vector<8x128xf32>
      %1689 = tpu.reciprocal %1688 {approx = true} : vector<8x128xf32> -> vector<8x128xf32>
      %1690 = arith.mulf %arg42, %1689 : vector<8x128xf32>
      %1691 = arith.select %1684, %1690, %5 : vector<8x128xi1>, vector<8x128xf32>
      %1692 = arith.minimumf %1681, %1691 : vector<8x128xf32>
      %cst_233 = arith.constant 0.000000e+00 : f32
      %1693 = arith.subf %cst_233, %cst_31 : f32
      %1694 = vector.broadcast %1693 : f32 to vector<8x128xf32>
      %1695 = arith.cmpf olt, %1370, %1694 : vector<8x128xf32>
      %cst_234 = arith.constant 0.000000e+00 : f32
      %1696 = vector.broadcast %cst_234 : f32 to vector<8x128xf32>
      %1697 = arith.subf %1696, %1370 : vector<8x128xf32>
      %1698 = vector.broadcast %cst_31 : f32 to vector<8x128xf32>
      %1699 = arith.maximumf %1697, %1698 : vector<8x128xf32>
      %1700 = tpu.reciprocal %1699 {approx = true} : vector<8x128xf32> -> vector<8x128xf32>
      %1701 = arith.mulf %arg43, %1700 : vector<8x128xf32>
      %1702 = arith.select %1695, %1701, %5 : vector<8x128xi1>, vector<8x128xf32>
      %1703 = arith.minimumf %1692, %1702 : vector<8x128xf32>
      %1704 = arith.minimumf %1627, %1703 : vector<8x128xf32>
      %1705 = arith.minimumf %1551, %1704 : vector<8x128xf32>
      %cst_235 = arith.constant 9.900000e-01 : f32
      %1706 = vector.broadcast %cst_235 : f32 to vector<8x128xf32>
      %1707 = arith.mulf %1706, %1705 : vector<8x128xf32>
      %cst_236 = arith.constant 1.000000e+00 : f32
      %1708 = vector.broadcast %cst_236 : f32 to vector<8x128xf32>
      %1709 = arith.minimumf %1708, %1707 : vector<8x128xf32>
      %1710 = arith.mulf %1709, %1307 : vector<8x128xf32>
      %1711 = arith.addf %arg8, %1710 : vector<8x128xf32>
      %1712 = arith.select %303, %arg8, %1711 : vector<8x128xi1>, vector<8x128xf32>
      %1713 = arith.mulf %1709, %1305 : vector<8x128xf32>
      %1714 = arith.addf %arg9, %1713 : vector<8x128xf32>
      %1715 = arith.select %303, %arg9, %1714 : vector<8x128xi1>, vector<8x128xf32>
      %1716 = arith.mulf %1709, %1303 : vector<8x128xf32>
      %1717 = arith.addf %arg10, %1716 : vector<8x128xf32>
      %1718 = arith.select %303, %arg10, %1717 : vector<8x128xi1>, vector<8x128xf32>
      %1719 = arith.mulf %1709, %1301 : vector<8x128xf32>
      %1720 = arith.addf %arg11, %1719 : vector<8x128xf32>
      %1721 = arith.select %303, %arg11, %1720 : vector<8x128xi1>, vector<8x128xf32>
      %1722 = arith.mulf %1709, %1299 : vector<8x128xf32>
      %1723 = arith.addf %arg12, %1722 : vector<8x128xf32>
      %1724 = arith.select %303, %arg12, %1723 : vector<8x128xi1>, vector<8x128xf32>
      %1725 = arith.mulf %1709, %1297 : vector<8x128xf32>
      %1726 = arith.addf %arg13, %1725 : vector<8x128xf32>
      %1727 = arith.select %303, %arg13, %1726 : vector<8x128xi1>, vector<8x128xf32>
      %1728 = arith.mulf %1709, %1295 : vector<8x128xf32>
      %1729 = arith.addf %arg14, %1728 : vector<8x128xf32>
      %1730 = arith.select %303, %arg14, %1729 : vector<8x128xi1>, vector<8x128xf32>
      %1731 = arith.mulf %1709, %1293 : vector<8x128xf32>
      %1732 = arith.addf %arg15, %1731 : vector<8x128xf32>
      %1733 = arith.select %303, %arg15, %1732 : vector<8x128xi1>, vector<8x128xf32>
      %1734 = arith.mulf %1709, %1373 : vector<8x128xf32>
      %1735 = arith.addf %arg16, %1734 : vector<8x128xf32>
      %1736 = arith.select %303, %arg16, %1735 : vector<8x128xi1>, vector<8x128xf32>
      %1737 = arith.mulf %1709, %1376 : vector<8x128xf32>
      %1738 = arith.addf %arg17, %1737 : vector<8x128xf32>
      %1739 = arith.select %303, %arg17, %1738 : vector<8x128xi1>, vector<8x128xf32>
      %1740 = arith.mulf %1709, %1379 : vector<8x128xf32>
      %1741 = arith.addf %arg18, %1740 : vector<8x128xf32>
      %1742 = arith.select %303, %arg18, %1741 : vector<8x128xi1>, vector<8x128xf32>
      %1743 = arith.mulf %1709, %1382 : vector<8x128xf32>
      %1744 = arith.addf %arg19, %1743 : vector<8x128xf32>
      %1745 = arith.select %303, %arg19, %1744 : vector<8x128xi1>, vector<8x128xf32>
      %1746 = arith.mulf %1709, %1385 : vector<8x128xf32>
      %1747 = arith.addf %arg20, %1746 : vector<8x128xf32>
      %1748 = arith.select %303, %arg20, %1747 : vector<8x128xi1>, vector<8x128xf32>
      %1749 = arith.mulf %1709, %1388 : vector<8x128xf32>
      %1750 = arith.addf %arg21, %1749 : vector<8x128xf32>
      %1751 = arith.select %303, %arg21, %1750 : vector<8x128xi1>, vector<8x128xf32>
      %1752 = arith.mulf %1709, %1391 : vector<8x128xf32>
      %1753 = arith.addf %arg22, %1752 : vector<8x128xf32>
      %1754 = arith.select %303, %arg22, %1753 : vector<8x128xi1>, vector<8x128xf32>
      %1755 = arith.mulf %1709, %1392 : vector<8x128xf32>
      %1756 = arith.addf %arg23, %1755 : vector<8x128xf32>
      %1757 = arith.select %303, %arg23, %1756 : vector<8x128xi1>, vector<8x128xf32>
      %1758 = arith.mulf %1709, %1393 : vector<8x128xf32>
      %1759 = arith.addf %arg24, %1758 : vector<8x128xf32>
      %1760 = arith.select %303, %arg24, %1759 : vector<8x128xi1>, vector<8x128xf32>
      %1761 = arith.mulf %1709, %1394 : vector<8x128xf32>
      %1762 = arith.addf %arg25, %1761 : vector<8x128xf32>
      %1763 = arith.select %303, %arg25, %1762 : vector<8x128xi1>, vector<8x128xf32>
      %1764 = arith.mulf %1709, %1395 : vector<8x128xf32>
      %1765 = arith.addf %arg26, %1764 : vector<8x128xf32>
      %1766 = arith.select %303, %arg26, %1765 : vector<8x128xi1>, vector<8x128xf32>
      %1767 = arith.mulf %1709, %1396 : vector<8x128xf32>
      %1768 = arith.addf %arg27, %1767 : vector<8x128xf32>
      %1769 = arith.select %303, %arg27, %1768 : vector<8x128xi1>, vector<8x128xf32>
      %1770 = arith.mulf %1709, %1397 : vector<8x128xf32>
      %1771 = arith.addf %arg28, %1770 : vector<8x128xf32>
      %1772 = arith.select %303, %arg28, %1771 : vector<8x128xi1>, vector<8x128xf32>
      %1773 = arith.mulf %1709, %1398 : vector<8x128xf32>
      %1774 = arith.addf %arg29, %1773 : vector<8x128xf32>
      %1775 = arith.select %303, %arg29, %1774 : vector<8x128xi1>, vector<8x128xf32>
      %1776 = arith.mulf %1709, %1318 : vector<8x128xf32>
      %1777 = arith.addf %arg30, %1776 : vector<8x128xf32>
      %1778 = arith.select %303, %arg30, %1777 : vector<8x128xi1>, vector<8x128xf32>
      %1779 = arith.mulf %1709, %1322 : vector<8x128xf32>
      %1780 = arith.addf %arg31, %1779 : vector<8x128xf32>
      %1781 = arith.select %303, %arg31, %1780 : vector<8x128xi1>, vector<8x128xf32>
      %1782 = arith.mulf %1709, %1326 : vector<8x128xf32>
      %1783 = arith.addf %arg32, %1782 : vector<8x128xf32>
      %1784 = arith.select %303, %arg32, %1783 : vector<8x128xi1>, vector<8x128xf32>
      %1785 = arith.mulf %1709, %1330 : vector<8x128xf32>
      %1786 = arith.addf %arg33, %1785 : vector<8x128xf32>
      %1787 = arith.select %303, %arg33, %1786 : vector<8x128xi1>, vector<8x128xf32>
      %1788 = arith.mulf %1709, %1334 : vector<8x128xf32>
      %1789 = arith.addf %arg34, %1788 : vector<8x128xf32>
      %1790 = arith.select %303, %arg34, %1789 : vector<8x128xi1>, vector<8x128xf32>
      %1791 = arith.mulf %1709, %1338 : vector<8x128xf32>
      %1792 = arith.addf %arg35, %1791 : vector<8x128xf32>
      %1793 = arith.select %303, %arg35, %1792 : vector<8x128xi1>, vector<8x128xf32>
      %1794 = arith.mulf %1709, %1342 : vector<8x128xf32>
      %1795 = arith.addf %arg36, %1794 : vector<8x128xf32>
      %1796 = arith.select %303, %arg36, %1795 : vector<8x128xi1>, vector<8x128xf32>
      %1797 = arith.mulf %1709, %1346 : vector<8x128xf32>
      %1798 = arith.addf %arg37, %1797 : vector<8x128xf32>
      %1799 = arith.select %303, %arg37, %1798 : vector<8x128xi1>, vector<8x128xf32>
      %1800 = arith.mulf %1709, %1350 : vector<8x128xf32>
      %1801 = arith.addf %arg38, %1800 : vector<8x128xf32>
      %1802 = arith.select %303, %arg38, %1801 : vector<8x128xi1>, vector<8x128xf32>
      %1803 = arith.mulf %1709, %1354 : vector<8x128xf32>
      %1804 = arith.addf %arg39, %1803 : vector<8x128xf32>
      %1805 = arith.select %303, %arg39, %1804 : vector<8x128xi1>, vector<8x128xf32>
      %1806 = arith.mulf %1709, %1358 : vector<8x128xf32>
      %1807 = arith.addf %arg40, %1806 : vector<8x128xf32>
      %1808 = arith.select %303, %arg40, %1807 : vector<8x128xi1>, vector<8x128xf32>
      %1809 = arith.mulf %1709, %1362 : vector<8x128xf32>
      %1810 = arith.addf %arg41, %1809 : vector<8x128xf32>
      %1811 = arith.select %303, %arg41, %1810 : vector<8x128xi1>, vector<8x128xf32>
      %1812 = arith.mulf %1709, %1366 : vector<8x128xf32>
      %1813 = arith.addf %arg42, %1812 : vector<8x128xf32>
      %1814 = arith.select %303, %arg42, %1813 : vector<8x128xi1>, vector<8x128xf32>
      %1815 = arith.mulf %1709, %1370 : vector<8x128xf32>
      %1816 = arith.addf %arg43, %1815 : vector<8x128xf32>
      %1817 = arith.select %303, %arg43, %1816 : vector<8x128xi1>, vector<8x128xf32>
      %cst_237 = arith.constant 0.000000e+00 : f32
      %cst_238 = arith.constant 1.000000e+00 : f32
      %1818 = vector.broadcast %cst_237 : f32 to vector<8x128xf32>
      %1819 = vector.broadcast %cst_238 : f32 to vector<8x128xf32>
      %1820 = arith.select %303, %1818, %1819 : vector<8x128xi1>, vector<8x128xf32>
      %1821 = vector.shape_cast %1820 : vector<8x128xf32> to vector<1x8x128xf32>
      %cst_239 = arith.constant dense<0xFF800000> : vector<1xf32>
      %1822 = vector.multi_reduction <maximumf>, %1821, %cst_239 [1, 2] : vector<1x8x128xf32> to vector<1xf32>
      %1823 = vector.shape_cast %1822 : vector<1xf32> to vector<1x1x1xf32>
      %1824 = vector.extract %1823[0, 0, 0] : f32 from vector<1x1x1xf32>
      %cst_240 = arith.constant 0.000000e+00 : f32
      %1825 = arith.cmpf oeq, %1824, %cst_240 : f32
      %1826 = arith.extui %1825 : i1 to i32
      %c1_i32 = arith.constant 1 : i32
      %1827 = arith.addi %arg6, %c1_i32 : i32
      scf.yield %1827, %1826, %1712, %1715, %1718, %1721, %1724, %1727, %1730, %1733, %1736, %1739, %1742, %1745, %1748, %1751, %1754, %1757, %1760, %1763, %1766, %1769, %1772, %1775, %1778, %1781, %1784, %1787, %1790, %1793, %1796, %1799, %1802, %1805, %1808, %1811, %1814, %1817 : i32, i32, vector<8x128xf32>, vector<8x128xf32>, vector<8x128xf32>, vector<8x128xf32>, vector<8x128xf32>, vector<8x128xf32>, vector<8x128xf32>, vector<8x128xf32>, vector<8x128xf32>, vector<8x128xf32>, vector<8x128xf32>, vector<8x128xf32>, vector<8x128xf32>, vector<8x128xf32>, vector<8x128xf32>, vector<8x128xf32>, vector<8x128xf32>, vector<8x128xf32>, vector<8x128xf32>, vector<8x128xf32>, vector<8x128xf32>, vector<8x128xf32>, vector<8x128xf32>, vector<8x128xf32>, vector<8x128xf32>, vector<8x128xf32>, vector<8x128xf32>, vector<8x128xf32>, vector<8x128xf32>, vector<8x128xf32>, vector<8x128xf32>, vector<8x128xf32>, vector<8x128xf32>, vector<8x128xf32>, vector<8x128xf32>, vector<8x128xf32>
    }
    %c0_33 = arith.constant 0 : index
    %c0_34 = arith.constant 0 : index
    %c0_35 = arith.constant 0 : index
    %145 = vector.load %arg5[%c0_33, %c0_34, %c0_35] : memref<8x8x128xf32, #tpu.memory_space<vmem>>, vector<1x8x128xf32>
    %146 = vector.shape_cast %145 : vector<1x8x128xf32> to vector<8x128xf32>
    %147 = vector.shape_cast %144#2 : vector<8x128xf32> to vector<1x8x128xf32>
    tpu.vector_store %arg5[%c0_33, %c0_34, %c0_35], %147 {strides = array<i32>} : memref<8x8x128xf32, #tpu.memory_space<vmem>>, vector<1x8x128xf32>,
    %c1 = arith.constant 1 : index
    %c0_36 = arith.constant 0 : index
    %c0_37 = arith.constant 0 : index
    %148 = vector.load %arg5[%c1, %c0_36, %c0_37] : memref<8x8x128xf32, #tpu.memory_space<vmem>>, vector<1x8x128xf32>
    %149 = vector.shape_cast %148 : vector<1x8x128xf32> to vector<8x128xf32>
    %150 = vector.shape_cast %144#3 : vector<8x128xf32> to vector<1x8x128xf32>
    tpu.vector_store %arg5[%c1, %c0_36, %c0_37], %150 {strides = array<i32>} : memref<8x8x128xf32, #tpu.memory_space<vmem>>, vector<1x8x128xf32>,
    %c2 = arith.constant 2 : index
    %c0_38 = arith.constant 0 : index
    %c0_39 = arith.constant 0 : index
    %151 = vector.load %arg5[%c2, %c0_38, %c0_39] : memref<8x8x128xf32, #tpu.memory_space<vmem>>, vector<1x8x128xf32>
    %152 = vector.shape_cast %151 : vector<1x8x128xf32> to vector<8x128xf32>
    %153 = vector.shape_cast %144#4 : vector<8x128xf32> to vector<1x8x128xf32>
    tpu.vector_store %arg5[%c2, %c0_38, %c0_39], %153 {strides = array<i32>} : memref<8x8x128xf32, #tpu.memory_space<vmem>>, vector<1x8x128xf32>,
    %c3 = arith.constant 3 : index
    %c0_40 = arith.constant 0 : index
    %c0_41 = arith.constant 0 : index
    %154 = vector.load %arg5[%c3, %c0_40, %c0_41] : memref<8x8x128xf32, #tpu.memory_space<vmem>>, vector<1x8x128xf32>
    %155 = vector.shape_cast %154 : vector<1x8x128xf32> to vector<8x128xf32>
    %156 = vector.shape_cast %144#5 : vector<8x128xf32> to vector<1x8x128xf32>
    tpu.vector_store %arg5[%c3, %c0_40, %c0_41], %156 {strides = array<i32>} : memref<8x8x128xf32, #tpu.memory_space<vmem>>, vector<1x8x128xf32>,
    %c4 = arith.constant 4 : index
    %c0_42 = arith.constant 0 : index
    %c0_43 = arith.constant 0 : index
    %157 = vector.load %arg5[%c4, %c0_42, %c0_43] : memref<8x8x128xf32, #tpu.memory_space<vmem>>, vector<1x8x128xf32>
    %158 = vector.shape_cast %157 : vector<1x8x128xf32> to vector<8x128xf32>
    %159 = vector.shape_cast %144#6 : vector<8x128xf32> to vector<1x8x128xf32>
    tpu.vector_store %arg5[%c4, %c0_42, %c0_43], %159 {strides = array<i32>} : memref<8x8x128xf32, #tpu.memory_space<vmem>>, vector<1x8x128xf32>,
    %c5 = arith.constant 5 : index
    %c0_44 = arith.constant 0 : index
    %c0_45 = arith.constant 0 : index
    %160 = vector.load %arg5[%c5, %c0_44, %c0_45] : memref<8x8x128xf32, #tpu.memory_space<vmem>>, vector<1x8x128xf32>
    %161 = vector.shape_cast %160 : vector<1x8x128xf32> to vector<8x128xf32>
    %162 = vector.shape_cast %144#7 : vector<8x128xf32> to vector<1x8x128xf32>
    tpu.vector_store %arg5[%c5, %c0_44, %c0_45], %162 {strides = array<i32>} : memref<8x8x128xf32, #tpu.memory_space<vmem>>, vector<1x8x128xf32>,
    %c6 = arith.constant 6 : index
    %c0_46 = arith.constant 0 : index
    %c0_47 = arith.constant 0 : index
    %163 = vector.load %arg5[%c6, %c0_46, %c0_47] : memref<8x8x128xf32, #tpu.memory_space<vmem>>, vector<1x8x128xf32>
    %164 = vector.shape_cast %163 : vector<1x8x128xf32> to vector<8x128xf32>
    %165 = vector.shape_cast %144#8 : vector<8x128xf32> to vector<1x8x128xf32>
    tpu.vector_store %arg5[%c6, %c0_46, %c0_47], %165 {strides = array<i32>} : memref<8x8x128xf32, #tpu.memory_space<vmem>>, vector<1x8x128xf32>,
    %c7 = arith.constant 7 : index
    %c0_48 = arith.constant 0 : index
    %c0_49 = arith.constant 0 : index
    %166 = vector.load %arg5[%c7, %c0_48, %c0_49] : memref<8x8x128xf32, #tpu.memory_space<vmem>>, vector<1x8x128xf32>
    %167 = vector.shape_cast %166 : vector<1x8x128xf32> to vector<8x128xf32>
    %168 = vector.shape_cast %144#9 : vector<8x128xf32> to vector<1x8x128xf32>
    tpu.vector_store %arg5[%c7, %c0_48, %c0_49], %168 {strides = array<i32>} : memref<8x8x128xf32, #tpu.memory_space<vmem>>, vector<1x8x128xf32>,
    return
  }
  func.func @transform_0(%arg0: i32) -> (i32, i32, i32) {
    %c0_i32 = arith.constant 0 : i32
    %c0_i32_0 = arith.constant 0 : i32
    %c0_i32_1 = arith.constant 0 : i32
    return %arg0, %c0_i32, %c0_i32_0 : i32, i32, i32
  }
  func.func @transform_1(%arg0: i32) -> (i32, i32, i32) {
    %c0_i32 = arith.constant 0 : i32
    %c0_i32_0 = arith.constant 0 : i32
    %c0_i32_1 = arith.constant 0 : i32
    return %arg0, %c0_i32, %c0_i32_0 : i32, i32, i32
  }
  func.func @transform_2(%arg0: i32) -> (i32, i32, i32) {
    %c0_i32 = arith.constant 0 : i32
    %c0_i32_0 = arith.constant 0 : i32
    %c0_i32_1 = arith.constant 0 : i32
    return %arg0, %c0_i32, %c0_i32_0 : i32, i32, i32
  }
  func.func @transform_3(%arg0: i32) -> (i32, i32, i32) {
    %c0_i32 = arith.constant 0 : i32
    %c0_i32_0 = arith.constant 0 : i32
    %c0_i32_1 = arith.constant 0 : i32
    return %arg0, %c0_i32, %c0_i32_0 : i32, i32, i32
  }
  func.func @transform_4(%arg0: i32) -> (i32, i32, i32) {
    %c0_i32 = arith.constant 0 : i32
    %c0_i32_0 = arith.constant 0 : i32
    %c0_i32_1 = arith.constant 0 : i32
    return %arg0, %c0_i32, %c0_i32_0 : i32, i32, i32
  }
}

</mosaic_0001>

<bundles_post_ra>
// kernel: tpu_custom_call.1
= control target key start
LH: loop header
LB: loop body
LE: loop exit
PB: predicated region body
PF: predicated region fallthrough
CT: control target
= control target key end

     0   :  { %9 = vsyncpa [#allocation3], 0  ;;  %s4673_s0 = inlined_call_operand.hbm [shape: f32[8,8,128], index: 0, kind: input, shape index: {}]   ;;  %s4674_s1 = inlined_call_operand.hbm [shape: f32[8,8,128], index: 1, kind: input, shape index: {}]   ;;  %s4675_s2 = inlined_call_operand.hbm [shape: f32[8,8,128], index: 2, kind: input, shape index: {}]   ;;  %s4676_s3 = inlined_call_operand.hbm [shape: f32[8,8,128], index: 3, kind: input, shape index: {}]   ;;  %s4677_s4 = inlined_call_operand.hbm [shape: f32[8,8,128], index: 4, kind: output, shape index: {}]  }
   0x1   :  { %10 = vsyncpa [#allocation6], 0 }
   0x2   :  { %11 = vsyncpa [#allocation9], 0 }
   0x3   :  { %12 = vsyncpa [#allocation4], 0  ;;  %s30_s17 = sshll.u32 %s4674_s1, 4  ;;  %s2551_s18 = smov [#allocation5]   ;;  %s31_s17 = int_to_ptr.hbm [resolvable:$true] %s30_s17 }
   0x4   :  { %s32_s19 = sshll.u32 %s2551_s18, 4  ;;  %s17_s22 = sshll.u32 %s4673_s0, 4  ;;  %s33_s19 = int_to_ptr.vmem [resolvable:$true] %s32_s19  ;;  %s18_s22 = int_to_ptr.hbm [resolvable:$true] %s17_s22 }
   0x5   :  { %s2552_s23 = smov 128   ;;  %s2553_s24 = smov 8  }
   0x6   :  { %38 = dma.hbm_to_vmem [thread:$0]  %s31_s17, 1024, %s33_s19, [#allocation6], %s2552_s23, %s2552_s23, %s2553_s24  }
   0x7   :  { %s2554_s25 = smov [#allocation2]   ;;  %s43_s1 = sshll.u32 %s4675_s2, 4  ;;  %s44_s1 = int_to_ptr.hbm [resolvable:$true] %s43_s1 }
   0x8   :  { %s19_s26 = sshll.u32 %s2554_s25, 4  ;;  %s56_s30 = sshll.u32 %s4676_s3, 4  ;;  %s20_s26 = int_to_ptr.vmem [resolvable:$true] %s19_s26  ;;  %s57_s30 = int_to_ptr.hbm [resolvable:$true] %s56_s30 }
   0x9   :  { %25 = dma.hbm_to_vmem [thread:$0]  %s18_s22, 1024, %s20_s26, [#allocation3], %s2552_s23, %s2552_s23, %s2553_s24  }
   0xa   :  { %s2555_s5 = smov [#allocation7]   ;;  %s2556_s7 = smov [#allocation8]  }
   0xb   :  { %s45_s6 = sshll.u32 %s2555_s5, 4  ;;  %s58_s2 = sshll.u32 %s2556_s7, 4  ;;  %s46_s6 = int_to_ptr.vmem [resolvable:$true] %s45_s6  ;;  %s59_s2 = int_to_ptr.vmem [resolvable:$true] %s58_s2 }
   0xc   :  { %51 = dma.hbm_to_vmem [thread:$0]  %s44_s1, 1024, %s46_s6, [#allocation6], %s2552_s23, %s2552_s23, %s2553_s24  }
   0xd   :  { %64 = dma.hbm_to_vmem [thread:$0]  %s57_s30, 1024, %s59_s2, [#allocation9], %s2552_s23, %s2552_s23, %s2553_s24  }
   0xe   :  { %2395 = dma.done.wait [#allocation3], 1024  }
   0xf   :  { %2396 = vsyncadd [#allocation3], 4294966272 }
  0x10   :  { %2397 = dma.done.wait [#allocation6], 2048  }
  0x11   :  { %2398 = vsyncadd [#allocation6], 4294965248 }
  0x12   :  { %2399 = dma.done.wait [#allocation9], 1024  }
  0x13   :  { %2400 = vsyncadd [#allocation9], 4294966272  ;;  %v81_v0 = vld [vmem:[#allocation2] sm:$0xff]  ;;  %v82_v1 = vld [vmem:[#allocation2 + $0x8] sm:$0xff]  ;;  %s2719_s3 = smov 0  }
  0x14   :  { %v97_v2 = vld [vmem:[#allocation7] sm:$0xff]  ;;  %v98_v3 = vld [vmem:[#allocation7 + $0x8] sm:$0xff]  ;;  %v83_v4 = vld [vmem:[#allocation2 + $0x10] sm:$0xff] }
  0x15   :  { %v89_v5 = vld [vmem:[#allocation5] sm:$0xff]  ;;  %v106_v7 = vld [vmem:[#allocation8 + $0x8] sm:$0xff]  ;;  %v107_v8 = vld [vmem:[#allocation8 + $0x10] sm:$0xff] }
  0x16   :  { %v105_v6 = vld [vmem:[#allocation8] sm:$0xff]  ;;  %v84_v9 = vld [vmem:[#allocation2 + $0x18] sm:$0xff]  ;;  %v86_v11 = vld [vmem:[#allocation2 + $0x28] sm:$0xff]  ;;  %v2608_v17 = vadd.f32 1.0, %v106_v7  ;;  %v2610_v18 = vadd.f32 1.0, %v107_v8  ;;  %v132_v27 = vmul.f32 %v106_v7, %v82_v1  ;;  %v135_v44 = vmul.f32 %v107_v8, %v83_v4 }
  0x17   :  { %v85_v10 = vld [vmem:[#allocation2 + $0x20] sm:$0xff]  ;;  %v90_v12 = vld [vmem:[#allocation5 + $0x8] sm:$0xff]  ;;  %v108_v13 = vld [vmem:[#allocation8 + $0x18] sm:$0xff]  ;;  %v113_v16 = vadd.f32 1.0, %v105_v6  ;;  %v129_v19 = vmul.f32 %v105_v6, %v81_v0  ;;  %v2647_v8 = vmov 1.0  }
  0x18   :  { %v109_v14 = vld [vmem:[#allocation8 + $0x20] sm:$0xff]  ;;  %v110_v15 = vld [vmem:[#allocation8 + $0x28] sm:$0xff]  ;;  %4961 = vst [vmem:[#allocation15_spill] sm:$0xff] %v2608_v17  ;;  %v87_v20 = vld [vmem:[#allocation2 + $0x30] sm:$0xff]  ;;  %v2612_v24 = vadd.f32 1.0, %v108_v13  ;;  %v133_v37 = vsub.f32 %v98_v3, %v132_v27  ;;  %v138_v49 = vmul.f32 %v108_v13, %v84_v9  ;;  %v2649_v9 = vmov 1.0  }
  0x19   :  { %4962 = vst [vmem:[#allocation16_spill] sm:$0xff] %v2610_v18  ;;  %v99_v21 = vld [vmem:[#allocation7 + $0x10] sm:$0xff]  ;;  %v112_v23 = vld [vmem:[#allocation8 + $0x38] sm:$0xff]  ;;  %v2614_v25 = vadd.f32 1.0, %v109_v14  ;;  %v2616_v26 = vadd.f32 1.0, %v110_v15  ;;  %v130_v32 = vsub.f32 %v97_v2, %v129_v19  ;;  %v101_v39 = vld [vmem:[#allocation7 + $0x20] sm:$0xff]  ;;  %v141_v50 = vmul.f32 %v109_v14, %v85_v10 }
  0x1a   :  { %v111_v22 = vld [vmem:[#allocation8 + $0x30] sm:$0xff]  ;;  %4963 = vst [vmem:[#allocation17_spill] sm:$0xff] %v2612_v24  ;;  %v88_v28 = vld [vmem:[#allocation2 + $0x38] sm:$0xff]  ;;  %v2618_v29 = vmax.f32 %v113_v16, 1e-06  ;;  %v102_v40 = vld [vmem:[#allocation7 + $0x28] sm:$0xff]  ;;  %v2631_v48 = vsub.f32 %v133_v37, %v90_v12  ;;  %v144_v51 = vmul.f32 %v110_v15, %v86_v11  ;;  %v136_v56 = vsub.f32 %v99_v21, %v135_v44 }
  0x1b   :  { %4964 = vst [vmem:[#allocation18_spill] sm:$0xff] %v2614_v25  ;;  %v91_v33 = vld [vmem:[#allocation5 + $0x10] sm:$0xff]  ;;  %v100_v38 = vld [vmem:[#allocation7 + $0x18] sm:$0xff]  ;;  %v2625_v41 = vadd.f32 1.0, %v111_v22  ;;  %v2627_v42 = vadd.f32 1.0, %v112_v23  ;;  %v2629_v43 = vsub.f32 %v130_v32, %v89_v5  ;;  %v93_v46 = vld [vmem:[#allocation5 + $0x20] sm:$0xff]  ;;  %v147_v57 = vmul.f32 %v111_v22, %v87_v20 }
  0x1c   :  { %4965 = vst [vmem:[#allocation19_spill] sm:$0xff] %v2616_v26  ;;  %v92_v45 = vld [vmem:[#allocation5 + $0x18] sm:$0xff]  ;;  %v103_v47 = vld [vmem:[#allocation7 + $0x30] sm:$0xff]  ;;  %v94_v52 = vld [vmem:[#allocation5 + $0x28] sm:$0xff]  ;;  %v139_v59 = vsub.f32 %v100_v38, %v138_v49  ;;  %v142_v60 = vsub.f32 %v101_v39, %v141_v50  ;;  %v145_v61 = vsub.f32 %v102_v40, %v144_v51  ;;  %v150_v62 = vmul.f32 %v112_v23, %v88_v28 }
  0x1d   :  { %4966 = vst [vmem:[#allocation20_spill] sm:$0xff] %v2618_v29  ;;  %v104_v53 = vld [vmem:[#allocation7 + $0x38] sm:$0xff]  ;;  %v95_v58 = vld [vmem:[#allocation5 + $0x30] sm:$0xff]  ;;  %v2635_v0 = vsub.f32 %v136_v56, %v91_v33  ;;  %v148_v1 = vsub.f32 %v103_v47, %v147_v57  ;;  %v2651_v10 = vmov 1.0   ;;  %v2653_v11 = vmov 1.0  }
  0x1e   :  { %4967 = vst [vmem:[#allocation21_spill] sm:$0xff] %v2625_v41  ;;  %v96_v63 = vld [vmem:[#allocation5 + $0x38] sm:$0xff]  ;;  %v2637_v2 = vsub.f32 %v139_v59, %v92_v45  ;;  %v2639_v3 = vsub.f32 %v142_v60, %v93_v46  ;;  %v2641_v4 = vsub.f32 %v145_v61, %v94_v52  ;;  %v151_v5 = vsub.f32 %v104_v53, %v150_v62 }
  0x1f   :  { %4968 = vst [vmem:[#allocation22_spill] sm:$0xff] %v2627_v42  ;;  %v2643_v6 = vsub.f32 %v148_v1, %v95_v58  ;;  %v2655_v12 = vmov 1.0   ;;  %v2657_v13 = vmov 1.0   ;;  %v2659_v14 = vmov 1.0  }
  0x20   :  { %4969 = vst [vmem:[#allocation23_spill] sm:$0xff] %v2629_v43  ;;  %v2645_v7 = vsub.f32 %v151_v5, %v96_v63  ;;  %v2661_v15 = vmov 1.0   ;;  %v2663_v16 = vmov 1.0   ;;  %v2665_v19 = vmov 1.0  }
  0x21   :  { %4970 = vst [vmem:[#allocation24_spill] sm:$0xff] %v2631_v48  ;;  %v2667_v20 = vmov 1.0   ;;  %v2669_v21 = vmov 1.0   ;;  %v2671_v22 = vmov 1.0   ;;  %v2673_v23 = vmov 1.0  }
  0x22   :  { %4971 = vst [vmem:[#allocation25_spill] sm:$0xff] %v2635_v0  ;;  %v2675_v27 = vmov 0.3   ;;  %v2677_v28 = vmov 0.3   ;;  %v2703_v51 = vmov 0.0  }
  0x23   :  { %4972 = vst [vmem:[#allocation26_spill] sm:$0xff] %v2637_v2  ;;  %v2679_v32 = vmov 0.3   ;;  %v2681_v33 = vmov 0.3   ;;  %v2705_v52 = vmov 0.0  }
  0x24   :  { %4973 = vst [vmem:[#allocation27_spill] sm:$0xff] %v2639_v3  ;;  %v2683_v37 = vmov 0.3   ;;  %v2685_v38 = vmov 0.3   ;;  %v2707_v53 = vmov 0.0  }
  0x25   :  { %4974 = vst [vmem:[#allocation28_spill] sm:$0xff] %v2641_v4  ;;  %v2687_v39 = vmov 0.3   ;;  %v2689_v40 = vmov 0.3   ;;  %v2709_v56 = vmov 0.0  }
  0x26   :  { %4975 = vst [vmem:[#allocation29_spill] sm:$0xff] %v2643_v6  ;;  %v2691_v44 = vmov 0.3   ;;  %v2693_v45 = vmov 0.3   ;;  %v2711_v57 = vmov 0.0  }
  0x27   :  { %4976 = vst [vmem:[#allocation30_spill] sm:$0xff] %v2645_v7  ;;  %v2695_v46 = vmov 0.3   ;;  %v2697_v47 = vmov 0.3   ;;  %v2713_v58 = vmov 0.0  }
  0x28   :  { %v2699_v49 = vmov 0.3   ;;  %v2701_v50 = vmov 0.3   ;;  %v2715_v59 = vmov 0.0   ;;  %v2717_v60 = vmov 0.0  }
  0x29 LB: > { %v4977_v24 = vld [vmem:[#allocation17_spill] sm:$0xff]  ;;  %v4978_v18 = vld [vmem:[#allocation16_spill] sm:$0xff]  ;;  %v4979_v17 = vld [vmem:[#allocation15_spill] sm:$0xff]  ;;  %4981 = vst [vmem:[#allocation31_spill] sm:$0xff] %v2405_v8  ;;  %v316_v61 = vmax.f32 %v2513_v50, 1e-12  ;;  %v2417_v11 = vphi %v2653_v11, %v1474_v11   ;;  %v2413_v10 = vphi %v2651_v10, %v1477_v10   ;;  %v2409_v9 = vphi %v2649_v9, %v1480_v9   ;;  %v2405_v8 = vphi %v2647_v8, %v1483_v8   ;;  %s2549_s3 = sphi %s2719_s3, %s5480_s3   ;;  %v2545_v60 = vphi %v2717_v60, %v5479_v60   ;;  %v2541_v59 = vphi %v2715_v59, %v5478_v59   ;;  %v2537_v58 = vphi %v2713_v58, %v5477_v58   ;;  %v2533_v57 = vphi %v2711_v57, %v5476_v57   ;;  %v2529_v56 = vphi %v2709_v56, %v5475_v56   ;;  %v2525_v53 = vphi %v2707_v53, %v5474_v53   ;;  %v2521_v52 = vphi %v2705_v52, %v5473_v52   ;;  %v2517_v51 = vphi %v2703_v51, %v5472_v51   ;;  %v2513_v50 = vphi %v2701_v50, %v5471_v50   ;;  %v2509_v49 = vphi %v2699_v49, %v5468_v49   ;;  %v2505_v47 = vphi %v2697_v47, %v5467_v47   ;;  %v2501_v46 = vphi %v2695_v46, %v5466_v46   ;;  %v2497_v45 = vphi %v2693_v45, %v5465_v45   ;;  %v2493_v44 = vphi %v2691_v44, %v5464_v44   ;;  %v2489_v40 = vphi %v2689_v40, %v5463_v40   ;;  %v2485_v39 = vphi %v2687_v39, %v5462_v39   ;;  %v2481_v38 = vphi %v2685_v38, %v5461_v38   ;;  %v2477_v37 = vphi %v2683_v37, %v1429_v37   ;;  %v2473_v33 = vphi %v2681_v33, %v1432_v33   ;;  %v2469_v32 = vphi %v2679_v32, %v1435_v32   ;;  %v2465_v28 = vphi %v2677_v28, %v5460_v28   ;;  %v2461_v27 = vphi %v2675_v27, %v1441_v27   ;;  %v2457_v23 = vphi %v2673_v23, %v5459_v23   ;;  %v2453_v22 = vphi %v2671_v22, %v1447_v22   ;;  %v2449_v21 = vphi %v2669_v21, %v1450_v21   ;;  %v2445_v20 = vphi %v2667_v20, %v1453_v20   ;;  %v2441_v19 = vphi %v2665_v19, %v1456_v19   ;;  %v2437_v16 = vphi %v2663_v16, %v1459_v16   ;;  %v2433_v15 = vphi %v2661_v15, %v1462_v15   ;;  %v2429_v14 = vphi %v2659_v14, %v1465_v14   ;;  %v2425_v13 = vphi %v2657_v13, %v1468_v13   ;;  %v2421_v12 = vphi %v2655_v12, %v1471_v12  }
  0x2a   : > { %v4980_v29 = vld [vmem:[#allocation20_spill] sm:$0xff]  ;;  %4982 = vst [vmem:[#allocation32_spill] sm:$0xff] %v2409_v9  ;;  %v351_v62 = vmax.f32 %v2485_v39, 1e-12  ;;  %v321_v55 = vmax.f32 %v2509_v49, 1e-12 }
  0x2b   : > { %4983 = vst [vmem:[#allocation33_spill] sm:$0xff] %v2413_v10  ;;  %1969 = vrcp.f32 %v316_v61  ;;  %v356_v36 = vmax.f32 %v2481_v38, 1e-12  ;;  %v5042_v25 = vld [vmem:[#allocation18_spill] sm:$0xff]  ;;  %v5044_v43 = vld [vmem:[#allocation23_spill] sm:$0xff]  ;;  %v5046_v48 = vld [vmem:[#allocation24_spill] sm:$0xff] }
  0x2c   : > { %4984 = vst [vmem:[#allocation34_spill] sm:$0xff] %v2417_v11  ;;  %1971 = vrcp.f32 %v351_v62  ;;  %s1496_s8 = sadd.s32 1, %s2549_s3  }
  0x2d   : > { %4985 = vst [vmem:[#allocation35_spill] sm:$0xff] %v2421_v12  ;;  %1973 = vrcp.f32 %v321_v55  ;;  %p192_p1 = scmp.lt.s32.totalorder %s1496_s8, 30  ;;  %s5480_s3 = smov %s1496_s8 }
  0x2e   : > { %4986 = vst [vmem:[#allocation36_spill] sm:$0xff] %v2425_v13  ;;  %1975 = vrcp.f32 %v356_v36 }
  0x2f   : > { %4987 = vst [vmem:[#allocation37_spill] sm:$0xff] %v2429_v14 }
  0x30   : > { %4988 = vst [vmem:[#allocation38_spill] sm:$0xff] %v2433_v15 }
  0x31   : > { %4989 = vst [vmem:[#allocation39_spill] sm:$0xff] %v2441_v19  ;;  %v1970_v63 = vpop.eup %1969 }
  0x32   : > { %4990 = vst [vmem:[#allocation40_spill] sm:$0xff] %v2445_v20  ;;  %v318_v1 = vmul.f32 %v1970_v63, %v316_v61  ;;  %v1972_v54 = vpop.eup %1971 }
  0x33   : > { %4991 = vst [vmem:[#allocation41_spill] sm:$0xff] %v2449_v21  ;;  %v353_v35 = vmul.f32 %v1972_v54, %v351_v62  ;;  %v1974_v42 = vpop.eup %1973 }
  0x34   : > { %4992 = vst [vmem:[#allocation42_spill] sm:$0xff] %v2453_v22  ;;  %v319_v5 = vsub.f32 2.0, %v318_v1  ;;  %v1976_v4 = vpop.eup %1975  ;;  %v323_v62 = vmul.f32 %v1974_v42, %v321_v55 }
  0x35   : > { %4993 = vst [vmem:[#allocation43_spill] sm:$0xff] %v2457_v23  ;;  %v354_v31 = vsub.f32 2.0, %v353_v35 }
  0x36   : > { %4994 = vst [vmem:[#allocation44_spill] sm:$0xff] %v2461_v27  ;;  %v2836_v34 = vmul.f32 %v1970_v63, %v319_v5  ;;  %v358_v63 = vmul.f32 %v1976_v4, %v356_v36  ;;  %v324_v5 = vsub.f32 2.0, %v323_v62 }
  0x37   : > { %4995 = vst [vmem:[#allocation45_spill] sm:$0xff] %v2465_v28  ;;  %v2838_v30 = vmul.f32 %v1972_v54, %v354_v31  ;;  %v326_v54 = vmax.f32 %v2505_v47, 1e-12 }
  0x38   : > { %4996 = vst [vmem:[#allocation46_spill] sm:$0xff] %v2469_v32  ;;  %v386_v7 = vmul.f32 %v2457_v23, %v2836_v34  ;;  %v359_v31 = vsub.f32 2.0, %v358_v63  ;;  %v2849_v3 = vmul.f32 %v1974_v42, %v324_v5 }
  0x39   : > { %4997 = vst [vmem:[#allocation47_spill] sm:$0xff] %v2473_v33  ;;  %v388_v61 = vmul.f32 %v2429_v14, %v2838_v30 }
  0x3a   : > { %4998 = vst [vmem:[#allocation48_spill] sm:$0xff] %v2477_v37  ;;  %v387_v1 = vmin.f32 %v386_v7, 10000000.0  ;;  %v2851_v8 = vmul.f32 %v1976_v4, %v359_v31  ;;  %v361_v7 = vmax.f32 %v2477_v37, 1e-12  ;;  %v391_v36 = vmul.f32 %v2453_v22, %v2849_v3 }
  0x3b   : > { %4999 = vst [vmem:[#allocation49_spill] sm:$0xff] %v2481_v38  ;;  %v389_v6 = vmin.f32 %v388_v61, 10000000.0 }
  0x3c   : > { %5000 = vst [vmem:[#allocation50_spill] sm:$0xff] %v2485_v39  ;;  %v393_v55 = vmul.f32 %v2425_v13, %v2851_v8  ;;  %v392_v62 = vmin.f32 %v391_v36, 10000000.0 }
  0x3d   : > { %5001 = vst [vmem:[#allocation51_spill] sm:$0xff] %v2489_v40  ;;  %v2844_v41 = vadd.f32 %v389_v6, %v387_v1 }
  0x3e   : > { %5002 = vst [vmem:[#allocation52_spill] sm:$0xff] %v2493_v44  ;;  %v394_v63 = vmin.f32 %v393_v55, 10000000.0 }
  0x3f   : > { %5003 = vst [vmem:[#allocation53_spill] sm:$0xff] %v2497_v45  ;;  %v421_v35 = vadd.f32 %v2844_v41, %v4980_v29 }
  0x40   : > { %5004 = vst [vmem:[#allocation54_spill] sm:$0xff] %v2501_v46  ;;  %v2864_v31 = vadd.f32 %v394_v63, %v392_v62  ;;  %v366_v62 = vmax.f32 %v2473_v33, 1e-12 }
  0x41   : > { %5005 = vst [vmem:[#allocation55_spill] sm:$0xff] %v2505_v47  ;;  %1977 = vrcp.f32 %v421_v35 }
  0x42   : > { %5006 = vst [vmem:[#allocation56_spill] sm:$0xff] %v2509_v49  ;;  %1979 = vrcp.f32 %v326_v54 }
  0x43   : > { %5007 = vst [vmem:[#allocation57_spill] sm:$0xff] %v2513_v50  ;;  %1981 = vrcp.f32 %v361_v7 }
  0x44   : > { %5008 = vst [vmem:[#allocation58_spill] sm:$0xff] %v2517_v51 }
  0x45   : > { %5009 = vst [vmem:[#allocation59_spill] sm:$0xff] %v2521_v52 }
  0x46   : > { %5010 = vst [vmem:[#allocation60_spill] sm:$0xff] %v2525_v53 }
  0x47   : > { %5011 = vst [vmem:[#allocation61_spill] sm:$0xff] %v2529_v56  ;;  %v1978_v61 = vpop.eup %1977 }
  0x48   : > { %5012 = vst [vmem:[#allocation62_spill] sm:$0xff] %v2533_v57  ;;  %v423_v6 = vmul.f32 %v1978_v61, %v421_v35  ;;  %v1980_v42 = vpop.eup %1979  ;;  %v5024_v35 = vmax.f32 %v4979_v17, 1e-06 }
  0x49   : > { %5013 = vst [vmem:[#allocation63_spill] sm:$0xff] %v2537_v58  ;;  %v1982_v4 = vpop.eup %1981  ;;  %v328_v2 = vmul.f32 %v1980_v42, %v326_v54 }
  0x4a   : > { %5014 = vst [vmem:[#allocation64_spill] sm:$0xff] %v2541_v59  ;;  %v424_v1 = vsub.f32 2.0, %v423_v6  ;;  %v363_v26 = vmul.f32 %v1982_v4, %v361_v7 }
  0x4b   : > { %5015 = vst [vmem:[#allocation65_spill] sm:$0xff] %v2545_v60 }
  0x4c   : > { %5016 = vst [vmem:[#allocation66_spill] sm:$0xff] %v2836_v34  ;;  %v2858_v15 = vmul.f32 %v1978_v61, %v424_v1  ;;  %v329_v61 = vsub.f32 2.0, %v328_v2  ;;  %v364_v55 = vsub.f32 2.0, %v363_v26  ;;  %v331_v1 = vmax.f32 %v2501_v46, 1e-12 }
  0x4d   : > { %5017 = vst [vmem:[#allocation67_spill] sm:$0xff] %v2838_v30 }
  0x4e   : > { %5018 = vst [vmem:[#allocation68_spill] sm:$0xff] %v2844_v41  ;;  %v2862_v5 = vmul.f32 %v2858_v15, %v2844_v41  ;;  %v2872_v0 = vmul.f32 %v1980_v42, %v329_v61 }
  0x4f   : > { %5019 = vst [vmem:[#allocation69_spill] sm:$0xff] %v2849_v3 }
  0x50   : > { %5020 = vst [vmem:[#allocation70_spill] sm:$0xff] %v2851_v8  ;;  %v427_v51 = vmul.f32 %v2862_v5, %v4980_v29  ;;  %v396_v54 = vmul.f32 %v2449_v21, %v2872_v0 }
  0x51   : > { %5021 = vst [vmem:[#allocation71_spill] sm:$0xff] %v2858_v15  ;;  %v2874_v15 = vmul.f32 %v1982_v4, %v364_v55 }
  0x52   : > { %5022 = vst [vmem:[#allocation72_spill] sm:$0xff] %v2862_v5  ;;  %v428_v6 = vadd.f32 %v427_v51, %v5024_v35  ;;  %v397_v7 = vmin.f32 %v396_v54, 10000000.0 }
  0x53   : > { %5023 = vst [vmem:[#allocation73_spill] sm:$0xff] %v2864_v31  ;;  %v398_v51 = vmul.f32 %v2421_v12, %v2874_v15 }
  0x54   : > { %v429_v36 = vadd.f32 %v428_v6, %v2864_v31  ;;  %5025 = vst [vmem:[#allocation74_spill] sm:$0xff] %v2872_v0 }
  0x55   : > { %5026 = vst [vmem:[#allocation75_spill] sm:$0xff] %v2874_v15  ;;  %v399_v35 = vmin.f32 %v398_v51, 10000000.0  ;;  %v5030_v15 = vmax.f32 %v4978_v18, 1e-06 }
  0x56   : > { %1983 = vrcp.f32 %v429_v36 }
  0x57   : > { %1985 = vrcp.f32 %v331_v1  ;;  %v2887_v55 = vadd.f32 %v399_v35, %v397_v7  ;;  %v371_v7 = vmax.f32 %v2469_v32, 1e-12 }
  0x58   : > { %1987 = vrcp.f32 %v366_v62 }
  0x59   : > { %5029 = vst [vmem:[#allocation78_spill] sm:$0xff] %v2887_v55 }
  0x5c   : > { %v1984_v63 = vpop.eup %1983 }
  0x5d   : > { %v431_v2 = vmul.f32 %v1984_v63, %v429_v36  ;;  %v1986_v42 = vpop.eup %1985 }
  0x5e   : > { %v1988_v4 = vpop.eup %1987  ;;  %v333_v52 = vmul.f32 %v1986_v42, %v331_v1 }
  0x5f   : > { %v432_v26 = vsub.f32 2.0, %v431_v2  ;;  %v368_v0 = vmul.f32 %v1988_v4, %v366_v62  ;;  %v336_v2 = vmax.f32 %v2497_v45, 1e-12 }
  0x60   : > { %v334_v51 = vsub.f32 2.0, %v333_v52 }
  0x61   : > { %v2881_v5 = vmul.f32 %v1984_v63, %v432_v26  ;;  %v369_v63 = vsub.f32 2.0, %v368_v0 }
  0x62   : > { %v2894_v26 = vmul.f32 %v1986_v42, %v334_v51 }
  0x63   : > { %5027 = vst [vmem:[#allocation76_spill] sm:$0xff] %v2881_v5  ;;  %v2885_v61 = vmul.f32 %v2881_v5, %v2864_v31  ;;  %v2896_v31 = vmul.f32 %v1988_v4, %v369_v63 }
  0x64   : > { %5031 = vst [vmem:[#allocation79_spill] sm:$0xff] %v2894_v26 }
  0x65   : > { %5028 = vst [vmem:[#allocation77_spill] sm:$0xff] %v2885_v61  ;;  %v436_v41 = vmul.f32 %v2885_v61, %v428_v6  ;;  %v401_v6 = vmul.f32 %v2445_v20, %v2894_v26 }
  0x66   : > { %5032 = vst [vmem:[#allocation80_spill] sm:$0xff] %v2896_v31 }
  0x67   : > { %v437_v36 = vadd.f32 %v436_v41, %v5030_v15  ;;  %v403_v41 = vmul.f32 %v2417_v11, %v2896_v31  ;;  %v402_v52 = vmin.f32 %v401_v6, 10000000.0  ;;  %v5036_v31 = vmax.f32 %v4977_v24, 1e-06 }
  0x69   : > { %v438_v54 = vadd.f32 %v437_v36, %v2887_v55  ;;  %v404_v1 = vmin.f32 %v403_v41, 10000000.0 }
  0x6b   : > { %1989 = vrcp.f32 %v438_v54  ;;  %v2909_v63 = vadd.f32 %v404_v1, %v402_v52  ;;  %v376_v52 = vmax.f32 %v2465_v28, 1e-12 }
  0x6c   : > { %1991 = vrcp.f32 %v336_v2 }
  0x6d   : > { %1993 = vrcp.f32 %v371_v7  ;;  %5035 = vst [vmem:[#allocation83_spill] sm:$0xff] %v2909_v63 }
  0x71   : > { %v1990_v35 = vpop.eup %1989 }
  0x72   : > { %v440_v15 = vmul.f32 %v1990_v35, %v438_v54  ;;  %v1992_v42 = vpop.eup %1991 }
  0x73   : > { %v1994_v4 = vpop.eup %1993  ;;  %v338_v5 = vmul.f32 %v1992_v42, %v336_v2 }
  0x74   : > { %v441_v0 = vsub.f32 2.0, %v440_v15  ;;  %v373_v26 = vmul.f32 %v1994_v4, %v371_v7  ;;  %v341_v15 = vmax.f32 %v2493_v44, 1e-12 }
  0x75   : > { %v339_v41 = vsub.f32 2.0, %v338_v5 }
  0x76   : > { %v2903_v62 = vmul.f32 %v1990_v35, %v441_v0  ;;  %v374_v35 = vsub.f32 2.0, %v373_v26 }
  0x77   : > { %v2916_v0 = vmul.f32 %v1992_v42, %v339_v41 }
  0x78   : > { %5033 = vst [vmem:[#allocation81_spill] sm:$0xff] %v2903_v62  ;;  %v2907_v51 = vmul.f32 %v2903_v62, %v2887_v55  ;;  %v2918_v55 = vmul.f32 %v1994_v4, %v374_v35  ;;  %v198_v35 = vsub.f32 %v2545_v60, %v2541_v59 }
  0x79   : > { %5037 = vst [vmem:[#allocation84_spill] sm:$0xff] %v2916_v0  ;;  %v406_v2 = vmul.f32 %v2441_v19, %v2916_v0 }
  0x7a   : > { %5034 = vst [vmem:[#allocation82_spill] sm:$0xff] %v2907_v51  ;;  %v445_v61 = vmul.f32 %v2907_v51, %v437_v36  ;;  %v212_v51 = vmul.f32 %v2545_v60, %v4980_v29  ;;  %v2954_v60 = vsub.f32 %v2529_v56, %v2525_v53 }
  0x7b   : > { %5038 = vst [vmem:[#allocation85_spill] sm:$0xff] %v2918_v55  ;;  %v407_v7 = vmin.f32 %v406_v2, 10000000.0  ;;  %v200_v2 = vsub.f32 %v2537_v58, %v2533_v57 }
  0x7c   : > { %v446_v54 = vadd.f32 %v445_v61, %v5036_v31  ;;  %v408_v31 = vmul.f32 %v2413_v10, %v2918_v55  ;;  %v242_v55 = vadd.f32 %v2513_v50, %v198_v35  ;;  %v256_v10 = vsub.f32 %v2485_v39, %v198_v35 }
  0x7d   : > { %v5047_v35 = vmax.f32 %v4977_v24, 1e-06 }
  0x7e   : > { %v447_v6 = vadd.f32 %v446_v54, %v2909_v63  ;;  %v409_v1 = vmin.f32 %v408_v31, 10000000.0  ;;  %v2993_v19 = vadd.f32 -0.3, %v242_v55  ;;  %v3004_v24 = vadd.f32 -0.3, %v256_v10 }
  0x7f   : > { %v260_v55 = vsub.f32 %v2477_v37, %v200_v2  ;;  %v3023_v10 = vmul.f32 %v2453_v22, %v2509_v49 }
  0x80   : > { %1995 = vrcp.f32 %v447_v6  ;;  %5048 = vst [vmem:[#allocation88_spill] sm:$0xff] %v2993_v19 }
  0x81   : > { %1997 = vrcp.f32 %v341_v15  ;;  %5052 = vst [vmem:[#allocation92_spill] sm:$0xff] %v3004_v24 }
  0x82   : > { %1999 = vrcp.f32 %v376_v52  ;;  %5058 = vst [vmem:[#allocation98_spill] sm:$0xff] %v3023_v10 }
  0x86   : > { %v1996_v36 = vpop.eup %1995 }
  0x87   : > { %v449_v5 = vmul.f32 %v1996_v36, %v447_v6  ;;  %v1998_v26 = vpop.eup %1997  ;;  %v199_v6 = vsub.f32 %v2541_v59, %v2537_v58 }
  0x88   : > { %v2000_v4 = vpop.eup %1999  ;;  %v343_v0 = vmul.f32 %v1998_v26, %v341_v15  ;;  %v2950_v15 = vsub.f32 %v2453_v22, %v2425_v13 }
  0x89   : > { %v450_v61 = vsub.f32 2.0, %v449_v5  ;;  %v201_v5 = vsub.f32 %v2533_v57, %v2529_v56  ;;  %v378_v29 = vmul.f32 %v2000_v4, %v376_v52  ;;  %v213_v52 = vadd.f32 %v212_v51, %v5044_v43 }
  0x8a   : > { %v344_v62 = vsub.f32 2.0, %v343_v0  ;;  %v244_v56 = vadd.f32 %v2509_v49, %v199_v6  ;;  %v246_v51 = vadd.f32 %v2505_v47, %v200_v2 }
  0x8b   : > { %v2925_v42 = vmul.f32 %v1996_v36, %v450_v61  ;;  %v2939_v36 = vadd.f32 %v409_v1, %v407_v7  ;;  %v2946_v61 = vsub.f32 %v2457_v23, %v2429_v14  ;;  %v2958_v7 = vsub.f32 %v2449_v21, %v2421_v12 }
  0x8c   : > { %v379_v0 = vsub.f32 2.0, %v378_v29  ;;  %v2996_v28 = vmul.f32 %v1998_v26, %v344_v62  ;;  %v3019_v26 = vmul.f32 %v2429_v14, %v2485_v39  ;;  %v262_v2 = vsub.f32 %v2473_v33, %v201_v5 }
  0x8d   : > { %5039 = vst [vmem:[#allocation86_spill] sm:$0xff] %v2925_v42  ;;  %v2929_v41 = vmul.f32 %v2925_v42, %v2909_v63  ;;  %v2969_v42 = vsub.f32 %v2445_v20, %v2417_v11  ;;  %v3000_v29 = vadd.f32 %v213_v52, %v2946_v61  ;;  %v3036_v52 = vmul.f32 %v2457_v23, %v2993_v19 }
  0x8e   : > { %5049 = vst [vmem:[#allocation89_spill] sm:$0xff] %v2996_v28  ;;  %v3015_v62 = vmul.f32 %v2000_v4, %v379_v0  ;;  %v411_v4 = vmul.f32 %v2437_v16, %v2996_v28  ;;  %v3044_v0 = vmul.f32 %v2429_v14, %v3004_v24 }
  0x8f   : > { %5040 = vst [vmem:[#allocation87_spill] sm:$0xff] %v2929_v41  ;;  %v454_v31 = vmul.f32 %v2929_v41, %v446_v54  ;;  %v5041_v54 = vmax.f32 %v4979_v17, 1e-06  ;;  %v5043_v41 = vmax.f32 %v5042_v25, 1e-06  ;;  %v258_v17 = vsub.f32 %v2481_v38, %v199_v6 }
  0x90   : > { %v2990_v6 = vmul.f32 %v2533_v57, %v5047_v35  ;;  %v346_v25 = vmax.f32 %v2489_v40, 1e-12  ;;  %5050 = vst [vmem:[#allocation90_spill] sm:$0xff] %v3000_v29  ;;  %v3013_v57 = vmul.f32 %v2457_v23, %v2513_v50  ;;  %v510_v14 = vsub.f32 %v3044_v0, %v3019_v26 }
  0x91   : > { %v215_v1 = vmul.f32 %v2541_v59, %v5041_v54  ;;  %v2965_v63 = vadd.f32 %v454_v31, %v5043_v41  ;;  %v217_v41 = vsub.f32 %v2950_v15, %v2946_v61  ;;  %v5045_v31 = vmax.f32 %v4978_v18, 1e-06  ;;  %5056 = vst [vmem:[#allocation96_spill] sm:$0xff] %v3015_v62 }
  0x92   : > { %v248_v18 = vadd.f32 %v2501_v46, %v201_v5  ;;  %v3006_v35 = vadd.f32 -0.3, %v258_v17  ;;  %5055 = vst [vmem:[#allocation95_spill] sm:$0xff] %v3013_v57  ;;  %v3027_v17 = vmul.f32 %v2425_v13, %v2481_v38  ;;  %v3050_v5 = vadd.f32 -0.3, %v260_v55 }
  0x93   : > { %v456_v54 = vadd.f32 %v2965_v63, %v2939_v36  ;;  %v2983_v59 = vmul.f32 %v2537_v58, %v5045_v31  ;;  %v216_v43 = vadd.f32 %v215_v1, %v5046_v48  ;;  %v381_v31 = vmax.f32 %v2461_v27, 1e-12  ;;  %5057 = vst [vmem:[#allocation97_spill] sm:$0xff] %v3019_v26 }
  0x94   : > { %v3002_v1 = vadd.f32 -0.3, %v244_v56  ;;  %5053 = vst [vmem:[#allocation93_spill] sm:$0xff] %v3006_v35  ;;  %v3008_v48 = vadd.f32 -0.3, %v246_v51  ;;  %v3054_v58 = vmul.f32 %v2449_v21, %v2505_v47  ;;  %v413_v38 = vmul.f32 %v2409_v9, %v3015_v62 }
  0x95   : > { %2001 = vrcp.f32 %v456_v54  ;;  %5059 = vst [vmem:[#allocation99_spill] sm:$0xff] %v3027_v17  ;;  %v3029_v56 = vadd.f32 -0.3, %v248_v18  ;;  %v3048_v18 = vmul.f32 %v2425_v13, %v3006_v35  ;;  %v489_v49 = vsub.f32 %v3036_v52, %v3013_v57 }
  0x96   : > { %5051 = vst [vmem:[#allocation91_spill] sm:$0xff] %v3002_v1  ;;  %2003 = vrcp.f32 %v346_v25  ;;  %v3040_v51 = vmul.f32 %v2453_v22, %v3002_v1  ;;  %v3066_v13 = vadd.f32 -0.3, %v262_v2  ;;  %v3070_v47 = vmul.f32 %v2421_v12, %v2477_v37 }
  0x97   : > { %5054 = vst [vmem:[#allocation94_spill] sm:$0xff] %v3008_v48  ;;  %2005 = vrcp.f32 %v381_v31  ;;  %v513_v55 = vsub.f32 %v3048_v18, %v3027_v17  ;;  %v412_v22 = vmin.f32 %v411_v4, 10000000.0  ;;  %v414_v2 = vmin.f32 %v413_v38, 10000000.0 }
  0x98   : > { %5060 = vst [vmem:[#allocation100_spill] sm:$0xff] %v3029_v56  ;;  %v492_v50 = vsub.f32 %v3040_v51, %v3023_v10  ;;  %v3086_v4 = vadd.f32 %v217_v41, %v216_v43  ;;  %v3102_v43 = vmul.f32 %v2445_v20, %v2501_v46  ;;  %v3106_v41 = vmul.f32 %v2417_v11, %v2473_v33  ;;  %v5081_v46 = vld [vmem:[#allocation25_spill] sm:$0xff] }
  0x99   : > { %5061 = vst [vmem:[#allocation101_spill] sm:$0xff] %v3036_v52  ;;  %v490_v52 = vmul.f32 %v489_v49, %v2836_v34  ;;  %v514_v37 = vmul.f32 %v513_v55, %v2851_v8  ;;  %v250_v49 = vadd.f32 %v2497_v45, %v2954_v60  ;;  %v221_v8 = vsub.f32 %v2958_v7, %v2950_v15  ;;  %v5082_v34 = vld [vmem:[#allocation19_spill] sm:$0xff] }
  0x9a   : > { %5062 = vst [vmem:[#allocation102_spill] sm:$0xff] %v3040_v51  ;;  %v493_v23 = vmul.f32 %v492_v50, %v2849_v3  ;;  %v3076_v51 = vmul.f32 %v2449_v21, %v3008_v48 }
  0x9b   : > { %v2002_v61 = vpop.eup %2001  ;;  %5063 = vst [vmem:[#allocation103_spill] sm:$0xff] %v3044_v0  ;;  %v511_v0 = vmul.f32 %v510_v14, %v2838_v30  ;;  %v264_v14 = vsub.f32 %v2469_v32, %v2954_v60  ;;  %v5079_v30 = vld [vmem:[#allocation75_spill] sm:$0xff] }
  0x9c   : > { %5064 = vst [vmem:[#allocation104_spill] sm:$0xff] %v3048_v18  ;;  %v458_v39 = vmul.f32 %v2002_v61, %v456_v54  ;;  %v2004_v24 = vpop.eup %2003  ;;  %v495_v50 = vsub.f32 %v3076_v51, %v3054_v58  ;;  %v531_v55 = vsub.f32 %v493_v23, %v514_v37  ;;  %v3118_v23 = vmul.f32 %v2417_v11, %v3066_v13  ;;  %v5078_v37 = vld [vmem:[#allocation74_spill] sm:$0xff] }
  0x9d   : > { %5065 = vst [vmem:[#allocation105_spill] sm:$0xff] %v3050_v5  ;;  %v2006_v18 = vpop.eup %2005  ;;  %v530_v3 = vsub.f32 %v490_v52, %v511_v0  ;;  %v348_v52 = vmul.f32 %v2004_v24, %v346_v25 }
  0x9e   : > { %5066 = vst [vmem:[#allocation106_spill] sm:$0xff] %v3054_v58  ;;  %v459_v54 = vsub.f32 2.0, %v458_v39  ;;  %v3084_v39 = vmul.f32 %v2421_v12, %v3050_v5  ;;  %v383_v0 = vmul.f32 %v2006_v18, %v381_v31  ;;  %v5083_v12 = vmax.f32 %v5082_v34, 1e-06 }
  0x9f   : > { %5067 = vst [vmem:[#allocation107_spill] sm:$0xff] %v3066_v13  ;;  %v537_v25 = vadd.f32 %v530_v3, %v3000_v29  ;;  %v539_v31 = vsub.f32 %v531_v55, %v530_v3 }
  0xa0   : > { %5068 = vst [vmem:[#allocation108_spill] sm:$0xff] %v3070_v47  ;;  %v3079_v35 = vmul.f32 %v2002_v61, %v459_v54  ;;  %v516_v61 = vsub.f32 %v3084_v39, %v3070_v47  ;;  %v3108_v54 = vadd.f32 %v414_v2, %v412_v22  ;;  %v5080_v22 = vld [vmem:[#allocation59_spill] sm:$0xff]  ;;  %v384_v3 = vsub.f32 2.0, %v383_v0  ;;  %v5088_v0 = vld [vmem:[#allocation45_spill] sm:$0xff] }
  0xa1   : > { %5069 = vst [vmem:[#allocation109_spill] sm:$0xff] %v3076_v51  ;;  %v3114_v51 = vmul.f32 %v2445_v20, %v3029_v56  ;;  %v203_v2 = vsub.f32 %v2525_v53, %v5080_v22  ;;  %v5089_v20 = vld [vmem:[#allocation39_spill] sm:$0xff] }
  0xa2   : > { %5070 = vst [vmem:[#allocation110_spill] sm:$0xff] %v3079_v35  ;;  %v3096_v38 = vmul.f32 %v3079_v35, %v2939_v36  ;;  %v517_v33 = vmul.f32 %v516_v61, %v5079_v30  ;;  %v3135_v61 = vadd.f32 -0.3, %v250_v49  ;;  %v349_v30 = vsub.f32 2.0, %v348_v52 }
  0xa3   : > { %5071 = vst [vmem:[#allocation111_spill] sm:$0xff] %v3084_v39  ;;  %v496_v39 = vmul.f32 %v495_v50, %v5078_v37  ;;  %v225_v50 = vsub.f32 %v2969_v42, %v2958_v7  ;;  %v3137_v37 = vadd.f32 -0.3, %v264_v14  ;;  %v538_v7 = vsub.f32 0.0, %v537_v25 }
  0xa4   : > { %5072 = vst [vmem:[#allocation112_spill] sm:$0xff] %v3086_v4  ;;  %v463_v60 = vmul.f32 %v3096_v38, %v2965_v63  ;;  %v220_v63 = vadd.f32 %v2983_v59, %v5081_v46  ;;  %v498_v46 = vsub.f32 %v3114_v51, %v3102_v43  ;;  %v519_v59 = vsub.f32 %v3118_v23, %v3106_v41 }
  0xa5   : > { %5073 = vst [vmem:[#allocation113_spill] sm:$0xff] %v3096_v38  ;;  %v540_v49 = vadd.f32 %v539_v31, %v3086_v4  ;;  %v252_v14 = vadd.f32 %v2493_v44, %v203_v2  ;;  %v266_v11 = vsub.f32 %v5088_v0, %v203_v2  ;;  %v3167_v25 = vmul.f32 %v5089_v20, %v3135_v61  ;;  %v5097_v31 = vld [vmem:[#allocation80_spill] sm:$0xff] }
  0xa6   : > { %5074 = vst [vmem:[#allocation114_spill] sm:$0xff] %v3102_v43  ;;  %v3131_v21 = vadd.f32 %v463_v60, %v5083_v12  ;;  %v5086_v12 = vld [vmem:[#allocation26_spill] sm:$0xff]  ;;  %v532_v60 = vsub.f32 %v496_v39, %v517_v33  ;;  %v3148_v52 = vadd.f32 %v221_v8, %v220_v63  ;;  %v3162_v33 = vmul.f32 %v2006_v18, %v384_v3  ;;  %v5095_v39 = vld [vmem:[#allocation79_spill] sm:$0xff] }
  0xa7   : > { %5075 = vst [vmem:[#allocation115_spill] sm:$0xff] %v3106_v41  ;;  %v224_v15 = vadd.f32 %v2990_v6, %v5086_v12  ;;  %v3160_v6 = vmul.f32 %v2004_v24, %v349_v30  ;;  %v499_v8 = vmul.f32 %v498_v46, %v5095_v39  ;;  %v520_v2 = vmul.f32 %v519_v59, %v5097_v31  ;;  %v5099_v12 = vld [vmem:[#allocation68_spill] sm:$0xff]  ;;  %v5102_v18 = vld [vmem:[#allocation71_spill] sm:$0xff]  ;;  %v5104_v46 = vld [vmem:[#allocation58_spill] sm:$0xff] }
  0xa8   : > { %5076 = vst [vmem:[#allocation116_spill] sm:$0xff] %v3114_v51  ;;  %v465_v5 = vadd.f32 %v3131_v21, %v3108_v54  ;;  %v3154_v51 = vmul.f32 %v5089_v20, %v2497_v45  ;;  %v5100_v45 = vld [vmem:[#allocation76_spill] sm:$0xff]  ;;  %v541_v24 = vsub.f32 0.0, %v540_v49  ;;  %v542_v30 = vsub.f32 %v532_v60, %v531_v55  ;;  %v5105_v59 = vld [vmem:[#allocation18_spill] sm:$0xff]  ;;  %v5110_v55 = vld [vmem:[#allocation38_spill] sm:$0xff] }
  0xa9   : > { %5077 = vst [vmem:[#allocation117_spill] sm:$0xff] %v3118_v23  ;;  %v5091_v23 = vld [vmem:[#allocation33_spill] sm:$0xff]  ;;  %v3179_v3 = vmul.f32 %v538_v7, %v5102_v18  ;;  %v204_v39 = vsub.f32 %v5080_v22, %v5104_v46  ;;  %v5106_v31 = vmax.f32 %v5105_v59, 1e-06  ;;  %v3190_v48 = vadd.f32 %v225_v50, %v224_v15  ;;  %v5111_v7 = vld [vmem:[#allocation31_spill] sm:$0xff] }
  0xaa   : > { %5084 = vst [vmem:[#allocation118_spill] sm:$0xff] %v3135_v61  ;;  %2007 = vrcp.f32 %v465_v5  ;;  %v3158_v13 = vmul.f32 %v5091_v23, %v2469_v32  ;;  %v3172_v63 = vmul.f32 %v5091_v23, %v3137_v37  ;;  %v3176_v32 = vmul.f32 %v5100_v45, %v5099_v12 }
  0xab   : > { %5085 = vst [vmem:[#allocation119_spill] sm:$0xff] %v3137_v37  ;;  %v3185_v61 = vsub.f32 %v5089_v20, %v5091_v23  ;;  %v5107_v37 = vld [vmem:[#allocation61_spill] sm:$0xff]  ;;  %v3192_v12 = vadd.f32 -0.3, %v252_v14  ;;  %v416_v49 = vmul.f32 %v5110_v55, %v3160_v6  ;;  %v418_v18 = vmul.f32 %v5111_v7, %v3162_v33 }
  0xac   : > { %5087 = vst [vmem:[#allocation120_spill] sm:$0xff] %v3148_v52  ;;  %v227_v56 = vmul.f32 %v5107_v37, %v5106_v31  ;;  %v3198_v19 = vadd.f32 -0.3, %v266_v11  ;;  %v501_v23 = vsub.f32 %v3167_v25, %v3154_v51  ;;  %v522_v59 = vsub.f32 %v3172_v63, %v3158_v13 }
  0xad   : > { %5090 = vst [vmem:[#allocation121_spill] sm:$0xff] %v3154_v51  ;;  %v533_v31 = vsub.f32 %v499_v8, %v520_v2  ;;  %v543_v15 = vadd.f32 %v542_v30, %v3148_v52  ;;  %v560_v14 = vmul.f32 %v541_v24, %v5100_v45  ;;  %v567_v37 = vmul.f32 %v3179_v3, %v3176_v32  ;;  %v5115_v2 = vld [vmem:[#allocation73_spill] sm:$0xff] }
  0xae   : > { %5092 = vst [vmem:[#allocation122_spill] sm:$0xff] %v3158_v13  ;;  %v254_v20 = vadd.f32 %v2489_v40, %v204_v39  ;;  %v268_v11 = vsub.f32 %v2461_v27, %v204_v39  ;;  %v3212_v38 = vmul.f32 %v2437_v16, %v2493_v44  ;;  %v419_v8 = vmin.f32 %v418_v18, 10000000.0  ;;  %v5116_v30 = vld [vmem:[#allocation81_spill] sm:$0xff] }
  0xaf   : > { %5093 = vst [vmem:[#allocation123_spill] sm:$0xff] %v3160_v6  ;;  %v3220_v24 = vmul.f32 %v5116_v30, %v5115_v2  ;;  %v3225_v39 = vmul.f32 %v2437_v16, %v3192_v12  ;;  %v3230_v13 = vmul.f32 %v2409_v9, %v3198_v19  ;;  %v544_v18 = vsub.f32 0.0, %v543_v15  ;;  %v5123_v2 = vld [vmem:[#allocation27_spill] sm:$0xff] }
  0xb0   : > { %5094 = vst [vmem:[#allocation124_spill] sm:$0xff] %v3162_v33  ;;  %v2008_v1 = vpop.eup %2007  ;;  %v3234_v52 = vadd.f32 %v567_v37, %v560_v14  ;;  %v210_v15 = vsub.f32 %v2437_v16, %v2409_v9 }
  0xb1   : > { %5096 = vst [vmem:[#allocation125_spill] sm:$0xff] %v3167_v25  ;;  %v467_v50 = vmul.f32 %v2008_v1, %v465_v5  ;;  %v417_v5 = vmin.f32 %v416_v49, 10000000.0  ;;  %v545_v49 = vsub.f32 %v533_v31, %v532_v60  ;;  %v561_v37 = vmul.f32 %v544_v18, %v5116_v30 }
  0xb2   : > { %5098 = vst [vmem:[#allocation126_spill] sm:$0xff] %v3172_v63  ;;  %v3216_v63 = vmul.f32 %v2409_v9, %v5088_v0  ;;  %v569_v60 = vmul.f32 %v3234_v52, %v3220_v24 }
  0xb3   : > { %5101 = vst [vmem:[#allocation68_spill] sm:$0xff] %v3176_v32  ;;  %v468_v45 = vsub.f32 2.0, %v467_v50  ;;  %v5118_v32 = vld [vmem:[#allocation84_spill] sm:$0xff]  ;;  %v228_v50 = vadd.f32 %v227_v56, %v5123_v2 }
  0xb4   : > { %5103 = vst [vmem:[#allocation127_spill] sm:$0xff] %v3179_v3  ;;  %v502_v25 = vmul.f32 %v501_v23, %v5118_v32  ;;  %v5120_v3 = vld [vmem:[#allocation85_spill] sm:$0xff]  ;;  %v229_v23 = vsub.f32 %v3185_v61, %v2969_v42  ;;  %v3239_v32 = vadd.f32 -0.3, %v254_v20  ;;  %v546_v20 = vadd.f32 %v545_v49, %v3190_v48  ;;  %v5134_v49 = vld [vmem:[#allocation21_spill] sm:$0xff] }
  0xb5   : > { %5108 = vst [vmem:[#allocation128_spill] sm:$0xff] %v3190_v48  ;;  %v523_v44 = vmul.f32 %v522_v59, %v5120_v3  ;;  %v3232_v0 = vmul.f32 %v2008_v1, %v468_v45  ;;  %v3247_v3 = vadd.f32 %v419_v8, %v417_v5  ;;  %v504_v45 = vsub.f32 %v3225_v39, %v3212_v38  ;;  %v5132_v8 = vld [vmem:[#allocation86_spill] sm:$0xff] }
  0xb6   : > { %5109 = vst [vmem:[#allocation129_spill] sm:$0xff] %v3192_v12  ;;  %v3241_v12 = vadd.f32 -0.3, %v268_v11  ;;  %v525_v1 = vsub.f32 %v3230_v13, %v3216_v63  ;;  %v3261_v14 = vadd.f32 %v229_v23, %v228_v50  ;;  %v5128_v11 = vmax.f32 %v5082_v34, 1e-06 }
  0xb7   : > { %5112 = vst [vmem:[#allocation130_spill] sm:$0xff] %v3198_v19  ;;  %v3245_v59 = vmul.f32 %v3232_v0, %v3108_v54  ;;  %v534_v56 = vsub.f32 %v502_v25, %v523_v44  ;;  %v3268_v44 = vmul.f32 %v5110_v55, %v2489_v40  ;;  %v5131_v25 = vld [vmem:[#allocation78_spill] sm:$0xff]  ;;  %v5135_v2 = vmov %v5134_v49 }
  0xb8   : > { %5113 = vst [vmem:[#allocation131_spill] sm:$0xff] %v3212_v38  ;;  %v231_v5 = vmul.f32 %v2525_v53, %v5128_v11  ;;  %v3276_v18 = vmul.f32 %v5132_v8, %v5131_v25  ;;  %v505_v23 = vmul.f32 %v504_v45, %v2996_v28  ;;  %v3283_v11 = vmul.f32 %v5110_v55, %v3239_v32 }
  0xb9   : > { %5114 = vst [vmem:[#allocation132_spill] sm:$0xff] %v3216_v63  ;;  %v472_v42 = vmul.f32 %v3245_v59, %v3131_v21  ;;  %v3272_v21 = vmul.f32 %v5111_v7, %v2461_v27  ;;  %v526_v34 = vmul.f32 %v525_v1, %v3015_v62  ;;  %v3288_v53 = vmul.f32 %v5111_v7, %v3241_v12 }
  0xba   : > { %5117 = vst [vmem:[#allocation73_spill] sm:$0xff] %v3220_v24  ;;  %v5136_v24 = vmax.f32 %v5134_v49, 1e-06  ;;  %v548_v25 = vsub.f32 %v534_v56, %v533_v31  ;;  %v233_v45 = vsub.f32 %v210_v15, %v3185_v61  ;;  %v507_v49 = vsub.f32 %v3283_v11, %v3268_v44 }
  0xbb   : > { %5119 = vst [vmem:[#allocation133_spill] sm:$0xff] %v3225_v39  ;;  %v3291_v39 = vadd.f32 %v569_v60, %v561_v37  ;;  %v528_v1 = vsub.f32 %v3288_v53, %v3272_v21  ;;  %v535_v27 = vsub.f32 %v505_v23, %v526_v34  ;;  %v211_v61 = vsub.f32 %v5110_v55, %v5111_v7  ;;  %v5142_v34 = vld [vmem:[#allocation83_spill] sm:$0xff] }
  0xbc   : > { %5121 = vst [vmem:[#allocation134_spill] sm:$0xff] %v3230_v13  ;;  %v473_v50 = vadd.f32 %v472_v42, %v5136_v24  ;;  %v547_v13 = vsub.f32 0.0, %v546_v20  ;;  %v5139_v24 = vld [vmem:[#allocation28_spill] sm:$0xff]  ;;  %v549_v40 = vadd.f32 %v548_v25, %v3261_v14  ;;  %v272_v20 = vadd.f32 %v3019_v26, %v3013_v57 }
  0xbd   : > { %5122 = vst [vmem:[#allocation135_spill] sm:$0xff] %v3232_v0  ;;  %v232_v42 = vadd.f32 %v231_v5, %v5139_v24  ;;  %v571_v31 = vmul.f32 %v3291_v39, %v3276_v18  ;;  %v5141_v60 = vmax.f32 %v5135_v2, 1e-06  ;;  %v3314_v23 = vmul.f32 %v3079_v35, %v5142_v34 }
  0xbe   : > { %5124 = vst [vmem:[#allocation136_spill] sm:$0xff] %v3239_v32  ;;  %v474_v30 = vadd.f32 %v473_v50, %v3247_v3  ;;  %v562_v62 = vmul.f32 %v547_v13, %v5132_v8  ;;  %v508_v13 = vmul.f32 %v507_v49, %v3160_v6  ;;  %v529_v24 = vmul.f32 %v528_v1, %v3162_v33 }
  0xbf   : > { %5125 = vst [vmem:[#allocation137_spill] sm:$0xff] %v3241_v12  ;;  %v3307_v37 = vadd.f32 %v233_v45, %v232_v42  ;;  %v235_v5 = vmul.f32 %v5080_v22, %v5141_v60  ;;  %v551_v8 = vsub.f32 %v535_v27, %v534_v56  ;;  %v274_v42 = vadd.f32 %v3023_v10, %v272_v20 }
  0xc0   : > { %5126 = vst [vmem:[#allocation138_spill] sm:$0xff] %v3245_v59  ;;  %2009 = vrcp.f32 %v474_v30  ;;  %v237_v26 = vsub.f32 %v211_v61, %v210_v15  ;;  %v536_v22 = vsub.f32 %v508_v13, %v529_v24 }
  0xc1   : > { %5127 = vst [vmem:[#allocation139_spill] sm:$0xff] %v3261_v14  ;;  %v552_v34 = vadd.f32 %v551_v8, %v3307_v37  ;;  %v3340_v8 = vmul.f32 %v3232_v0, %v2939_v36 }
  0xc2   : > { %5129 = vst [vmem:[#allocation140_spill] sm:$0xff] %v3268_v44 }
  0xc3   : > { %5130 = vst [vmem:[#allocation141_spill] sm:$0xff] %v3272_v21 }
  0xc4   : > { %5133 = vst [vmem:[#allocation78_spill] sm:$0xff] %v3276_v18  ;;  %v550_v18 = vsub.f32 0.0, %v549_v40  ;;  %v276_v40 = vadd.f32 %v3027_v17, %v274_v42 }
  0xc5   : > { %5137 = vst [vmem:[#allocation142_spill] sm:$0xff] %v3283_v11  ;;  %v5144_v11 = vld [vmem:[#allocation29_spill] sm:$0xff] }
  0xc6   : > { %5138 = vst [vmem:[#allocation143_spill] sm:$0xff] %v3288_v53  ;;  %v2010_v25 = vpop.eup %2009  ;;  %v3318_v53 = vadd.f32 %v571_v31, %v562_v62  ;;  %v236_v2 = vadd.f32 %v235_v5, %v5144_v11  ;;  %v563_v57 = vmul.f32 %v550_v18, %v3079_v35  ;;  %v5146_v62 = vld [vmem:[#allocation22_spill] sm:$0xff]  ;;  %v553_v18 = vsub.f32 0.0, %v552_v34  ;;  %v5183_v35 = vld [vmem:[#allocation107_spill] sm:$0xff] }
  0xc7   : > { %5140 = vst [vmem:[#allocation144_spill] sm:$0xff] %v3307_v37  ;;  %v476_v45 = vmul.f32 %v2010_v25, %v474_v30  ;;  %v5147_v1 = vmax.f32 %v5146_v62, 1e-06  ;;  %v554_v11 = vsub.f32 %v536_v22, %v535_v27  ;;  %v278_v5 = vadd.f32 %v3054_v58, %v276_v40 }
  0xc8   : > { %5143 = vst [vmem:[#allocation83_spill] sm:$0xff] %v3314_v23  ;;  %v573_v49 = vmul.f32 %v3318_v53, %v3314_v23  ;;  %v3332_v31 = vadd.f32 %v237_v26, %v236_v2 }
  0xc9   : > { %v477_v60 = vsub.f32 2.0, %v476_v45  ;;  %v239_v30 = vmul.f32 %v5104_v46, %v5147_v1  ;;  %5150 = vst [vmem:[#allocation148_spill] sm:$0xff] %v3340_v8  ;;  %v5152_v26 = vmov %v5147_v1  ;;  %v564_v45 = vmul.f32 %v553_v18, %v3232_v0 }
  0xca   : > { %5148 = vst [vmem:[#allocation146_spill] sm:$0xff] %v3332_v31  ;;  %v574_v20 = vadd.f32 %v573_v49, %v563_v57  ;;  %v555_v42 = vadd.f32 %v554_v11, %v3332_v31  ;;  %v280_v36 = vadd.f32 %v3070_v47, %v278_v5  ;;  %v307_v46 = vand.u32 2147483647, %v3307_v37 }
  0xcb   : > { %v3327_v56 = vmul.f32 %v2010_v25, %v477_v60  ;;  %v5151_v25 = vld [vmem:[#allocation30_spill] sm:$0xff] }
  0xcc   : > { %v240_v24 = vadd.f32 %v239_v30, %v5151_v25  ;;  %v575_v60 = vmul.f32 %v574_v20, %v3340_v8  ;;  %v282_v49 = vadd.f32 %v3102_v43, %v280_v36  ;;  %v5171_v8 = vld [vmem:[#allocation119_spill] sm:$0xff] }
  0xcd   : > { %5145 = vst [vmem:[#allocation145_spill] sm:$0xff] %v3327_v56  ;;  %v3336_v15 = vmul.f32 %v3327_v56, %v3247_v3  ;;  %v3355_v57 = vmul.f32 %v3327_v56, %v3108_v54 }
  0xce   : > { %v3351_v27 = vsub.f32 %v240_v24, %v211_v61  ;;  %v576_v34 = vadd.f32 %v575_v60, %v564_v45  ;;  %v284_v5 = vadd.f32 %v3106_v41, %v282_v49  ;;  %v298_v61 = vand.u32 2147483647, %v3000_v29  ;;  %v5156_v45 = vld [vmem:[#allocation120_spill] sm:$0xff]  ;;  %v5158_v49 = vld [vmem:[#allocation122_spill] sm:$0xff] }
  0xcf   : > { %5149 = vst [vmem:[#allocation147_spill] sm:$0xff] %v3336_v15  ;;  %v481_v13 = vmul.f32 %v3336_v15, %v473_v50  ;;  %v556_v50 = vsub.f32 0.0, %v555_v42 }
  0xd0   : > { %5153 = vst [vmem:[#allocation149_spill] sm:$0xff] %v3351_v27  ;;  %v557_v40 = vsub.f32 %v3351_v27, %v536_v22  ;;  %v577_v11 = vmul.f32 %v576_v34, %v3355_v57  ;;  %v286_v42 = vadd.f32 %v3154_v51, %v284_v5 }
  0xd1   : > { %v482_v2 = vadd.f32 %v481_v13, %v5152_v26  ;;  %5154 = vst [vmem:[#allocation150_spill] sm:$0xff] %v3355_v57  ;;  %v565_v18 = vmul.f32 %v556_v50, %v3327_v56  ;;  %v299_v13 = vand.u32 2147483647, %v3086_v4  ;;  %v5169_v56 = vld [vmem:[#allocation100_spill] sm:$0xff]  ;;  %v5189_v4 = vld [vmem:[#allocation40_spill] sm:$0xff] }
  0xd2   : > { %v558_v25 = vsub.f32 0.0, %v557_v40  ;;  %v288_v62 = vadd.f32 %v5158_v49, %v286_v42  ;;  %v303_v40 = vand.u32 2147483647, %v3190_v48 }
  0xd3   : > { %2011 = vrcp.f32 %v482_v2  ;;  %v578_v26 = vadd.f32 %v577_v11, %v565_v18  ;;  %v300_v22 = vmax.f32 %v298_v61, %v299_v13  ;;  %v305_v61 = vand.u32 2147483647, %v3261_v14 }
  0xd4   : > { %v290_v11 = vadd.f32 %v3212_v38, %v288_v62  ;;  %v309_v62 = vand.u32 2147483647, %v3332_v31 }
  0xd9   : > { %v2012_v1 = vpop.eup %2011 }
  0xda   : > { %v484_v30 = vmul.f32 %v2012_v1, %v482_v2  ;;  %v301_v2 = vand.u32 2147483647, %v5156_v45 }
  0xdc   : > { %v485_v54 = vsub.f32 2.0, %v484_v30  ;;  %v302_v30 = vmax.f32 %v300_v22, %v301_v2  ;;  %v5159_v2 = vld [vmem:[#allocation113_spill] sm:$0xff] }
  0xde   : > { %v3364_v24 = vmul.f32 %v2012_v1, %v485_v54  ;;  %v304_v5 = vmax.f32 %v302_v30, %v303_v40  ;;  %v292_v54 = vadd.f32 %v3216_v63, %v290_v11 }
  0xe0   : > { %5155 = vst [vmem:[#allocation151_spill] sm:$0xff] %v3364_v24  ;;  %v3370_v60 = vmul.f32 %v3364_v24, %v3247_v3  ;;  %v566_v36 = vmul.f32 %v558_v25, %v3364_v24  ;;  %v306_v25 = vmax.f32 %v304_v5, %v305_v61 }
  0xe2   : > { %5157 = vst [vmem:[#allocation152_spill] sm:$0xff] %v3370_v60  ;;  %v579_v50 = vmul.f32 %v578_v26, %v3370_v60 }
  0xe4   : > { %v580_v1 = vadd.f32 %v579_v50, %v566_v36  ;;  %v294_v36 = vadd.f32 %v3268_v44, %v292_v54  ;;  %v308_v50 = vmax.f32 %v306_v25, %v307_v46 }
  0xe6   : > { %v581_v18 = vmul.f32 %v580_v1, %v3336_v15  ;;  %v296_v5 = vadd.f32 %v3272_v21, %v294_v36  ;;  %v310_v61 = vmax.f32 %v308_v50, %v309_v62  ;;  %v5166_v15 = vld [vmem:[#allocation91_spill] sm:$0xff] }
  0xe8   : > { %v582_v13 = vadd.f32 %v581_v18, %v578_v26  ;;  %v5160_v18 = vld [vmem:[#allocation87_spill] sm:$0xff] }
  0xea   : > { %v583_v3 = vmul.f32 %v582_v13, %v3245_v59  ;;  %v601_v22 = vsub.f32 %v582_v13, %v580_v1 }
  0xec   : > { %v584_v42 = vadd.f32 %v583_v3, %v576_v34  ;;  %v626_v26 = vadd.f32 %v3239_v32, %v601_v22  ;;  %v654_v11 = vsub.f32 %v3241_v12, %v601_v22  ;;  %v311_v34 = vand.u32 2147483647, %v3351_v27  ;;  %v5161_v3 = vld [vmem:[#allocation129_spill] sm:$0xff] }
  0xee   : > { %v585_v60 = vmul.f32 %v584_v42, %v5159_v2  ;;  %v600_v40 = vsub.f32 %v584_v42, %v582_v13  ;;  %v627_v46 = vmul.f32 %v5110_v55, %v626_v26  ;;  %v655_v25 = vmul.f32 %v5111_v7, %v654_v11 }
  0xef   : > { %v3398_v2 = vmax.f32 %v310_v61, %v311_v34  ;;  %v5168_v34 = vld [vmem:[#allocation77_spill] sm:$0xff] }
  0xf0   : > { %v586_v30 = vadd.f32 %v585_v60, %v574_v20  ;;  %v622_v54 = vadd.f32 %v5161_v3, %v600_v40  ;;  %v650_v20 = vsub.f32 %v3198_v19, %v600_v40  ;;  %v5162_v60 = vld [vmem:[#allocation82_spill] sm:$0xff]  ;;  %v656_v50 = vsub.f32 %v655_v25, %v3272_v21  ;;  %v5194_v21 = vld [vmem:[#allocation93_spill] sm:$0xff] }
  0xf1   : > { %5164 = vst [vmem:[#allocation154_spill] sm:$0xff] %v3398_v2  ;;  %v5174_v25 = vsub.f32 0.0, %v3239_v32  ;;  %v5202_v2 = vld [vmem:[#allocation36_spill] sm:$0xff] }
  0xf2   : > { %v587_v59 = vmul.f32 %v586_v30, %v5160_v18  ;;  %v3396_v18 = vmul.f32 0.071428575, %v296_v5  ;;  %v599_v36 = vsub.f32 %v586_v30, %v584_v42  ;;  %v623_v57 = vmul.f32 %v2437_v16, %v622_v54  ;;  %v5167_v5 = vld [vmem:[#allocation94_spill] sm:$0xff] }
  0xf3   : > { %v651_v11 = vmul.f32 %v2409_v9, %v650_v20  ;;  %v5172_v54 = vsub.f32 0.0, %v5161_v3 }
  0xf4   : > { %v588_v1 = vadd.f32 %v587_v59, %v3318_v53  ;;  %5163 = vst [vmem:[#allocation153_spill] sm:$0xff] %v3396_v18  ;;  %v5165_v53 = vld [vmem:[#allocation88_spill] sm:$0xff]  ;;  %v646_v26 = vsub.f32 %v5171_v8, %v599_v36  ;;  %v624_v59 = vsub.f32 %v623_v57, %v3212_v38 }
  0xf5   : > { %v3417_v0 = vsub.f32 %v5172_v54, %v600_v40  ;;  %v652_v3 = vsub.f32 %v651_v11, %v3216_v63  ;;  %v3433_v54 = vsub.f32 %v600_v40, %v3198_v19  ;;  %v5181_v11 = vld [vmem:[#allocation33_spill] sm:$0xff]  ;;  %v5182_v19 = vld [vmem:[#allocation127_spill] sm:$0xff] }
  0xf6   : > { %v589_v13 = vmul.f32 %v588_v1, %v5162_v60  ;;  %v628_v60 = vsub.f32 %v627_v46, %v3268_v44  ;;  %v3420_v46 = vsub.f32 %v601_v22, %v3241_v12  ;;  %v5175_v12 = vld [vmem:[#allocation72_spill] sm:$0xff]  ;;  %v647_v32 = vmul.f32 %v5181_v11, %v646_v26 }
  0xf7   : > { %5173 = vst [vmem:[#allocation155_spill] sm:$0xff] %v3417_v0  ;;  %v714_v40 = vsub.f32 0.0, %v3417_v0  ;;  %v5196_v44 = vld [vmem:[#allocation84_spill] sm:$0xff]  ;;  %vm713_vm5 = vcmp.lt.f32.partialorder %v3417_v0, -1e-12 }
  0xf8   : > { %v590_v62 = vadd.f32 %v589_v13, %v3291_v39  ;;  %v5170_v13 = vld [vmem:[#allocation118_spill] sm:$0xff]  ;;  %v3425_v39 = vsub.f32 %v5174_v25, %v601_v22  ;;  %v3429_v27 = vmul.f32 %v628_v60, %v3160_v6  ;;  %v648_v48 = vsub.f32 %v647_v32, %v5158_v49 }
  0xf9   : > { %v618_v24 = vadd.f32 %v5170_v13, %v599_v36  ;;  %v5178_v22 = vsub.f32 0.0, %v5170_v13  ;;  %v715_v45 = vmax.f32 %v714_v40, 1e-12  ;;  %v5193_v6 = vld [vmem:[#allocation41_spill] sm:$0xff]  ;;  %vm761_vm15 = vcmp.lt.f32.partialorder %v3433_v54, -1e-12 }
  0xfa   : > { %v591_v42 = vmul.f32 %v590_v62, %v5168_v34  ;;  %v597_v61 = vsub.f32 %v590_v62, %v588_v1  ;;  %v598_v34 = vsub.f32 %v588_v1, %v586_v30  ;;  %v5176_v30 = vsub.f32 0.0, %v5167_v5 }
  0xfb   : > { %v3445_v57 = vsub.f32 %v5178_v22, %v599_v36  ;;  %v3458_v22 = vmul.f32 %v624_v59, %v2996_v28 }
  0xfc   : > { %v592_v20 = vadd.f32 %v591_v42, %v3234_v52  ;;  %v3437_v52 = vmul.f32 %v656_v50, %v3162_v33  ;;  %v3441_v1 = vsub.f32 %v5176_v30, %v597_v61  ;;  %v5180_v42 = vld [vmem:[#allocation39_spill] sm:$0xff]  ;;  %v614_v50 = vadd.f32 %v5169_v56, %v598_v34 }
  0xfd   : > { %5179 = vst [vmem:[#allocation157_spill] sm:$0xff] %v3445_v57  ;;  %v619_v25 = vmul.f32 %v5180_v42, %v618_v24  ;;  %v642_v31 = vsub.f32 %v5183_v35, %v598_v34  ;;  %v5184_v30 = vsub.f32 0.0, %v5169_v56  ;;  %v5187_v24 = vsub.f32 0.0, %v5166_v15 }
  0xfe   : > { %v593_v23 = vmul.f32 %v592_v20, %v5175_v12  ;;  %5177 = vst [vmem:[#allocation156_spill] sm:$0xff] %v3441_v1  ;;  %v596_v60 = vsub.f32 %v592_v20, %v590_v62  ;;  %v5186_v62 = vld [vmem:[#allocation96_spill] sm:$0xff]  ;;  %v610_v14 = vadd.f32 %v5167_v5, %v597_v61  ;;  %v693_v56 = vsub.f32 0.0, %v3441_v1 }
  0xff   : > { %v3455_v37 = vsub.f32 %v5184_v30, %v598_v34  ;;  %v3461_v13 = vmul.f32 %v652_v3, %v5186_v62  ;;  %v707_v30 = vsub.f32 0.0, %v3445_v57  ;;  %v620_v59 = vsub.f32 %v619_v25, %v3154_v51  ;;  %v5197_v51 = vld [vmem:[#allocation92_spill] sm:$0xff] }
 0x100   : > { %v594_v12 = vadd.f32 %v593_v23, %v5182_v19  ;;  %v3465_v26 = vsub.f32 %v5187_v24, %v596_v60  ;;  %v3468_v19 = vsub.f32 %v599_v36, %v5171_v8  ;;  %v615_v29 = vmul.f32 %v5189_v4, %v614_v50  ;;  %v5190_v36 = vld [vmem:[#allocation34_spill] sm:$0xff] }
 0x101   : > { %5185 = vst [vmem:[#allocation39_spill] sm:$0xff] %v3455_v37  ;;  %v643_v8 = vmul.f32 %v5190_v36, %v642_v31  ;;  %v5192_v33 = vsub.f32 0.0, %v5165_v53  ;;  %v3486_v25 = vsub.f32 %v598_v34, %v5183_v35  ;;  %v606_v40 = vadd.f32 %v5166_v15, %v596_v60  ;;  %v5195_v31 = vld [vmem:[#allocation43_spill] sm:$0xff] }
 0x102   : > { %5188 = vst [vmem:[#allocation127_spill] sm:$0xff] %v3465_v26  ;;  %v595_v23 = vsub.f32 %v594_v12, %v592_v20  ;;  %v686_v3 = vsub.f32 0.0, %v3465_v26  ;;  %v700_v12 = vsub.f32 0.0, %v3455_v37  ;;  %v5191_v20 = vld [vmem:[#allocation105_spill] sm:$0xff]  ;;  %v611_v28 = vmul.f32 %v5193_v6, %v610_v14  ;;  %v5200_v35 = vld [vmem:[#allocation35_spill] sm:$0xff] }
 0x103   : > { %v638_v5 = vsub.f32 %v5191_v20, %v597_v61  ;;  %v634_v50 = vsub.f32 %v5194_v21, %v596_v60  ;;  %v694_v63 = vmax.f32 %v693_v56, 1e-12  ;;  %v3493_v38 = vmul.f32 %v620_v59, %v5196_v44  ;;  %v5201_v44 = vld [vmem:[#allocation42_spill] sm:$0xff] }
 0x104   : > { %v602_v24 = vadd.f32 %v5165_v53, %v595_v23  ;;  %v3483_v62 = vsub.f32 %v5192_v33, %v595_v23  ;;  %v687_v32 = vmax.f32 %v686_v3, 1e-12  ;;  %v3496_v53 = vsub.f32 %v595_v23, %v5197_v51 }
 0x105   : > { %v616_v34 = vsub.f32 %v615_v29, %v3102_v43  ;;  %v644_v3 = vsub.f32 %v643_v8, %v3106_v41  ;;  %v3502_v15 = vsub.f32 %v596_v60, %v5194_v21  ;;  %v701_v14 = vmax.f32 %v700_v12, 1e-12  ;;  %v5203_v29 = vld [vmem:[#allocation95_spill] sm:$0xff] }
 0x106   : > { %v603_v49 = vmul.f32 %v5195_v31, %v602_v24  ;;  %5198 = vst [vmem:[#allocation40_spill] sm:$0xff] %v3496_v53  ;;  %v680_v33 = vsub.f32 0.0, %v3483_v62  ;;  %v639_v56 = vmul.f32 %v5200_v35, %v638_v5  ;;  %v3506_v24 = vsub.f32 %v597_v61, %v5191_v20 }
 0x107   : > { %5199 = vst [vmem:[#allocation41_spill] sm:$0xff] %v3502_v15  ;;  %2013 = vrcp.f32 %v687_v32  ;;  %v607_v18 = vmul.f32 %v5201_v44, %v606_v40  ;;  %v612_v7 = vsub.f32 %v611_v28, %v3054_v58  ;;  %v635_v9 = vmul.f32 %v5202_v2, %v634_v50 }
 0x108   : > { %v681_v59 = vmax.f32 %v680_v33, 1e-12  ;;  %2015 = vrcp.f32 %v694_v63  ;;  %v604_v8 = vsub.f32 %v603_v49, %v5203_v29  ;;  %v708_v60 = vmax.f32 %v707_v30, 1e-12  ;;  %v5204_v63 = vld [vmem:[#allocation79_spill] sm:$0xff]  ;;  %v5205_v49 = vld [vmem:[#allocation80_spill] sm:$0xff] }
 0x109   : > { %v728_v12 = vsub.f32 0.0, %v3496_v53  ;;  %v630_v5 = vsub.f32 %v5197_v51, %v595_v23  ;;  %v721_v61 = vsub.f32 0.0, %v3425_v39  ;;  %v734_v32 = vsub.f32 0.0, %v3502_v15  ;;  %v5207_v51 = vld [vmem:[#allocation66_spill] sm:$0xff] }
 0x10a   : > { %2017 = vrcp.f32 %v681_v59  ;;  %v640_v40 = vsub.f32 %v639_v56, %v3070_v47  ;;  %v741_v50 = vsub.f32 0.0, %v3506_v24  ;;  %v3519_v33 = vmul.f32 %v616_v34, %v5204_v63  ;;  %v5206_v59 = vld [vmem:[#allocation85_spill] sm:$0xff] }
 0x10b   : > { %2019 = vrcp.f32 %v701_v14  ;;  %v729_v28 = vmax.f32 %v728_v12, 1e-12  ;;  %v3522_v30 = vmul.f32 %v644_v3, %v5205_v49  ;;  %v3525_v21 = vmul.f32 %v648_v48, %v5206_v59  ;;  %v5208_v12 = vld [vmem:[#allocation37_spill] sm:$0xff] }
 0x10c   : > { %2021 = vrcp.f32 %v715_v45  ;;  %v735_v23 = vmax.f32 %v734_v32, 1e-12  ;;  %v3528_v20 = vmul.f32 %v604_v8, %v5207_v51  ;;  %v608_v56 = vsub.f32 %v607_v18, %v3023_v10  ;;  %v5209_v59 = vld [vmem:[#allocation74_spill] sm:$0xff]  ;;  %v5210_v8 = vld [vmem:[#allocation75_spill] sm:$0xff] }
 0x10d   : > { %v2014_v14 = vpop.eup %2013  ;;  %vm699_vm0 = vcmp.lt.f32.partialorder %v3455_v37, -1e-12  ;;  %2023 = vrcp.f32 %v708_v60  ;;  %v748_v45 = vsub.f32 0.0, %v3486_v25  ;;  %v631_v63 = vmul.f32 %v5208_v12, %v630_v5 }
 0x10e   : > { %v2016_v34 = vpop.eup %2015  ;;  %v636_v3 = vsub.f32 %v635_v9, %v3027_v17  ;;  %vm692_vm1 = vcmp.lt.f32.partialorder %v3441_v1, -1e-12  ;;  %v722_v48 = vmax.f32 %v721_v61, 1e-12  ;;  %v3537_v49 = vmul.f32 %v612_v7, %v5209_v59  ;;  %v5212_v9 = vld [vmem:[#allocation56_spill] sm:$0xff]  ;;  %v5215_v59 = vld [vmem:[#allocation70_spill] sm:$0xff] }
 0x10f   : > { %v3540_v51 = vmul.f32 %v640_v40, %v5210_v8  ;;  %vm706_vm2 = vcmp.lt.f32.partialorder %v3445_v57, -1e-12  ;;  %2025 = vrcp.f32 %v729_v28  ;;  %v742_v18 = vmax.f32 %v741_v50, 1e-12  ;;  %v5211_v50 = vld [vmem:[#allocation57_spill] sm:$0xff]  ;;  %v5213_v17 = vld [vmem:[#allocation69_spill] sm:$0xff] }
 0x110   : > { %v2018_v32 = vpop.eup %2017  ;;  %vm685_vm3 = vcmp.lt.f32.partialorder %v3465_v26, -1e-12  ;;  %v689_v47 = vmul.f32 %v5212_v9, %v2014_v14  ;;  %2027 = vrcp.f32 %v735_v23  ;;  %v3547_v43 = vmul.f32 %v608_v56, %v5213_v17  ;;  %v5214_v8 = vld [vmem:[#allocation97_spill] sm:$0xff]  ;;  %v5217_v9 = vld [vmem:[#allocation54_spill] sm:$0xff]  ;;  %v5228_v57 = vld [vmem:[#allocation45_spill] sm:$0xff] }
 0x111   : > { %v2020_v60 = vpop.eup %2019  ;;  %v683_v41 = vmul.f32 %v5211_v50, %v2018_v32  ;;  %vm679_vm4 = vcmp.lt.f32.partialorder %v3483_v62, -1e-12  ;;  %v749_v7 = vmax.f32 %v748_v45, 1e-12  ;;  %v777_v40 = vsub.f32 0.0, %v3528_v20  ;;  %v5216_v32 = vld [vmem:[#allocation55_spill] sm:$0xff] }
 0x112   : > { %v2022_v61 = vpop.eup %2021  ;;  %v632_v28 = vsub.f32 %v631_v63, %v5214_v8  ;;  %v3553_v58 = vmul.f32 %v636_v3, %v5215_v59  ;;  %v696_v10 = vmul.f32 %v5216_v32, %v2016_v34  ;;  %2029 = vrcp.f32 %v722_v48  ;;  %v5218_v63 = vld [vmem:[#allocation52_spill] sm:$0xff] }
 0x113   : > { %v2024_v5 = vpop.eup %2023  ;;  %2031 = vrcp.f32 %v742_v18  ;;  %v755_v23 = vsub.f32 0.0, %v3468_v19  ;;  %v778_v14 = vmax.f32 %v777_v40, 1e-12  ;;  %v684_v56 = vsel %vm679_vm4, %v683_v41, 1e+10  ;;  %v5219_v41 = vld [vmem:[#allocation53_spill] sm:$0xff] }
 0x114   : > { %v690_v45 = vsel %vm685_vm3, %v689_v47, 1e+10  ;;  %v703_v50 = vmul.f32 %v5217_v9, %v2020_v60  ;;  %v717_v8 = vmul.f32 %v5218_v63, %v2022_v61  ;;  %vm727_vm6 = vcmp.lt.f32.partialorder %v3496_v53, -1e-12  ;;  %v5221_v63 = vld [vmem:[#allocation49_spill] sm:$0xff] }
 0x115   : > { %v2026_v3 = vpop.eup %2025  ;;  %vm733_vm7 = vcmp.lt.f32.partialorder %v3502_v15, -1e-12  ;;  %2033 = vrcp.f32 %v749_v7  ;;  %v783_v34 = vsub.f32 0.0, %v3547_v43  ;;  %v697_v18 = vsel %vm692_vm1, %v696_v10, 1e+10 }
 0x116   : > { %v2028_v48 = vpop.eup %2027  ;;  %v710_v40 = vmul.f32 %v5219_v41, %v2024_v5  ;;  %v762_v47 = vsub.f32 0.0, %v3433_v54  ;;  %2035 = vrcp.f32 %v778_v14  ;;  %v691_v60 = vmin.f32 %v684_v56, %v690_v45  ;;  %v5220_v56 = vld [vmem:[#allocation50_spill] sm:$0xff] }
 0x117   : > { %vm740_vm8 = vcmp.lt.f32.partialorder %v3506_v24, -1e-12  ;;  %v756_v61 = vmax.f32 %v755_v23, 1e-12  ;;  %v784_v32 = vmax.f32 %v783_v34, 1e-12  ;;  %v731_v45 = vmul.f32 %v5220_v56, %v2026_v3 }
 0x118   : > { %v2030_v9 = vpop.eup %2029  ;;  %v704_v7 = vsel %vm699_vm0, %v703_v50, 1e+10  ;;  %v3574_v59 = vsel %vm713_vm5, %v717_v8, 1e+10  ;;  %vm747_vm9 = vcmp.lt.f32.partialorder %v3486_v25, -1e-12  ;;  %v737_v23 = vmul.f32 %v5221_v63, %v2028_v48 }
 0x119   : > { %v769_v10 = vsub.f32 0.0, %v3420_v46  ;;  %v790_v5 = vsub.f32 0.0, %v3537_v49  ;;  %v2032_v14 = vpop.eup %2031  ;;  %2037 = vrcp.f32 %v784_v32  ;;  %v797_v34 = vsub.f32 0.0, %v3519_v33  ;;  %v5222_v41 = vld [vmem:[#allocation67_spill] sm:$0xff]  ;;  %v5224_v32 = vld [vmem:[#allocation48_spill] sm:$0xff] }
 0x11a   : > { %v3583_v50 = vmul.f32 %v632_v28, %v5222_v41  ;;  %v711_v8 = vsel %vm706_vm2, %v710_v40, 1e+10  ;;  %v763_v0 = vmax.f32 %v762_v47, 1e-12  ;;  %v698_v29 = vmin.f32 %v691_v60, %v697_v18  ;;  %v5223_v40 = vld [vmem:[#allocation51_spill] sm:$0xff] }
 0x11b   : > { %v791_v17 = vmax.f32 %v790_v5, 1e-12  ;;  %v2034_v37 = vpop.eup %2033  ;;  %2039 = vrcp.f32 %v756_v61  ;;  %v798_v1 = vmax.f32 %v797_v34, 1e-12  ;;  %v804_v26 = vsub.f32 0.0, %v3493_v38 }
 0x11c   : > { %v2036_v3 = vpop.eup %2035  ;;  %v3589_v48 = vmul.f32 %v5223_v40, %v2030_v9  ;;  %v5225_v63 = vmov %v5224_v32  ;;  %v744_v56 = vmul.f32 %v5224_v32, %v2032_v14  ;;  %vm776_vm10 = vcmp.lt.f32.partialorder %v3528_v20, -1e-12  ;;  %v5226_v14 = vld [vmem:[#allocation47_spill] sm:$0xff]  ;;  %v5227_v40 = vld [vmem:[#allocation46_spill] sm:$0xff] }
 0x11d   : > { %2041 = vrcp.f32 %v791_v17  ;;  %v732_v28 = vsel %vm727_vm6, %v731_v45, 1e+10  ;;  %v738_v47 = vsel %vm733_vm7, %v737_v23, 1e+10  ;;  %v770_v18 = vmax.f32 %v769_v10, 1e-12 }
 0x11e   : > { %2043 = vrcp.f32 %v798_v1  ;;  %vm754_vm11 = vcmp.lt.f32.partialorder %v3468_v19, -1e-12  ;;  %v780_v60 = vmul.f32 %v5195_v31, %v2036_v3  ;;  %vm782_vm12 = vcmp.lt.f32.partialorder %v3547_v43, -1e-12 }
 0x11f   : > { %2045 = vrcp.f32 %v763_v0  ;;  %v805_v61 = vmax.f32 %v804_v26, 1e-12  ;;  %v2038_v9 = vpop.eup %2037  ;;  %v705_v5 = vmin.f32 %v698_v29, %v704_v7  ;;  %v751_v17 = vmul.f32 %v5226_v14, %v2034_v37 }
 0x120   : > { %vm789_vm13 = vcmp.lt.f32.partialorder %v3537_v49, -1e-12  ;;  %v811_v45 = vsub.f32 0.0, %v3458_v22  ;;  %v739_v32 = vmin.f32 %v732_v28, %v738_v47  ;;  %v745_v1 = vsel %vm740_vm8, %v744_v56, 1e+10 }
 0x121   : > { %v786_v10 = vmul.f32 %v5201_v44, %v2038_v9  ;;  %v818_v0 = vsub.f32 0.0, %v3429_v27  ;;  %v2040_v23 = vpop.eup %2039  ;;  %2047 = vrcp.f32 %v805_v61  ;;  %v825_v26 = vsub.f32 0.0, %v3583_v50 }
 0x122   : > { %v812_v3 = vmax.f32 %v811_v45, 1e-12  ;;  %v831_v29 = vsub.f32 0.0, %v3553_v58  ;;  %2049 = vrcp.f32 %v770_v18  ;;  %v781_v7 = vsel %vm776_vm10, %v780_v60, 1e+10 }
 0x123   : > { %v2042_v37 = vpop.eup %2041  ;;  %v787_v28 = vsel %vm782_vm12, %v786_v10, 1e+10  ;;  %vm796_vm14 = vcmp.lt.f32.partialorder %v3519_v33, -1e-12  ;;  %v3614_v47 = vmin.f32 %v705_v5, %v711_v8  ;;  %v752_v61 = vsel %vm747_vm9, %v751_v17, 1e+10 }
 0x124   : > { %v2044_v56 = vpop.eup %2043  ;;  %v793_v9 = vmul.f32 %v5193_v6, %v2042_v37  ;;  %v826_v14 = vmax.f32 %v825_v26, 1e-12  ;;  %v746_v45 = vmin.f32 %v739_v32, %v745_v1  ;;  %2051 = vrcp.f32 %v812_v3 }
 0x125   : > { %v2046_v18 = vpop.eup %2045  ;;  %v819_v60 = vmax.f32 %v818_v0, 1e-12  ;;  %v832_v41 = vmax.f32 %v831_v29, 1e-12  ;;  %v758_v10 = vmul.f32 %v5227_v40, %v2040_v23  ;;  %v788_v34 = vmin.f32 %v781_v7, %v787_v28 }
 0x126   : > { %2053 = vrcp.f32 %v826_v14  ;;  %v838_v8 = vsub.f32 0.0, %v3540_v51  ;;  %v794_v5 = vsel %vm789_vm13, %v793_v9, 1e+10  ;;  %v800_v17 = vmul.f32 %v5189_v4, %v2044_v56 }
 0x127   : > { %2055 = vrcp.f32 %v832_v41  ;;  %v845_v37 = vsub.f32 0.0, %v3522_v30  ;;  %v2048_v26 = vpop.eup %2047  ;;  %v765_v32 = vmul.f32 %v5228_v57, %v2046_v18  ;;  %vm803_vm0 = vcmp.lt.f32.partialorder %v3493_v38, -1e-12 }
 0x128   : > { %v839_v1 = vmax.f32 %v838_v8, 1e-12  ;;  %v852_v0 = vsub.f32 0.0, %v3525_v21  ;;  %v2050_v23 = vpop.eup %2049  ;;  %v753_v3 = vmin.f32 %v746_v45, %v752_v61  ;;  %2057 = vrcp.f32 %v819_v60  ;;  %v5229_v8 = vld [vmem:[#allocation44_spill] sm:$0xff] }
 0x129   : > { %v846_v29 = vmax.f32 %v845_v37, 1e-12  ;;  %v859_v7 = vsub.f32 0.0, %v3461_v13  ;;  %vm720_vm1 = vcmp.lt.f32.partialorder %v3425_v39, -1e-12  ;;  %v795_v28 = vmin.f32 %v788_v34, %v794_v5 }
 0x12a   : > { %v759_v41 = vsel %vm754_vm11, %v758_v10, 1e+10  ;;  %vm768_vm2 = vcmp.lt.f32.partialorder %v3420_v46, -1e-12  ;;  %2059 = vrcp.f32 %v839_v1  ;;  %v853_v56 = vmax.f32 %v852_v0, 1e-12  ;;  %v2052_v9 = vpop.eup %2051 }
 0x12b   : > { %v801_v14 = vsel %vm796_vm14, %v800_v17, 1e+10  ;;  %v807_v61 = vmul.f32 %v5180_v42, %v2048_v26  ;;  %2061 = vrcp.f32 %v846_v29  ;;  %v860_v18 = vmax.f32 %v859_v7, 1e-12 }
 0x12c   : > { %v2054_v45 = vpop.eup %2053  ;;  %v719_v60 = vmin.f32 %v3614_v47, %v3574_v59  ;;  %vm824_vm3 = vcmp.lt.f32.partialorder %v3583_v50, -1e-12  ;;  %2063 = vrcp.f32 %v853_v56  ;;  %v866_v10 = vsub.f32 0.0, %v3437_v52 }
 0x12d   : > { %v2056_v34 = vpop.eup %2055  ;;  %v772_v5 = vmul.f32 %v5229_v8, %v2050_v23  ;;  %v828_v37 = vmul.f32 %v5208_v12, %v2054_v45  ;;  %vm830_vm4 = vcmp.lt.f32.partialorder %v3553_v58, -1e-12  ;;  %2065 = vrcp.f32 %v860_v18 }
 0x12e   : > { %v760_v17 = vmin.f32 %v753_v3, %v759_v41  ;;  %v802_v26 = vmin.f32 %v795_v28, %v801_v14  ;;  %v834_v1 = vmul.f32 %v5202_v2, %v2056_v34  ;;  %v867_v0 = vmax.f32 %v866_v10, 1e-12  ;;  %v2058_v29 = vpop.eup %2057 }
 0x12f   : > { %v766_v59 = vsel %vm761_vm15, %v765_v32, 1e+10  ;;  %v808_v47 = vsel %vm803_vm0, %v807_v61, 1e+10  ;;  %v814_v7 = vmul.f32 %v2437_v16, %v2052_v9  ;;  %v829_v23 = vsel %vm824_vm3, %v828_v37, 1e+10 }
 0x130   : > { %v2060_v56 = vpop.eup %2059  ;;  %vm810_vm5 = vcmp.lt.f32.partialorder %v3458_v22, -1e-12  ;;  %v835_v3 = vsel %vm830_vm4, %v834_v1, 1e+10  ;;  %vm837_vm6 = vcmp.lt.f32.partialorder %v3540_v51, -1e-12  ;;  %2067 = vrcp.f32 %v867_v0 }
 0x131   : > { %v2062_v41 = vpop.eup %2061  ;;  %vm817_vm7 = vcmp.lt.f32.partialorder %v3429_v27, -1e-12  ;;  %v836_v28 = vmin.f32 %v829_v23, %v835_v3  ;;  %v841_v32 = vmul.f32 %v5200_v35, %v2060_v56  ;;  %vm844_vm8 = vcmp.lt.f32.partialorder %v3522_v30, -1e-12  ;;  %v5230_v56 = vld [vmem:[#allocation32_spill] sm:$0xff] }
 0x132   : > { %v2064_v14 = vpop.eup %2063  ;;  %v767_v9 = vmin.f32 %v760_v17, %v766_v59  ;;  %v809_v61 = vmin.f32 %v802_v26, %v808_v47  ;;  %v848_v18 = vmul.f32 %v5190_v36, %v2062_v41  ;;  %vm851_vm9 = vcmp.lt.f32.partialorder %v3525_v21, -1e-12  ;;  %v5231_v41 = vld [vmem:[#allocation154_spill] sm:$0xff] }
 0x133   : > { %v2066_v45 = vpop.eup %2065  ;;  %v815_v10 = vsel %vm810_vm5, %v814_v7, 1e+10  ;;  %v821_v34 = vmul.f32 %v5110_v55, %v2058_v29  ;;  %v842_v37 = vsel %vm837_vm6, %v841_v32, 1e+10  ;;  %v855_v1 = vmul.f32 %v5181_v11, %v2064_v14  ;;  %v5232_v14 = vld [vmem:[#allocation31_spill] sm:$0xff] }
 0x134   : > { %v843_v0 = vmin.f32 %v836_v28, %v842_v37  ;;  %v849_v23 = vsel %vm844_vm8, %v848_v18, 1e+10  ;;  %vm858_vm10 = vcmp.lt.f32.partialorder %v3461_v13, -1e-12  ;;  %v862_v3 = vmul.f32 %v5230_v56, %v2066_v45  ;;  %v5233_v45 = vld [vmem:[#allocation153_spill] sm:$0xff] }
 0x135   : > { %v725_v17 = vsel %vm720_vm1, %v3589_v48, 1e+10  ;;  %v773_v26 = vsel %vm768_vm2, %v772_v5, 1e+10  ;;  %v856_v59 = vsel %vm851_vm9, %v855_v1, 1e+10  ;;  %v816_v7 = vmin.f32 %v809_v61, %v815_v10 }
 0x136   : > { %v2068_v47 = vpop.eup %2067  ;;  %v850_v29 = vmin.f32 %v843_v0, %v849_v23  ;;  %vm865_vm11 = vcmp.lt.f32.partialorder %v3437_v52, -1e-12  ;;  %vm314_vm12 = vcmp.lt.f32.partialorder %v5231_v41, 1e-05  ;;  %v822_v28 = vsel %vm817_vm7, %v821_v34, 1e+10 }
 0x137   : > { %v863_v32 = vsel %vm858_vm10, %v862_v3, 1e+10  ;;  %v869_v18 = vmul.f32 %v5232_v14, %v2068_v47  ;;  %vm313_vm13 = vcmp.lt.f32.partialorder %v5233_v45, 1e-07  ;;  %v726_v48 = vmin.f32 %v719_v60, %v725_v17 }
 0x138   : > { %v774_v37 = vmin.f32 %v767_v9, %v773_v26  ;;  %v857_v8 = vmin.f32 %v850_v29, %v856_v59  ;;  %v823_v1 = vmin.f32 %v816_v7, %v822_v28  ;;  %vm3674_vm14 = vmand %vm313_vm13, %vm314_vm12  ;;  %v5234_v61 = vmov 0  ;;  %v5237_v26 = vld [vmem:[#allocation127_spill] sm:$0xff] }
 0x139   : > { %v870_v5 = vsel %vm865_vm11, %v869_v18, 1e+10  ;;  %v5235_v61 = vsel %vm3674_vm14, 4294967295, %v5234_v61  ;;  %v2557_v41 = vmov 1.0  }
 0x13a   : > { %v864_v55 = vmin.f32 %v857_v8, %v863_v32  ;;  %5236 = vst [vmem:[#allocation35_spill] sm:$0xff] %v5235_v61  ;;  %v775_v10 = vmin.f32 %v726_v48, %v774_v37  ;;  %v1484_v34 = vsel %vm3674_vm14, 0.0, %v2557_v41  ;;  %v5238_v32 = vld [vmem:[#allocation57_spill] sm:$0xff] }
 0x13b   : > { %1485 = vmax.xlane.f32.xlu0 %v1484_v34  ;;  %v5241_v34 = vld [vmem:[#allocation49_spill] sm:$0xff] }
 0x13c   : > { %v871_v0 = vmin.f32 %v864_v55, %v870_v5  ;;  %v5239_v5 = vld [vmem:[#allocation50_spill] sm:$0xff] }
 0x13e   : > { %v872_v23 = vmin.f32 %v823_v1, %v871_v0  ;;  %v5240_v0 = vld [vmem:[#allocation56_spill] sm:$0xff] }
 0x140   : > { %v873_v3 = vmin.f32 %v775_v10, %v872_v23 }
 0x142   : > { %v3680_v47 = vmin.f32 %v873_v3, 1.0 }
 0x144   : > { %v875_v8 = vmul.f32 %v3680_v47, %v3483_v62  ;;  %v877_v9 = vmul.f32 %v3680_v47, %v3528_v20  ;;  %v880_v55 = vmul.f32 %v3680_v47, %v3496_v53  ;;  %v882_v17 = vmul.f32 %v3680_v47, %v3583_v50  ;;  %v5242_v53 = vld [vmem:[#allocation156_spill] sm:$0xff] }
 0x145   : > { %v886_v59 = vmul.f32 %v3680_v47, %v5237_v26  ;;  %v888_v7 = vmul.f32 %v3680_v47, %v3547_v43  ;;  %v891_v29 = vmul.f32 %v3680_v47, %v3502_v15  ;;  %v893_v28 = vmul.f32 %v3680_v47, %v3553_v58 }
 0x146   : > { %v876_v48 = vadd.f32 %v5238_v32, %v875_v8  ;;  %v878_v37 = vadd.f32 %v5195_v31, %v877_v9  ;;  %v881_v1 = vadd.f32 %v5239_v5, %v880_v55  ;;  %v883_v10 = vadd.f32 %v5208_v12, %v882_v17 }
 0x147   : > { %v887_v23 = vadd.f32 %v5240_v0, %v886_v59  ;;  %v889_v41 = vadd.f32 %v5201_v44, %v888_v7  ;;  %v892_v3 = vadd.f32 %v5241_v34, %v891_v29  ;;  %v894_v60 = vadd.f32 %v5202_v2, %v893_v28  ;;  %v5243_v29 = vld [vmem:[#allocation55_spill] sm:$0xff] }
 0x148   : > { %v879_v61 = vmul.f32 %v878_v37, %v876_v48  ;;  %v884_v15 = vmul.f32 %v883_v10, %v881_v1  ;;  %v898_v18 = vmul.f32 %v3680_v47, %v5242_v53  ;;  %v900_v8 = vmul.f32 %v3680_v47, %v3537_v49  ;;  %v5244_v48 = vld [vmem:[#allocation39_spill] sm:$0xff] }
 0x149   : > { %v890_v9 = vmul.f32 %v889_v41, %v887_v23  ;;  %v895_v55 = vmul.f32 %v894_v60, %v892_v3  ;;  %v903_v17 = vmul.f32 %v3680_v47, %v3506_v24  ;;  %v905_v59 = vmul.f32 %v3680_v47, %v3540_v51  ;;  %v5245_v3 = vld [vmem:[#allocation54_spill] sm:$0xff] }
 0x14a   : > { %v885_v7 = vadd.f32 %v884_v15, %v879_v61  ;;  %v899_v32 = vadd.f32 %v5243_v29, %v898_v18  ;;  %v901_v28 = vadd.f32 %v5193_v6, %v900_v8  ;;  %v910_v37 = vmul.f32 %v3680_v47, %v5244_v48 }
 0x14b   : > { %v896_v1 = vadd.f32 %v895_v55, %v890_v9  ;;  %v904_v10 = vadd.f32 %v5225_v63, %v903_v17  ;;  %v906_v23 = vadd.f32 %v5200_v35, %v905_v59  ;;  %v912_v60 = vmul.f32 %v3680_v47, %v3519_v33  ;;  %v5246_v55 = vld [vmem:[#allocation157_spill] sm:$0xff]  ;;  %v5247_v59 = vld [vmem:[#allocation47_spill] sm:$0xff] }
 0x14c   : > { %v902_v41 = vmul.f32 %v901_v28, %v899_v32  ;;  %v911_v34 = vadd.f32 %v5245_v3, %v910_v37  ;;  %v915_v15 = vmul.f32 %v3680_v47, %v3486_v25  ;;  %v917_v61 = vmul.f32 %v3680_v47, %v3522_v30  ;;  %v5248_v3 = vld [vmem:[#allocation53_spill] sm:$0xff] }
 0x14d   : > { %v897_v18 = vadd.f32 %v896_v1, %v885_v7  ;;  %v907_v8 = vmul.f32 %v906_v23, %v904_v10  ;;  %v913_v9 = vadd.f32 %v5189_v4, %v912_v60  ;;  %v922_v17 = vmul.f32 %v3680_v47, %v5246_v55 }
 0x14e   : > { %v916_v63 = vadd.f32 %v5247_v59, %v915_v15  ;;  %v918_v5 = vadd.f32 %v5190_v36, %v917_v61  ;;  %v924_v32 = vmul.f32 %v3680_v47, %v3493_v38  ;;  %v927_v28 = vmul.f32 %v3680_v47, %v3468_v19  ;;  %v5249_v15 = vld [vmem:[#allocation155_spill] sm:$0xff] }
 0x14f   : > { %v908_v37 = vadd.f32 %v907_v8, %v902_v41  ;;  %v914_v0 = vmul.f32 %v913_v9, %v911_v34  ;;  %v923_v7 = vadd.f32 %v5248_v3, %v922_v17  ;;  %v929_v1 = vmul.f32 %v3680_v47, %v3525_v21  ;;  %v5250_v17 = vld [vmem:[#allocation52_spill] sm:$0xff] }
 0x150   : > { %v919_v10 = vmul.f32 %v918_v5, %v916_v63  ;;  %v925_v23 = vadd.f32 %v5180_v42, %v924_v32  ;;  %v928_v60 = vadd.f32 %v5227_v40, %v927_v28  ;;  %v934_v61 = vmul.f32 %v3680_v47, %v5249_v15  ;;  %v5253_v3 = vld [vmem:[#allocation44_spill] sm:$0xff] }
 0x151   : > { %v909_v59 = vadd.f32 %v908_v37, %v897_v18  ;;  %v930_v29 = vadd.f32 %v5181_v11, %v929_v1  ;;  %v936_v41 = vmul.f32 %v3680_v47, %v3458_v22  ;;  %v939_v34 = vmul.f32 %v3680_v47, %v3433_v54 }
 0x152   : > { %v920_v8 = vadd.f32 %v919_v10, %v914_v0  ;;  %v926_v9 = vmul.f32 %v925_v23, %v923_v7  ;;  %v935_v63 = vadd.f32 %v5250_v17, %v934_v61  ;;  %v941_v5 = vmul.f32 %v3680_v47, %v3461_v13  ;;  %v5251_v61 = vld [vmem:[#allocation51_spill] sm:$0xff] }
 0x153   : > { %v931_v32 = vmul.f32 %v930_v29, %v928_v60  ;;  %v937_v28 = vadd.f32 %v2437_v16, %v936_v41  ;;  %v940_v18 = vadd.f32 %v5228_v57, %v939_v34  ;;  %v946_v37 = vmul.f32 %v3680_v47, %v3425_v39  ;;  %v5252_v34 = vld [vmem:[#allocation38_spill] sm:$0xff] }
 0x154   : > { %v921_v1 = vadd.f32 %v920_v8, %v909_v59  ;;  %v942_v40 = vadd.f32 %v5230_v56, %v941_v5  ;;  %v948_v0 = vmul.f32 %v3680_v47, %v3429_v27  ;;  %v951_v7 = vmul.f32 %v3680_v47, %v3420_v46 }
 0x155   : > { %v932_v10 = vadd.f32 %v931_v32, %v926_v9  ;;  %v938_v23 = vmul.f32 %v937_v28, %v935_v63  ;;  %v947_v29 = vadd.f32 %v5251_v61, %v946_v37  ;;  %v953_v60 = vmul.f32 %v3680_v47, %v3437_v52 }
 0x156   : > { %v943_v41 = vmul.f32 %v942_v40, %v940_v18  ;;  %v949_v57 = vadd.f32 %v5252_v34, %v948_v0  ;;  %v952_v59 = vadd.f32 %v5253_v3, %v951_v7  ;;  %v973_v17 = vmul.f32 %v5242_v53, %v3537_v49  ;;  %v5301_v3 = vld [vmem:[#allocation124_spill] sm:$0xff] }
 0x157   : > { %v933_v8 = vadd.f32 %v932_v10, %v921_v1  ;;  %v954_v5 = vadd.f32 %v5232_v14, %v953_v60  ;;  %v5254_v9 = vmax.f32 %v5233_v45, 1e-12  ;;  %v994_v40 = vmul.f32 %v3506_v24, %v3540_v51  ;;  %v5261_v60 = vld [vmem:[#allocation121_spill] sm:$0xff] }
 0x158   : > { %v944_v12 = vadd.f32 %v943_v41, %v938_v23  ;;  %v950_v31 = vmul.f32 %v949_v57, %v947_v29  ;;  %v967_v7 = vmul.f32 %v3483_v62, %v3528_v20  ;;  %v970_v53 = vmul.f32 %v5237_v26, %v3547_v43  ;;  %v5256_v62 = vld [vmem:[#allocation41_spill] sm:$0xff] }
 0x159   : > { %2069 = vrcp.f32 %v5254_v9  ;;  %v955_v63 = vmul.f32 %v954_v5, %v952_v59  ;;  %v976_v49 = vmul.f32 %v5244_v48, %v3519_v33  ;;  %v982_v51 = vmul.f32 %v5249_v15, %v3458_v22  ;;  %v5259_v15 = vld [vmem:[#allocation106_spill] sm:$0xff]  ;;  %v5264_v59 = vld [vmem:[#allocation97_spill] sm:$0xff]  ;;  %v5265_v5 = vld [vmem:[#allocation99_spill] sm:$0xff] }
 0x15a   : > { %v945_v32 = vadd.f32 %v944_v12, %v933_v8  ;;  %v985_v24 = vmul.f32 %v3425_v39, %v3429_v27  ;;  %v5255_v12 = vld [vmem:[#allocation40_spill] sm:$0xff]  ;;  %v991_v20 = vmul.f32 %v5256_v62, %v3553_v58  ;;  %v997_v26 = vmul.f32 %v3486_v25, %v3522_v30  ;;  %v5260_v23 = vld [vmem:[#allocation114_spill] sm:$0xff]  ;;  %v5262_v30 = vld [vmem:[#allocation131_spill] sm:$0xff] }
 0x15b   : > { %v956_v28 = vadd.f32 %v955_v63, %v950_v31  ;;  %v979_v31 = vmul.f32 %v5246_v55, %v3493_v38  ;;  %v988_v10 = vmul.f32 %v5255_v12, %v3583_v50  ;;  %v1000_v33 = vmul.f32 %v3468_v19, %v3525_v21  ;;  %v5257_v38 = vld [vmem:[#allocation95_spill] sm:$0xff]  ;;  %v5258_v55 = vld [vmem:[#allocation98_spill] sm:$0xff]  ;;  %v5263_v21 = vld [vmem:[#allocation140_spill] sm:$0xff] }
 0x15c   : > { %v968_v48 = vadd.f32 %v967_v7, %v5257_v38  ;;  %v971_v22 = vadd.f32 %v970_v53, %v5258_v55  ;;  %v1003_v27 = vmul.f32 %v3433_v54, %v3461_v13  ;;  %v1006_v39 = vmul.f32 %v3420_v46, %v3437_v52  ;;  %v5266_v54 = vld [vmem:[#allocation108_spill] sm:$0xff]  ;;  %v5267_v46 = vld [vmem:[#allocation115_spill] sm:$0xff]  ;;  %v5276_v38 = vld [vmem:[#allocation109_spill] sm:$0xff] }
 0x15d   : > { %v957_v47 = vadd.f32 %v956_v28, %v945_v32  ;;  %v974_v58 = vadd.f32 %v973_v17, %v5259_v15  ;;  %v977_v29 = vadd.f32 %v976_v49, %v5260_v23  ;;  %v980_v25 = vadd.f32 %v979_v31, %v5261_v60  ;;  %v5268_v32 = vld [vmem:[#allocation122_spill] sm:$0xff]  ;;  %v5269_v28 = vld [vmem:[#allocation132_spill] sm:$0xff] }
 0x15e   : > { %v983_v41 = vadd.f32 %v982_v51, %v5262_v30  ;;  %v986_v19 = vadd.f32 %v985_v24, %v5263_v21  ;;  %v989_v8 = vadd.f32 %v988_v10, %v5264_v59  ;;  %v992_v9 = vadd.f32 %v991_v20, %v5265_v5  ;;  %v5274_v20 = vld [vmem:[#allocation101_spill] sm:$0xff]  ;;  %v5277_v55 = vld [vmem:[#allocation116_spill] sm:$0xff] }
 0x15f   : > { %v2070_v18 = vpop.eup %2069  ;;  %v958_v37 = vmul.f32 0.071428575, %v957_v47  ;;  %v995_v63 = vadd.f32 %v994_v40, %v5266_v54  ;;  %v998_v52 = vadd.f32 %v997_v26, %v5267_v46  ;;  %v1001_v17 = vadd.f32 %v1000_v33, %v5268_v32  ;;  %v5275_v26 = vld [vmem:[#allocation102_spill] sm:$0xff]  ;;  %v5287_v54 = vld [vmem:[#allocation89_spill] sm:$0xff]  ;;  %v5288_v46 = vld [vmem:[#allocation123_spill] sm:$0xff] }
 0x160   : > { %v1004_v47 = vadd.f32 %v1003_v27, %v5269_v28  ;;  %v5278_v27 = vld [vmem:[#allocation125_spill] sm:$0xff]  ;;  %v5289_v32 = vld [vmem:[#allocation67_spill] sm:$0xff]  ;;  %v5290_v28 = vld [vmem:[#allocation104_spill] sm:$0xff] }
 0x161   : > { %v961_v1 = vmul.f32 %v2070_v18, %v958_v37  ;;  %v5270_v18 = vld [vmem:[#allocation141_spill] sm:$0xff] }
 0x162   : > { %v1007_v37 = vadd.f32 %v1006_v39, %v5270_v18  ;;  %v5291_v18 = vld [vmem:[#allocation111_spill] sm:$0xff] }
 0x163   : > { %v962_v0 = vmax.f32 %v961_v1, 0.0 }
 0x165   : > { %v963_v57 = vmin.f32 %v962_v0, 1.0 }
 0x167   : > { %v964_v43 = vmul.f32 %v963_v57, %v963_v57 }
 0x169   : > { %v965_v50 = vmul.f32 %v964_v43, %v963_v57 }
 0x16b   : > { %v966_v13 = vmul.f32 %v965_v50, %v5233_v45  ;;  %v5279_v50 = vld [vmem:[#allocation133_spill] sm:$0xff] }
 0x16d   : > { %v3812_v1 = vsub.f32 %v968_v48, %v966_v13  ;;  %v3814_v0 = vsub.f32 %v971_v22, %v966_v13  ;;  %v3816_v7 = vsub.f32 %v974_v58, %v966_v13  ;;  %v3818_v53 = vsub.f32 %v977_v29, %v966_v13  ;;  %v5280_v58 = vld [vmem:[#allocation66_spill] sm:$0xff]  ;;  %v5281_v29 = vld [vmem:[#allocation69_spill] sm:$0xff] }
 0x16e   : > { %v3820_v57 = vsub.f32 %v980_v25, %v966_v13  ;;  %v3822_v45 = vsub.f32 %v983_v41, %v966_v13  ;;  %v3824_v40 = vsub.f32 %v986_v19, %v966_v13  ;;  %v3826_v49 = vsub.f32 %v989_v8, %v966_v13  ;;  %v5282_v25 = vld [vmem:[#allocation142_spill] sm:$0xff]  ;;  %v5283_v41 = vld [vmem:[#allocation103_spill] sm:$0xff] }
 0x16f   : > { %5271 = vst [vmem:[#allocation42_spill] sm:$0xff] %v3812_v1  ;;  %v3828_v31 = vsub.f32 %v992_v9, %v966_v13  ;;  %v3830_v51 = vsub.f32 %v995_v63, %v966_v13  ;;  %v3832_v24 = vsub.f32 %v998_v52, %v966_v13  ;;  %v3834_v12 = vsub.f32 %v1001_v17, %v966_v13  ;;  %v5284_v19 = vld [vmem:[#allocation74_spill] sm:$0xff]  ;;  %v5285_v8 = vld [vmem:[#allocation79_spill] sm:$0xff]  ;;  %v5286_v9 = vld [vmem:[#allocation84_spill] sm:$0xff] }
 0x170   : > { %5272 = vst [vmem:[#allocation36_spill] sm:$0xff] %v3826_v49  ;;  %v3836_v10 = vsub.f32 %v1004_v47, %v966_v13  ;;  %v3838_v62 = vsub.f32 %v1007_v37, %v966_v13  ;;  %v1009_v43 = vsub.f32 %v5274_v20, %v3812_v1  ;;  %v1011_v33 = vsub.f32 %v5275_v26, %v3814_v0  ;;  %v5292_v20 = vld [vmem:[#allocation117_spill] sm:$0xff]  ;;  %v5293_v26 = vld [vmem:[#allocation126_spill] sm:$0xff] }
 0x171   : > { %5273 = vst [vmem:[#allocation154_spill] sm:$0xff] %v3830_v51  ;;  %v1013_v48 = vsub.f32 %v5276_v38, %v3816_v7  ;;  %v1015_v22 = vsub.f32 %v5277_v55, %v3818_v53  ;;  %v1017_v39 = vsub.f32 %v5278_v27, %v3820_v57  ;;  %v1019_v15 = vsub.f32 %v5279_v50, %v3822_v45  ;;  %v5294_v38 = vld [vmem:[#allocation134_spill] sm:$0xff]  ;;  %v5295_v55 = vld [vmem:[#allocation143_spill] sm:$0xff] }
 0x172   : > { %v1010_v23 = vmul.f32 %v1009_v43, %v5280_v58  ;;  %v1012_v60 = vmul.f32 %v1011_v33, %v5281_v29  ;;  %v1021_v30 = vsub.f32 %v5282_v25, %v3824_v40  ;;  %v1023_v21 = vsub.f32 %v5283_v41, %v3826_v49  ;;  %v5296_v27 = vld [vmem:[#allocation70_spill] sm:$0xff]  ;;  %v5297_v50 = vld [vmem:[#allocation75_spill] sm:$0xff] }
 0x173   : > { %v1014_v59 = vmul.f32 %v1013_v48, %v5284_v19  ;;  %v1016_v5 = vmul.f32 %v1015_v22, %v5285_v8  ;;  %v1018_v13 = vmul.f32 %v1017_v39, %v5286_v9  ;;  %v1020_v63 = vmul.f32 %v1019_v15, %v5287_v54  ;;  %v5302_v49 = vld [vmem:[#allocation90_spill] sm:$0xff] }
 0x174   : > { %v1022_v52 = vmul.f32 %v1021_v30, %v5288_v46  ;;  %v1024_v17 = vmul.f32 %v1023_v21, %v5289_v32  ;;  %v1025_v47 = vsub.f32 %v5290_v28, %v3828_v31  ;;  %v1027_v37 = vsub.f32 %v5291_v18, %v3830_v51  ;;  %v5298_v30 = vld [vmem:[#allocation80_spill] sm:$0xff]  ;;  %v5299_v21 = vld [vmem:[#allocation85_spill] sm:$0xff] }
 0x175   : > { %v1029_v43 = vsub.f32 %v5292_v20, %v3832_v24  ;;  %v1031_v33 = vsub.f32 %v5293_v26, %v3834_v12  ;;  %v1033_v48 = vsub.f32 %v5294_v38, %v3836_v10  ;;  %v1035_v22 = vsub.f32 %v5295_v55, %v3838_v62  ;;  %v5300_v18 = vld [vmem:[#allocation96_spill] sm:$0xff] }
 0x176   : > { %v1026_v39 = vmul.f32 %v1025_v47, %v5296_v27  ;;  %v1028_v15 = vmul.f32 %v1027_v37, %v5297_v50  ;;  %v1037_v25 = vsub.f32 %v1010_v23, %v1024_v17 }
 0x177   : > { %v1030_v41 = vmul.f32 %v1029_v43, %v5298_v30  ;;  %v1032_v28 = vmul.f32 %v1031_v33, %v5299_v21  ;;  %v1034_v20 = vmul.f32 %v1033_v48, %v5300_v18  ;;  %v1036_v61 = vmul.f32 %v1035_v22, %v5301_v3  ;;  %v5303_v33 = vld [vmem:[#allocation112_spill] sm:$0xff]  ;;  %v5305_v22 = vld [vmem:[#allocation71_spill] sm:$0xff] }
 0x178   : > { %v1038_v26 = vsub.f32 %v1012_v60, %v1026_v39  ;;  %v1039_v32 = vsub.f32 %v1014_v59, %v1028_v15  ;;  %v1044_v38 = vadd.f32 %v1037_v25, %v5302_v49  ;;  %v5304_v48 = vld [vmem:[#allocation120_spill] sm:$0xff]  ;;  %v5310_v15 = vld [vmem:[#allocation81_spill] sm:$0xff] }
 0x179   : > { %v1040_v58 = vsub.f32 %v1016_v5, %v1030_v41  ;;  %v1041_v29 = vsub.f32 %v1018_v13, %v1032_v28  ;;  %v1042_v55 = vsub.f32 %v1020_v63, %v1034_v20  ;;  %v1043_v19 = vsub.f32 %v1022_v52, %v1036_v61  ;;  %v5306_v5 = vld [vmem:[#allocation128_spill] sm:$0xff]  ;;  %v5311_v41 = vld [vmem:[#allocation73_spill] sm:$0xff] }
 0x17a   : > { %v1045_v47 = vsub.f32 0.0, %v1044_v38  ;;  %v1046_v27 = vsub.f32 %v1038_v26, %v1037_v25  ;;  %v1049_v37 = vsub.f32 %v1039_v32, %v1038_v26  ;;  %v5307_v63 = vld [vmem:[#allocation68_spill] sm:$0xff]  ;;  %v5313_v26 = vld [vmem:[#allocation86_spill] sm:$0xff] }
 0x17b   : > { %v1052_v23 = vsub.f32 %v1040_v58, %v1039_v32  ;;  %v1055_v17 = vsub.f32 %v1041_v29, %v1040_v58  ;;  %v1058_v43 = vsub.f32 %v1042_v55, %v1041_v29  ;;  %v1061_v50 = vsub.f32 %v1043_v19, %v1042_v55  ;;  %v5308_v52 = vld [vmem:[#allocation76_spill] sm:$0xff]  ;;  %v5309_v58 = vld [vmem:[#allocation139_spill] sm:$0xff] }
 0x17c   : > { %v1047_v1 = vadd.f32 %v1046_v27, %v5303_v33  ;;  %v1050_v51 = vadd.f32 %v1049_v37, %v5304_v48  ;;  %v3886_v60 = vmul.f32 %v1045_v47, %v5305_v22  ;;  %v5314_v47 = vld [vmem:[#allocation78_spill] sm:$0xff] }
 0x17d   : > { %v1053_v13 = vadd.f32 %v1052_v23, %v5306_v5  ;;  %v1056_v29 = vadd.f32 %v1055_v17, %v5309_v58  ;;  %v5315_v33 = vld [vmem:[#allocation146_spill] sm:$0xff] }
 0x17e   : > { %v1048_v59 = vsub.f32 0.0, %v1047_v1  ;;  %v1051_v49 = vsub.f32 0.0, %v1050_v51  ;;  %v1074_v61 = vmul.f32 %v3886_v60, %v5307_v63  ;;  %v5312_v1 = vld [vmem:[#allocation144_spill] sm:$0xff]  ;;  %v1062_v48 = vadd.f32 %v1061_v50, %v5315_v33  ;;  %v5316_v22 = vld [vmem:[#allocation110_spill] sm:$0xff]  ;;  %v5318_v63 = vld [vmem:[#allocation149_spill] sm:$0xff] }
 0x17f   : > { %v1054_v32 = vsub.f32 0.0, %v1053_v13  ;;  %v1057_v20 = vsub.f32 0.0, %v1056_v29  ;;  %v1059_v51 = vadd.f32 %v1058_v43, %v5312_v1  ;;  %v5320_v43 = vld [vmem:[#allocation148_spill] sm:$0xff]  ;;  %v5323_v1 = vld [vmem:[#allocation151_spill] sm:$0xff]  ;;  %v5328_v33 = vld [vmem:[#allocation138_spill] sm:$0xff] }
 0x180   : > { %v1067_v39 = vmul.f32 %v1048_v59, %v5308_v52  ;;  %v1068_v25 = vmul.f32 %v1051_v49, %v5310_v15  ;;  %v5317_v49 = vld [vmem:[#allocation83_spill] sm:$0xff]  ;;  %v1063_v13 = vsub.f32 0.0, %v1062_v48  ;;  %v5321_v15 = vld [vmem:[#allocation145_spill] sm:$0xff] }
 0x181   : > { %v1069_v38 = vmul.f32 %v1054_v32, %v5313_v26  ;;  %v1060_v23 = vsub.f32 0.0, %v1059_v51  ;;  %v1070_v17 = vmul.f32 %v1057_v20, %v5316_v22  ;;  %v5319_v52 = vld [vmem:[#allocation135_spill] sm:$0xff]  ;;  %v5324_v26 = vld [vmem:[#allocation152_spill] sm:$0xff] }
 0x182   : > { %v3894_v27 = vadd.f32 %v1074_v61, %v1067_v39  ;;  %v1064_v61 = vsub.f32 %v5318_v63, %v1043_v19  ;;  %v5326_v19 = vld [vmem:[#allocation147_spill] sm:$0xff] }
 0x183   : > { %v1071_v39 = vmul.f32 %v1060_v23, %v5319_v52  ;;  %v5332_v52 = vld [vmem:[#allocation137_spill] sm:$0xff] }
 0x184   : > { %v1076_v28 = vmul.f32 %v3894_v27, %v5311_v41  ;;  %v1065_v32 = vsub.f32 0.0, %v1064_v61 }
 0x186   : > { %v1077_v55 = vadd.f32 %v1076_v28, %v1068_v25  ;;  %v1072_v25 = vmul.f32 %v1063_v13, %v5321_v15  ;;  %v5322_v28 = vld [vmem:[#allocation150_spill] sm:$0xff]  ;;  %v1073_v20 = vmul.f32 %v1065_v32, %v5323_v1  ;;  %v5331_v13 = vld [vmem:[#allocation113_spill] sm:$0xff] }
 0x187   : > { %v5335_v15 = vld [vmem:[#allocation130_spill] sm:$0xff] }
 0x188   : > { %v1078_v37 = vmul.f32 %v1077_v55, %v5314_v47 }
 0x18a   : > { %v1079_v59 = vadd.f32 %v1078_v37, %v1069_v38 }
 0x18c   : > { %v1080_v5 = vmul.f32 %v1079_v59, %v5317_v49  ;;  %v5330_v49 = vld [vmem:[#allocation136_spill] sm:$0xff] }
 0x18e   : > { %v1081_v58 = vadd.f32 %v1080_v5, %v1070_v17 }
 0x190   : > { %v1082_v29 = vmul.f32 %v1081_v58, %v5320_v43 }
 0x192   : > { %v1083_v41 = vadd.f32 %v1082_v29, %v1071_v39  ;;  %v5334_v29 = vld [vmem:[#allocation129_spill] sm:$0xff] }
 0x194   : > { %v1084_v50 = vmul.f32 %v1083_v41, %v5322_v28  ;;  %v5336_v28 = vld [vmem:[#allocation87_spill] sm:$0xff] }
 0x196   : > { %v1085_v51 = vadd.f32 %v1084_v50, %v1072_v25 }
 0x198   : > { %v1086_v38 = vmul.f32 %v1085_v51, %v5324_v26 }
 0x19a   : > { %v3911_v47 = vadd.f32 %v1086_v38, %v1073_v20  ;;  %v5338_v38 = vld [vmem:[#allocation118_spill] sm:$0xff] }
 0x19c   : > { %5325 = vst [vmem:[#allocation153_spill] sm:$0xff] %v3911_v47  ;;  %v1088_v37 = vmul.f32 %v3911_v47, %v5326_v19 }
 0x19e   : > { %v3915_v23 = vadd.f32 %v1088_v37, %v1085_v51 }
 0x1a0   : > { %5327 = vst [vmem:[#allocation127_spill] sm:$0xff] %v3915_v23  ;;  %v1090_v48 = vmul.f32 %v3915_v23, %v5328_v33  ;;  %v1108_v22 = vsub.f32 %v3915_v23, %v3911_v47  ;;  %v5339_v33 = vld [vmem:[#allocation119_spill] sm:$0xff] }
 0x1a2   : > { %v3921_v17 = vadd.f32 %v1090_v48, %v1083_v41  ;;  %v1133_v5 = vadd.f32 %v5330_v49, %v1108_v22  ;;  %v1161_v39 = vsub.f32 %v5332_v52, %v1108_v22 }
 0x1a4   : > { %5329 = vst [vmem:[#allocation156_spill] sm:$0xff] %v3921_v17  ;;  %v1092_v63 = vmul.f32 %v3921_v17, %v5331_v13  ;;  %v1107_v61 = vsub.f32 %v3921_v17, %v3915_v23  ;;  %v1134_v41 = vmul.f32 %v5252_v34, %v1133_v5  ;;  %v1162_v26 = vmul.f32 %v5232_v14, %v1161_v39 }
 0x1a6   : > { %v3930_v43 = vadd.f32 %v1092_v63, %v1081_v58  ;;  %v1129_v32 = vadd.f32 %v5334_v29, %v1107_v61  ;;  %v1157_v25 = vsub.f32 %v5335_v15, %v1107_v61  ;;  %v1135_v5 = vsub.f32 %v1134_v41, %v3824_v40  ;;  %v5340_v63 = vld [vmem:[#allocation82_spill] sm:$0xff] }
 0x1a7   : > { %v5343_v40 = vsub.f32 0.0, %v5338_v38 }
 0x1a8   : > { %5333 = vst [vmem:[#allocation39_spill] sm:$0xff] %v3930_v43  ;;  %v1094_v50 = vmul.f32 %v3930_v43, %v5336_v28  ;;  %v1106_v1 = vsub.f32 %v3930_v43, %v3921_v17  ;;  %v1130_v20 = vmul.f32 %v2437_v16, %v1129_v32  ;;  %v1158_v51 = vmul.f32 %v5230_v56, %v1157_v25 }
 0x1aa   : > { %v3942_v58 = vadd.f32 %v1094_v50, %v1079_v59  ;;  %v1125_v19 = vadd.f32 %v5338_v38, %v1106_v1  ;;  %v1131_v37 = vsub.f32 %v1130_v20, %v3822_v45  ;;  %v1153_v48 = vsub.f32 %v5339_v33, %v1106_v1 }
 0x1ab   : > { %v1159_v13 = vsub.f32 %v1158_v51, %v3836_v10  ;;  %v5341_v59 = vsub.f32 0.0, %v5334_v29  ;;  %v1163_v50 = vsub.f32 %v1162_v26, %v3838_v62  ;;  %v3962_v41 = vsub.f32 %v5343_v40, %v1106_v1 }
 0x1ac   : > { %5337 = vst [vmem:[#allocation157_spill] sm:$0xff] %v3942_v58  ;;  %v1096_v28 = vmul.f32 %v3942_v58, %v5340_v63  ;;  %v1105_v32 = vsub.f32 %v3942_v58, %v3930_v43  ;;  %v1126_v39 = vmul.f32 %v5180_v42, %v1125_v19  ;;  %v1154_v45 = vmul.f32 %v5181_v11, %v1153_v48  ;;  %v5346_v63 = vld [vmem:[#allocation100_spill] sm:$0xff]  ;;  %v5370_v43 = vld [vmem:[#allocation154_spill] sm:$0xff] }
 0x1ad   : > { %v3956_v25 = vsub.f32 %v5341_v59, %v1107_v61  ;;  %v5344_v10 = vsub.f32 0.0, %v5330_v49  ;;  %v5347_v59 = vld [vmem:[#allocation107_spill] sm:$0xff]  ;;  %v5348_v62 = vsub.f32 0.0, %v5346_v63  ;;  %v3979_v38 = vsub.f32 %v1107_v61, %v5335_v15 }
 0x1ae   : > { %v3968_v51 = vadd.f32 %v1096_v28, %v1077_v55  ;;  %v1121_v19 = vadd.f32 %v5346_v63, %v1105_v32  ;;  %v1127_v29 = vsub.f32 %v1126_v39, %v3820_v57  ;;  %v1149_v47 = vsub.f32 %v5347_v59, %v1105_v32  ;;  %v5350_v55 = vld [vmem:[#allocation77_spill] sm:$0xff] }
 0x1af   : > { %5342 = vst [vmem:[#allocation155_spill] sm:$0xff] %v3956_v25  ;;  %v3966_v20 = vsub.f32 %v5344_v10, %v1108_v22  ;;  %v1155_v48 = vsub.f32 %v1154_v45, %v3834_v12  ;;  %v3976_v26 = vsub.f32 %v5348_v62, %v1105_v32  ;;  %v3982_v49 = vsub.f32 %v1108_v22, %v5332_v52  ;;  %v5354_v10 = vld [vmem:[#allocation94_spill] sm:$0xff] }
 0x1b0   : > { %5345 = vst [vmem:[#allocation38_spill] sm:$0xff] %v3968_v51  ;;  %v1098_v28 = vmul.f32 %v3968_v51, %v5350_v55  ;;  %v1104_v57 = vsub.f32 %v3968_v51, %v3942_v58  ;;  %v3989_v39 = vmul.f32 %v1135_v5, %v5288_v46  ;;  %v1214_v12 = vsub.f32 0.0, %v3956_v25 }
 0x1b1   : > { %5349 = vst [vmem:[#allocation40_spill] sm:$0xff] %v3976_v26  ;;  %v1122_v45 = vmul.f32 %v5189_v4, %v1121_v19  ;;  %v1150_v40 = vmul.f32 %v5190_v36, %v1149_v47  ;;  %v3995_v61 = vmul.f32 %v1163_v50, %v5301_v3  ;;  %v3998_v22 = vsub.f32 %v1106_v1, %v5339_v33 }
 0x1b2   : > { %v4001_v52 = vadd.f32 %v1098_v28, %v3894_v27  ;;  %v4004_v15 = vmul.f32 %v1131_v37, %v5287_v54  ;;  %v4007_v46 = vmul.f32 %v1159_v13, %v5300_v18  ;;  %v1207_v5 = vsub.f32 0.0, %v3962_v41  ;;  %v5357_v27 = vld [vmem:[#allocation72_spill] sm:$0xff]  ;;  %v5358_v18 = vld [vmem:[#allocation105_spill] sm:$0xff] }
 0x1b3   : > { %5351 = vst [vmem:[#allocation41_spill] sm:$0xff] %v3995_v61  ;;  %v1117_v63 = vadd.f32 %v5354_v10, %v1104_v57  ;;  %v1151_v47 = vsub.f32 %v1150_v40, %v3832_v24  ;;  %v5355_v3 = vsub.f32 0.0, %v5354_v10  ;;  %v1200_v1 = vsub.f32 0.0, %v3976_v26  ;;  %v5361_v40 = vld [vmem:[#allocation91_spill] sm:$0xff] }
 0x1b4   : > { %5352 = vst [vmem:[#allocation95_spill] sm:$0xff] %v4001_v52  ;;  %v1100_v33 = vmul.f32 %v4001_v52, %v5357_v27  ;;  %v1103_v54 = vsub.f32 %v4001_v52, %v3968_v51  ;;  %v1145_v37 = vsub.f32 %v5358_v18, %v1104_v57  ;;  %v1215_v13 = vmax.f32 %v1214_v12, 1e-12 }
 0x1b5   : > { %5353 = vst [vmem:[#allocation98_spill] sm:$0xff] %v4007_v46  ;;  %v4014_v50 = vsub.f32 %v5355_v3, %v1104_v57  ;;  %v1123_v19 = vsub.f32 %v1122_v45, %v3818_v53  ;;  %v4024_v62 = vmul.f32 %v1127_v29, %v5286_v9  ;;  %v4027_v24 = vsub.f32 %v1105_v32, %v5347_v59  ;;  %v5362_v3 = vld [vmem:[#allocation93_spill] sm:$0xff] }
 0x1b6   : > { %v4031_v28 = vadd.f32 %v1100_v33, %v3886_v60  ;;  %v1113_v10 = vadd.f32 %v5361_v40, %v1103_v54  ;;  %v1141_v27 = vsub.f32 %v5362_v3, %v1103_v54  ;;  %v4036_v23 = vmul.f32 %v1155_v48, %v5299_v21 }
 0x1b7   : > { %5356 = vst [vmem:[#allocation106_spill] sm:$0xff] %v4014_v50  ;;  %v1193_v55 = vsub.f32 0.0, %v4014_v50  ;;  %v1118_v53 = vmul.f32 %v5193_v6, %v1117_v63  ;;  %v5363_v9 = vsub.f32 0.0, %v5361_v40  ;;  %v1201_v59 = vmax.f32 %v1200_v1, 1e-12  ;;  %v5366_v1 = vld [vmem:[#allocation88_spill] sm:$0xff] }
 0x1b8   : > { %5359 = vst [vmem:[#allocation114_spill] sm:$0xff] %v4027_v24  ;;  %v1102_v12 = vsub.f32 %v4031_v28, %v4001_v52  ;;  %v1114_v60 = vmul.f32 %v5201_v44, %v1113_v10  ;;  %v1142_v45 = vmul.f32 %v5202_v2, %v1141_v27  ;;  %v4048_v33 = vmul.f32 %v5200_v35, %v1145_v37  ;;  %v5367_v40 = vld [vmem:[#allocation92_spill] sm:$0xff]  ;;  %v5385_v52 = vld [vmem:[#allocation50_spill] sm:$0xff] }
 0x1b9   : > { %5360 = vst [vmem:[#allocation121_spill] sm:$0xff] %v4031_v28  ;;  %v4041_v29 = vsub.f32 %v5363_v9, %v1103_v54  ;;  %v1194_v32 = vmax.f32 %v1193_v55, 1e-12  ;;  %v4051_v21 = vmul.f32 %v1123_v19, %v5285_v8  ;;  %v4054_v48 = vsub.f32 %v1104_v57, %v5358_v18  ;;  %v5369_v18 = vld [vmem:[#allocation43_spill] sm:$0xff] }
 0x1ba   : > { %v1109_v55 = vadd.f32 %v5366_v1, %v1102_v12  ;;  %v1137_v9 = vsub.f32 %v5367_v40, %v1102_v12  ;;  %v4060_v10 = vmul.f32 %v1151_v47, %v5298_v30  ;;  %vm1192_vm15 = vcmp.lt.f32.partialorder %v4014_v50, -1e-12 }
 0x1bb   : > { %5364 = vst [vmem:[#allocation131_spill] sm:$0xff] %v4041_v29  ;;  %v1186_v63 = vsub.f32 0.0, %v4041_v29  ;;  %2071 = vrcp.f32 %v1194_v32  ;;  %v1119_v37 = vsub.f32 %v1118_v53, %v3816_v7  ;;  %v5368_v8 = vsub.f32 0.0, %v5366_v1  ;;  %v5372_v1 = vld [vmem:[#allocation37_spill] sm:$0xff] }
 0x1bc   : > { %5365 = vst [vmem:[#allocation140_spill] sm:$0xff] %v4054_v48  ;;  %2073 = vrcp.f32 %v1201_v59  ;;  %v1110_v27 = vmul.f32 %v5369_v18, %v1109_v55  ;;  %v1115_v32 = vsub.f32 %v1114_v60, %v3814_v0  ;;  %v1143_v17 = vsub.f32 %v1142_v45, %v3828_v31  ;;  %v5373_v60 = vld [vmem:[#allocation74_spill] sm:$0xff] }
 0x1bd   : > { %v4066_v19 = vsub.f32 %v5368_v8, %v1102_v12  ;;  %v1187_v57 = vmax.f32 %v1186_v63, 1e-12  ;;  %vm1199_vm0 = vcmp.lt.f32.partialorder %v3976_v26, -1e-12  ;;  %v4075_v47 = vsub.f32 %v1102_v12, %v5367_v40  ;;  %v5371_v63 = vld [vmem:[#allocation42_spill] sm:$0xff]  ;;  %v5374_v40 = vld [vmem:[#allocation69_spill] sm:$0xff] }
 0x1be   : > { %v1208_v53 = vmax.f32 %v1207_v5, 1e-12  ;;  %v1111_v59 = vsub.f32 %v1110_v27, %v5371_v63  ;;  %v1138_v55 = vmul.f32 %v5372_v1, %v1137_v9  ;;  %v4081_v0 = vsub.f32 %v1103_v54, %v5362_v3  ;;  %v5375_v5 = vld [vmem:[#allocation70_spill] sm:$0xff]  ;;  %v5384_v3 = vld [vmem:[#allocation67_spill] sm:$0xff] }
 0x1bf   : > { %v1180_v7 = vsub.f32 0.0, %v4066_v19  ;;  %2075 = vrcp.f32 %v1187_v57  ;;  %v4084_v45 = vmul.f32 %v1119_v37, %v5373_v60  ;;  %v1221_v12 = vsub.f32 0.0, %v3966_v20 }
 0x1c0   : > { %2077 = vrcp.f32 %v1215_v13  ;;  %v4088_v30 = vmul.f32 %v1115_v32, %v5374_v40  ;;  %v4091_v57 = vmul.f32 %v1143_v17, %v5375_v5  ;;  %vm1179_vm1 = vcmp.lt.f32.partialorder %v4066_v19, -1e-12  ;;  %v5376_v13 = vld [vmem:[#allocation55_spill] sm:$0xff]  ;;  %v5378_v32 = vld [vmem:[#allocation36_spill] sm:$0xff]  ;;  %v5379_v40 = vld [vmem:[#allocation54_spill] sm:$0xff] }
 0x1c1   : > { %v2072_v31 = vpop.eup %2071  ;;  %v1181_v8 = vmax.f32 %v1180_v7, 1e-12  ;;  %2079 = vrcp.f32 %v1208_v53  ;;  %vm1185_vm2 = vcmp.lt.f32.partialorder %v4041_v29, -1e-12  ;;  %vm1206_vm3 = vcmp.lt.f32.partialorder %v3962_v41, -1e-12 }
 0x1c2   : > { %v2074_v54 = vpop.eup %2073  ;;  %v1196_v9 = vmul.f32 %v5376_v13, %v2072_v31  ;;  %v1222_v37 = vmax.f32 %v1221_v12, 1e-12  ;;  %v1228_v27 = vsub.f32 0.0, %v4075_v47  ;;  %v5377_v7 = vld [vmem:[#allocation66_spill] sm:$0xff]  ;;  %v1139_v63 = vsub.f32 %v1138_v55, %v5378_v32  ;;  %v5380_v13 = vld [vmem:[#allocation56_spill] sm:$0xff] }
 0x1c3   : > { %2081 = vrcp.f32 %v1181_v8  ;;  %v4099_v53 = vmul.f32 %v1111_v59, %v5377_v7  ;;  %vm1213_vm4 = vcmp.lt.f32.partialorder %v3956_v25, -1e-12  ;;  %v1234_v17 = vsub.f32 0.0, %v4081_v0  ;;  %v5383_v5 = vld [vmem:[#allocation53_spill] sm:$0xff] }
 0x1c4   : > { %v1203_v58 = vmul.f32 %v5379_v40, %v2074_v54  ;;  %vm1227_vm5 = vcmp.lt.f32.partialorder %v4075_v47, -1e-12  ;;  %v1229_v31 = vmax.f32 %v1228_v27, 1e-12  ;;  %v1241_v8 = vsub.f32 0.0, %v4054_v48  ;;  %v5381_v27 = vld [vmem:[#allocation52_spill] sm:$0xff] }
 0x1c5   : > { %v2076_v60 = vpop.eup %2075  ;;  %2083 = vrcp.f32 %v1222_v37  ;;  %vm1233_vm6 = vcmp.lt.f32.partialorder %v4081_v0, -1e-12  ;;  %v1235_v59 = vmax.f32 %v1234_v17, 1e-12  ;;  %v1248_v55 = vsub.f32 0.0, %v4027_v24 }
 0x1c6   : > { %v2078_v12 = vpop.eup %2077  ;;  %v1189_v51 = vmul.f32 %v5380_v13, %v2076_v60  ;;  %v1197_v32 = vsel %vm1192_vm15, %v1196_v9, 1e+10  ;;  %2085 = vrcp.f32 %v1229_v31  ;;  %vm1240_vm7 = vcmp.lt.f32.partialorder %v4054_v48, -1e-12  ;;  %v5382_v31 = vld [vmem:[#allocation57_spill] sm:$0xff] }
 0x1c7   : > { %v2080_v7 = vpop.eup %2079  ;;  %v1242_v54 = vmax.f32 %v1241_v8, 1e-12  ;;  %v1217_v40 = vmul.f32 %v5381_v27, %v2078_v12  ;;  %2087 = vrcp.f32 %v1235_v59  ;;  %vm1247_vm8 = vcmp.lt.f32.partialorder %v4027_v24, -1e-12  ;;  %v5392_v24 = vld [vmem:[#allocation44_spill] sm:$0xff] }
 0x1c8   : > { %v1249_v60 = vmax.f32 %v1248_v55, 1e-12  ;;  %v1190_v17 = vsel %vm1185_vm2, %v1189_v51, 1e+10  ;;  %v1204_v13 = vsel %vm1199_vm0, %v1203_v58, 1e+10  ;;  %v1210_v12 = vmul.f32 %v5383_v5, %v2080_v7 }
 0x1c9   : > { %v2082_v37 = vpop.eup %2081  ;;  %vm1220_vm9 = vcmp.lt.f32.partialorder %v3966_v20, -1e-12  ;;  %2089 = vrcp.f32 %v1242_v54  ;;  %v1255_v9 = vsub.f32 0.0, %v3998_v22  ;;  %v1262_v59 = vsub.f32 0.0, %v3979_v38 }
 0x1ca   : > { %v1183_v8 = vmul.f32 %v5382_v31, %v2082_v37  ;;  %2091 = vrcp.f32 %v1249_v60  ;;  %vm1254_vm10 = vcmp.lt.f32.partialorder %v3998_v22, -1e-12  ;;  %v1269_v51 = vsub.f32 0.0, %v3982_v49 }
 0x1cb   : > { %v1256_v55 = vmax.f32 %v1255_v9, 1e-12  ;;  %v1277_v27 = vsub.f32 0.0, %v4099_v53  ;;  %v2084_v58 = vpop.eup %2083  ;;  %v4128_v26 = vmul.f32 %v1139_v63, %v5384_v3  ;;  %v1218_v7 = vsel %vm1213_vm4, %v1217_v40, 1e+10 }
 0x1cc   : > { %v1184_v54 = vsel %vm1179_vm1, %v1183_v8, 1e+10  ;;  %v1263_v60 = vmax.f32 %v1262_v59, 1e-12  ;;  %v2086_v37 = vpop.eup %2085  ;;  %v1270_v31 = vmax.f32 %v1269_v51, 1e-12 }
 0x1cd   : > { %v1191_v5 = vmin.f32 %v1184_v54, %v1190_v17  ;;  %2093 = vrcp.f32 %v1256_v55  ;;  %v1278_v9 = vmax.f32 %v1277_v27, 1e-12  ;;  %v2088_v50 = vpop.eup %2087  ;;  %v1211_v29 = vsel %vm1206_vm3, %v1210_v12, 1e+10  ;;  %v5386_v8 = vld [vmem:[#allocation49_spill] sm:$0xff]  ;;  %v5387_v59 = vld [vmem:[#allocation51_spill] sm:$0xff] }
 0x1ce   : > { %v1231_v28 = vmul.f32 %v5385_v52, %v2086_v37  ;;  %vm1261_vm11 = vcmp.lt.f32.partialorder %v3979_v38, -1e-12  ;;  %2095 = vrcp.f32 %v1263_v60  ;;  %v1237_v25 = vmul.f32 %v5386_v8, %v2088_v50  ;;  %v5388_v37 = vld [vmem:[#allocation48_spill] sm:$0xff]  ;;  %v5389_v60 = vld [vmem:[#allocation47_spill] sm:$0xff] }
 0x1cf   : > { %v2090_v3 = vpop.eup %2089  ;;  %v1198_v63 = vmin.f32 %v1191_v5, %v1197_v32  ;;  %2097 = vrcp.f32 %v1270_v31  ;;  %v1283_v40 = vsub.f32 0.0, %v4088_v30  ;;  %v1224_v55 = vmul.f32 %v5387_v59, %v2084_v58 }
 0x1d0   : > { %v2092_v17 = vpop.eup %2091  ;;  %v1232_v51 = vsel %vm1227_vm5, %v1231_v28, 1e+10  ;;  %v1244_v12 = vmul.f32 %v5388_v37, %v2090_v3  ;;  %2099 = vrcp.f32 %v1278_v9  ;;  %v1238_v54 = vsel %vm1233_vm6, %v1237_v25, 1e+10 }
 0x1d1   : > { %v1205_v27 = vmin.f32 %v1198_v63, %v1204_v13  ;;  %v1251_v5 = vmul.f32 %v5389_v60, %v2092_v17  ;;  %v1284_v32 = vmax.f32 %v1283_v40, 1e-12  ;;  %v1239_v50 = vmin.f32 %v1232_v51, %v1238_v54  ;;  %v5390_v40 = vld [vmem:[#allocation46_spill] sm:$0xff]  ;;  %v5391_v60 = vld [vmem:[#allocation45_spill] sm:$0xff] }
 0x1d2   : > { %v1245_v31 = vsel %vm1240_vm7, %v1244_v12, 1e+10  ;;  %vm1268_vm12 = vcmp.lt.f32.partialorder %v3982_v49, -1e-12  ;;  %v1290_v58 = vsub.f32 0.0, %v4084_v45  ;;  %v1297_v13 = vsub.f32 0.0, %v4051_v21 }
 0x1d3   : > { %v2094_v8 = vpop.eup %2093  ;;  %v1212_v28 = vmin.f32 %v1205_v27, %v1211_v29  ;;  %v1252_v9 = vsel %vm1247_vm8, %v1251_v5, 1e+10  ;;  %2101 = vrcp.f32 %v1284_v32  ;;  %v1225_v3 = vsel %vm1220_vm9, %v1224_v55, 1e+10 }
 0x1d4   : > { %v2096_v25 = vpop.eup %2095  ;;  %v1246_v63 = vmin.f32 %v1239_v50, %v1245_v31  ;;  %v1258_v17 = vmul.f32 %v5390_v40, %v2094_v8  ;;  %v1291_v51 = vmax.f32 %v1290_v58, 1e-12  ;;  %v1298_v56 = vmax.f32 %v1297_v13, 1e-12  ;;  %v5393_v50 = vld [vmem:[#allocation75_spill] sm:$0xff] }
 0x1d5   : > { %v2098_v12 = vpop.eup %2097  ;;  %v1219_v54 = vmin.f32 %v1212_v28, %v1218_v7  ;;  %v1265_v37 = vmul.f32 %v5391_v60, %v2096_v25  ;;  %v1304_v29 = vsub.f32 0.0, %v4024_v62  ;;  %vm1276_vm13 = vcmp.lt.f32.partialorder %v4099_v53, -1e-12 }
 0x1d6   : > { %v2100_v27 = vpop.eup %2099  ;;  %v1253_v5 = vmin.f32 %v1246_v63, %v1252_v9  ;;  %v1259_v32 = vsel %vm1254_vm10, %v1258_v17, 1e+10  ;;  %v1272_v48 = vmul.f32 %v5392_v24, %v2098_v12  ;;  %2103 = vrcp.f32 %v1291_v51 }
 0x1d7   : > { %v1266_v55 = vsel %vm1261_vm11, %v1265_v37, 1e+10  ;;  %v1280_v7 = vmul.f32 %v5369_v18, %v2100_v27  ;;  %2105 = vrcp.f32 %v1298_v56  ;;  %v5394_v31 = vsub.f32 %v4048_v33, %v5370_v43 }
 0x1d8   : > { %v1260_v8 = vmin.f32 %v1253_v5, %v1259_v32  ;;  %vm1282_vm15 = vcmp.lt.f32.partialorder %v4088_v30, -1e-12  ;;  %v1305_v28 = vmax.f32 %v1304_v29, 1e-12  ;;  %v4173_v13 = vmin.f32 %v1219_v54, %v1225_v3 }
 0x1d9   : > { %v4170_v58 = vmul.f32 %v5394_v31, %v5393_v50  ;;  %v2102_v9 = vpop.eup %2101  ;;  %v1273_v37 = vsel %vm1268_vm12, %v1272_v48, 1e+10  ;;  %v1311_v25 = vsub.f32 0.0, %v4004_v15  ;;  %v1318_v56 = vsub.f32 0.0, %v3989_v39 }
 0x1da   : > { %v1267_v63 = vmin.f32 %v1260_v8, %v1266_v55  ;;  %v1281_v17 = vsel %vm1276_vm13, %v1280_v7, 1e+10  ;;  %v1286_v43 = vmul.f32 %v5201_v44, %v2102_v9  ;;  %2107 = vrcp.f32 %v1305_v28 }
 0x1db   : > { %v1312_v33 = vmax.f32 %v1311_v25, 1e-12  ;;  %v1319_v51 = vmax.f32 %v1318_v56, 1e-12  ;;  %v1325_v12 = vsub.f32 0.0, %v4128_v26  ;;  %v1331_v29 = vsub.f32 0.0, %v4091_v57 }
 0x1dc   : > { %v2104_v3 = vpop.eup %2103  ;;  %v4182_v54 = vmin.f32 %v1267_v63, %v1273_v37  ;;  %v1287_v48 = vsel %vm1282_vm15, %v1286_v43, 1e+10  ;;  %vm1289_vm0 = vcmp.lt.f32.partialorder %v4084_v45, -1e-12  ;;  %vm1296_vm1 = vcmp.lt.f32.partialorder %v4051_v21, -1e-12 }
 0x1dd   : > { %v2106_v27 = vpop.eup %2105  ;;  %v1288_v5 = vmin.f32 %v1281_v17, %v1287_v48  ;;  %v1293_v32 = vmul.f32 %v5193_v6, %v2104_v3  ;;  %2109 = vrcp.f32 %v1312_v33  ;;  %v1326_v55 = vmax.f32 %v1325_v12, 1e-12 }
 0x1de   : > { %v1300_v50 = vmul.f32 %v5189_v4, %v2106_v27  ;;  %2111 = vrcp.f32 %v1319_v51  ;;  %v1332_v31 = vmax.f32 %v1331_v29, 1e-12  ;;  %vm1303_vm2 = vcmp.lt.f32.partialorder %v4024_v62, -1e-12  ;;  %v1486_v29 = vpop.xlane.xlu0 %1485 }
 0x1df   : > { %v1294_v8 = vsel %vm1289_vm0, %v1293_v32, 1e+10  ;;  %2113 = vrcp.f32 %v1326_v55  ;;  %v1338_v28 = vsub.f32 0.0, %v4170_v58  ;;  %v1345_v56 = vsub.f32 0.0, %v4060_v10 }
 0x1e0   : > { %v2108_v9 = vpop.eup %2107  ;;  %v1295_v37 = vmin.f32 %v1288_v5, %v1294_v8  ;;  %v1301_v25 = vsel %vm1296_vm1, %v1300_v50, 1e+10  ;;  %2115 = vrcp.f32 %v1332_v31  ;;  %vm1310_vm3 = vcmp.lt.f32.partialorder %v4004_v15, -1e-12 }
 0x1e1   : > { %v1307_v63 = vmul.f32 %v5180_v42, %v2108_v9  ;;  %v1339_v17 = vmax.f32 %v1338_v28, 1e-12  ;;  %v1352_v43 = vsub.f32 0.0, %v4036_v23  ;;  %vm1317_vm4 = vcmp.lt.f32.partialorder %v3989_v39, -1e-12 }
 0x1e2   : > { %v1302_v33 = vmin.f32 %v1295_v37, %v1301_v25  ;;  %v1346_v51 = vmax.f32 %v1345_v56, 1e-12  ;;  %v1359_v12 = vsub.f32 0.0, %v4007_v46  ;;  %vm1324_vm5 = vcmp.lt.f32.partialorder %v4128_v26, -1e-12 }
 0x1e3   : > { %v2110_v3 = vpop.eup %2109  ;;  %v1308_v48 = vsel %vm1303_vm2, %v1307_v63, 1e+10  ;;  %2117 = vrcp.f32 %v1339_v17  ;;  %v1353_v27 = vmax.f32 %v1352_v43, 1e-12  ;;  %v1366_v28 = vsub.f32 0.0, %v3995_v61 }
 0x1e4   : > { %v2112_v5 = vpop.eup %2111  ;;  %v1309_v32 = vmin.f32 %v1302_v33, %v1308_v48  ;;  %v1314_v55 = vmul.f32 %v2437_v16, %v2110_v3  ;;  %2119 = vrcp.f32 %v1346_v51  ;;  %v1360_v50 = vmax.f32 %v1359_v12, 1e-12 }
 0x1e5   : > { %v2114_v31 = vpop.eup %2113  ;;  %v1321_v8 = vmul.f32 %v5252_v34, %v2112_v5  ;;  %2121 = vrcp.f32 %v1353_v27  ;;  %v1487_v9 = vrot.slane %v1486_v29, 4  ;;  %vm1330_vm6 = vcmp.lt.f32.partialorder %v4091_v57, -1e-12 }
 0x1e6   : > { %v2116_v37 = vpop.eup %2115  ;;  %v1315_v25 = vsel %vm1310_vm3, %v1314_v55, 1e+10  ;;  %v1328_v56 = vmul.f32 %v5372_v1, %v2114_v31  ;;  %2123 = vrcp.f32 %v1360_v50  ;;  %v1367_v33 = vmax.f32 %v1366_v28, 1e-12 }
 0x1e7   : > { %v1316_v63 = vmin.f32 %v1309_v32, %v1315_v25  ;;  %v1322_v17 = vsel %vm1317_vm4, %v1321_v8, 1e+10  ;;  %v1334_v43 = vmul.f32 %v5202_v2, %v2116_v37  ;;  %v1488_v12 = vmax.f32 %v1486_v29, %v1487_v9 }
 0x1e8   : > { %v1329_v51 = vsel %vm1324_vm5, %v1328_v56, 1e+10  ;;  %vm1337_vm7 = vcmp.lt.f32.partialorder %v4170_v58, -1e-12  ;;  %2125 = vrcp.f32 %v1367_v33  ;;  %vm1344_vm8 = vcmp.lt.f32.partialorder %v4060_v10, -1e-12 }
 0x1e9   : > { %v2118_v3 = vpop.eup %2117  ;;  %v1323_v48 = vmin.f32 %v1316_v63, %v1322_v17  ;;  %v1335_v27 = vsel %vm1330_vm6, %v1334_v43, 1e+10  ;;  %v1489_v50 = vrot.slane %v1488_v12, 2  ;;  %vm1351_vm9 = vcmp.lt.f32.partialorder %v4036_v23, -1e-12  ;;  %v5395_v63 = vld [vmem:[#allocation32_spill] sm:$0xff] }
 0x1ea   : > { %v2120_v5 = vpop.eup %2119  ;;  %v1336_v55 = vmin.f32 %v1329_v51, %v1335_v27  ;;  %v1341_v32 = vmul.f32 %v5200_v35, %v2118_v3  ;;  %vm1358_vm10 = vcmp.lt.f32.partialorder %v4007_v46, -1e-12  ;;  %vm1365_vm11 = vcmp.lt.f32.partialorder %v3995_v61, -1e-12 }
 0x1eb   : > { %v2122_v31 = vpop.eup %2121  ;;  %v1348_v8 = vmul.f32 %v5190_v36, %v2120_v5  ;;  %v1490_v37 = vmax.f32 %v1488_v12, %v1489_v50 }
 0x1ec   : > { %v2124_v28 = vpop.eup %2123  ;;  %v1342_v29 = vsel %vm1337_vm7, %v1341_v32, 1e+10  ;;  %v1355_v9 = vmul.f32 %v5181_v11, %v2122_v31  ;;  %v5396_v31 = vmin.f32 %v4173_v13, %v4182_v54  ;;  %v5402_v13 = vld [vmem:[#allocation156_spill] sm:$0xff] }
 0x1ed   : > { %v1343_v25 = vmin.f32 %v1336_v55, %v1342_v29  ;;  %v1349_v56 = vsel %vm1344_vm8, %v1348_v8, 1e+10  ;;  %v1362_v17 = vmul.f32 %v5395_v63, %v2124_v28  ;;  %v1491_v33 = vrot.slane %v1490_v37, 1  ;;  %v5412_v63 = vld [vmem:[#allocation58_spill] sm:$0xff] }
 0x1ee   : > { %v1356_v43 = vsel %vm1351_vm9, %v1355_v9, 1e+10  ;;  %v2126_v51 = vpop.eup %2125  ;;  %v5397_v9 = vld [vmem:[#allocation121_spill] sm:$0xff] }
 0x1ef   : > { %v1350_v3 = vmin.f32 %v1343_v25, %v1349_v56  ;;  %v1363_v27 = vsel %vm1358_vm10, %v1362_v17, 1e+10  ;;  %v1369_v5 = vmul.f32 %v5232_v14, %v2126_v51  ;;  %v1492_v7 = vmax.f32 %v1490_v37, %v1491_v33  ;;  %v5398_v56 = vld [vmem:[#allocation95_spill] sm:$0xff] }
 0x1f0   : > { %v5399_v37 = vld [vmem:[#allocation38_spill] sm:$0xff] }
 0x1f1   : > { %v1357_v32 = vmin.f32 %v1350_v3, %v1356_v43  ;;  %v1370_v36 = vsel %vm1365_vm11, %v1369_v5, 1e+10  ;;  %1663 = vpush %v1492_v7  ;;  %v5400_v7 = vld [vmem:[#allocation157_spill] sm:$0xff]  ;;  %v5403_v51 = vld [vmem:[#allocation127_spill] sm:$0xff] }
 0x1f2   : > { %v5411_v14 = vld [vmem:[#allocation59_spill] sm:$0xff] }
 0x1f3   : > { %v1364_v12 = vmin.f32 %v1357_v32, %v1363_v27  ;;  %v5404_v27 = vld [vmem:[#allocation153_spill] sm:$0xff] }
 0x1f4   : > { %v5405_v32 = vld [vmem:[#allocation65_spill] sm:$0xff] }
 0x1f5   : > { %v1371_v55 = vmin.f32 %v1364_v12, %v1370_v36 }
 0x1f7   : > { %v1372_v50 = vmin.f32 %v1323_v48, %v1371_v55  ;;  %v5401_v48 = vld [vmem:[#allocation39_spill] sm:$0xff] }
 0x1f8   : > { %v5406_v55 = vld [vmem:[#allocation64_spill] sm:$0xff] }
 0x1f9   : > { %v1373_v8 = vmin.f32 %v5396_v31, %v1372_v50  ;;  %v5407_v31 = vld [vmem:[#allocation63_spill] sm:$0xff] }
 0x1fb   : > { %v1374_v28 = vmul.f32 0.99, %v1373_v8 }
 0x1fd   : > { %v4230_v29 = vmin.f32 %v1374_v28, 1.0  ;;  %v5408_v28 = vld [vmem:[#allocation62_spill] sm:$0xff] }
 0x1ff   : > { %v1376_v25 = vmul.f32 %v4230_v29, %v5397_v9  ;;  %v1379_v17 = vmul.f32 %v4230_v29, %v5398_v56  ;;  %v1382_v43 = vmul.f32 %v4230_v29, %v5399_v37  ;;  %v1385_v36 = vmul.f32 %v4230_v29, %v5400_v7  ;;  %v5409_v56 = vld [vmem:[#allocation61_spill] sm:$0xff]  ;;  %v5410_v7 = vld [vmem:[#allocation60_spill] sm:$0xff] }
 0x200   : > { %v1388_v33 = vmul.f32 %v4230_v29, %v5401_v48  ;;  %v1391_v54 = vmul.f32 %v4230_v29, %v5402_v13  ;;  %v1394_v3 = vmul.f32 %v4230_v29, %v5403_v51  ;;  %v1397_v5 = vmul.f32 %v4230_v29, %v5404_v27 }
 0x201   : > { %v1377_v12 = vadd.f32 %v5405_v32, %v1376_v25  ;;  %v1380_v50 = vadd.f32 %v5406_v55, %v1379_v17  ;;  %v1383_v8 = vadd.f32 %v5407_v31, %v1382_v43  ;;  %v1386_v9 = vadd.f32 %v5408_v28, %v1385_v36 }
 0x202   : > { %v1389_v37 = vadd.f32 %v5409_v56, %v1388_v33  ;;  %v1392_v48 = vadd.f32 %v5410_v7, %v1391_v54  ;;  %v1395_v13 = vadd.f32 %v5411_v14, %v1394_v3  ;;  %v1398_v11 = vadd.f32 %v5412_v63, %v1397_v5 }
 0x203   : > { %v4259_v27 = vsel %vm3674_vm14, %v5405_v32, %v1377_v12   ;;  %v4264_v25 = vsel %vm3674_vm14, %v5406_v55, %v1380_v50   ;;  %v4269_v17 = vsel %vm3674_vm14, %v5407_v31, %v1383_v8   ;;  %v4274_v43 = vsel %vm3674_vm14, %v5408_v28, %v1386_v9   ;;  %v5422_v12 = vld [vmem:[#allocation131_spill] sm:$0xff]  ;;  %v5423_v50 = vld [vmem:[#allocation106_spill] sm:$0xff]  ;;  %v5424_v8 = vld [vmem:[#allocation40_spill] sm:$0xff] }
 0x204   : > { %5414 = vst [vmem:[#allocation158_spill] sm:$0xff] %v4259_v27  ;;  %v4279_v56 = vsel %vm3674_vm14, %v5409_v56, %v1389_v37   ;;  %v4284_v33 = vsel %vm3674_vm14, %v5410_v7, %v1392_v48   ;;  %v4289_v3 = vsel %vm3674_vm14, %v5411_v14, %v1395_v13   ;;  %v4294_v5 = vsel %vm3674_vm14, %v5412_v63, %v1398_v11   ;;  %v5425_v9 = vld [vmem:[#allocation155_spill] sm:$0xff]  ;;  %v5428_v37 = vld [vmem:[#allocation56_spill] sm:$0xff] }
 0x205   : > { %5415 = vst [vmem:[#allocation159_spill] sm:$0xff] %v4264_v25  ;;  %v1400_v32 = vmul.f32 %v4230_v29, %v4066_v19  ;;  %v1403_v55 = vmul.f32 %v4230_v29, %v5422_v12  ;;  %v1406_v31 = vmul.f32 %v4230_v29, %v5423_v50  ;;  %v1409_v28 = vmul.f32 %v4230_v29, %v5424_v8  ;;  %v5426_v50 = vld [vmem:[#allocation57_spill] sm:$0xff]  ;;  %v5432_v27 = vld [vmem:[#allocation54_spill] sm:$0xff]  ;;  %v5437_v8 = vld [vmem:[#allocation52_spill] sm:$0xff] }
 0x206   : > { %5416 = vst [vmem:[#allocation160_spill] sm:$0xff] %v4269_v17  ;;  %v1412_v14 = vmul.f32 %v4230_v29, %v3962_v41  ;;  %v1418_v11 = vmul.f32 %v4230_v29, %v3966_v20  ;;  %v1421_v19 = vmul.f32 %v4230_v29, %v4075_v47  ;;  %v5429_v7 = vmov %v5428_v37  ;;  %v5430_v47 = vld [vmem:[#allocation55_spill] sm:$0xff] }
 0x207   : > { %5417 = vst [vmem:[#allocation161_spill] sm:$0xff] %v4274_v43  ;;  %v4313_v63 = vadd.f32 %v5426_v50, %v1400_v32  ;;  %v4316_v48 = vadd.f32 %v5428_v37, %v1403_v55  ;;  %v4319_v13 = vadd.f32 %v5430_v47, %v1406_v31  ;;  %v5433_v25 = vmov %v5432_v27 }
 0x208   : > { %5418 = vst [vmem:[#allocation162_spill] sm:$0xff] %v4279_v56  ;;  %v1415_v56 = vmul.f32 %v4230_v29, %v5425_v9  ;;  %v4322_v41 = vadd.f32 %v5432_v27, %v1409_v28  ;;  %v5438_v36 = vmov %v5437_v8  ;;  %v4331_v9 = vadd.f32 %v5387_v59, %v1418_v11 }
 0x209   : > { %5419 = vst [vmem:[#allocation163_spill] sm:$0xff] %v4284_v33  ;;  %v5431_v61 = vmov %v4319_v13  ;;  %v5434_v33 = vld [vmem:[#allocation53_spill] sm:$0xff]  ;;  %v4334_v32 = vadd.f32 %v5385_v52, %v1421_v19  ;;  %v1424_v28 = vmul.f32 %v4230_v29, %v4081_v0  ;;  %v1433_v13 = vmul.f32 %v4230_v29, %v3998_v22 }
 0x20a   : > { %5420 = vst [vmem:[#allocation164_spill] sm:$0xff] %v4289_v3  ;;  %v5435_v17 = vmov %v5434_v33  ;;  %v4325_v12 = vadd.f32 %v5434_v33, %v1412_v14  ;;  %v4328_v20 = vadd.f32 %v5437_v8, %v1415_v56  ;;  %v5440_v3 = vmov %v4331_v9  ;;  %v5442_v14 = vld [vmem:[#allocation140_spill] sm:$0xff]  ;;  %v5443_v19 = vld [vmem:[#allocation114_spill] sm:$0xff] }
 0x20b   : > { %5421 = vst [vmem:[#allocation165_spill] sm:$0xff] %v4294_v5  ;;  %v5441_v5 = vmov %v4334_v32  ;;  %v1427_v11 = vmul.f32 %v4230_v29, %v5442_v14  ;;  %v1430_v37 = vmul.f32 %v4230_v29, %v5443_v19  ;;  %v1436_v27 = vmul.f32 %v4230_v29, %v3979_v38  ;;  %v5444_v38 = vld [vmem:[#allocation49_spill] sm:$0xff]  ;;  %v5449_v32 = vld [vmem:[#allocation47_spill] sm:$0xff] }
 0x20c   : > { %5427 = vst [vmem:[#allocation166_spill] sm:$0xff] %v4313_v63  ;;  %v5436_v43 = vmov %v4325_v12  ;;  %v5439_v54 = vmov %v4328_v20  ;;  %v1439_v33 = vmul.f32 %v4230_v29, %v3982_v49  ;;  %v1442_v12 = vmul.f32 %v4230_v29, %v4099_v53  ;;  %v5446_v20 = vld [vmem:[#allocation48_spill] sm:$0xff] }
 0x20d   : > { %v1445_v0 = vmul.f32 %v4230_v29, %v4088_v30  ;;  %v4385_v8 = vadd.f32 %v5444_v38, %v1424_v28  ;;  %v5447_v31 = vmov %v5446_v20  ;;  %v4388_v9 = vadd.f32 %v5446_v20, %v1427_v11 }
 0x20e   : > { %v5450_v46 = vmov %v5449_v32  ;;  %v4391_v22 = vadd.f32 %v5449_v32, %v1430_v37  ;;  %v4394_v14 = vadd.f32 %v5390_v40, %v1433_v13  ;;  %v4397_v49 = vadd.f32 %v5391_v60, %v1436_v27 }
 0x20f   : > { %v5445_v55 = vmov %v4385_v8  ;;  %v5448_v56 = vmov %v4388_v9  ;;  %v4400_v53 = vadd.f32 %v5392_v24, %v1439_v33  ;;  %v4403_v30 = vadd.f32 %v5369_v18, %v1442_v12 }
 0x210   : > { %v5451_v63 = vmov %v4391_v22  ;;  %v4406_v28 = vadd.f32 %v5201_v44, %v1445_v0  ;;  %v1429_v37 = vsel %vm3674_vm14, %v5447_v31, %v5448_v56   ;;  %v1435_v32 = vsel %vm3674_vm14, %v5390_v40, %v4394_v14   ;;  %v5475_v56 = vld [vmem:[#allocation162_spill] sm:$0xff] }
 0x211   : > { %v1432_v33 = vsel %vm3674_vm14, %v5450_v46, %v5451_v63   ;;  %v1438_v0 = vsel %vm3674_vm14, %v5391_v60, %v4397_v49   ;;  %v1441_v27 = vsel %vm3674_vm14, %v5392_v24, %v4400_v53   ;;  %v1444_v50 = vsel %vm3674_vm14, %v5369_v18, %v4403_v30   ;;  %v5455_v49 = vld [vmem:[#allocation33_spill] sm:$0xff]  ;;  %v5456_v53 = vld [vmem:[#allocation32_spill] sm:$0xff] }
 0x212   : > { %v1447_v22 = vsel %vm3674_vm14, %v5201_v44, %v4406_v28   ;;  %v1448_v40 = vmul.f32 %v4230_v29, %v4084_v45  ;;  %v1451_v60 = vmul.f32 %v4230_v29, %v4051_v21  ;;  %v1454_v11 = vmul.f32 %v4230_v29, %v4024_v62  ;;  %v5457_v28 = vld [vmem:[#allocation31_spill] sm:$0xff]  ;;  %v5472_v51 = vld [vmem:[#allocation165_spill] sm:$0xff] }
 0x213   : > { %v1457_v24 = vmul.f32 %v4230_v29, %v4004_v15  ;;  %v1460_v18 = vmul.f32 %v4230_v29, %v3989_v39  ;;  %v1463_v19 = vmul.f32 %v4230_v29, %v4128_v26  ;;  %v1466_v44 = vmul.f32 %v4230_v29, %v4091_v57  ;;  %v5453_v57 = vld [vmem:[#allocation41_spill] sm:$0xff] }
 0x214   : > { %v1469_v45 = vmul.f32 %v4230_v29, %v4170_v58  ;;  %v1449_v21 = vadd.f32 %v5193_v6, %v1448_v40  ;;  %v1452_v13 = vadd.f32 %v5189_v4, %v1451_v60  ;;  %v1455_v62 = vadd.f32 %v5180_v42, %v1454_v11  ;;  %v5454_v58 = vld [vmem:[#allocation34_spill] sm:$0xff] }
 0x215   : > { %v1458_v15 = vadd.f32 %v2437_v16, %v1457_v24  ;;  %v1461_v12 = vadd.f32 %v5252_v34, %v1460_v18  ;;  %v1464_v39 = vadd.f32 %v5372_v1, %v1463_v19  ;;  %v1467_v26 = vadd.f32 %v5202_v2, %v1466_v44  ;;  %v5479_v60 = vld [vmem:[#allocation158_spill] sm:$0xff] }
 0x216   : > { %v1470_v8 = vadd.f32 %v5200_v35, %v1469_v45  ;;  %v1450_v21 = vsel %vm3674_vm14, %v5193_v6, %v1449_v21   ;;  %v1453_v20 = vsel %vm3674_vm14, %v5189_v4, %v1452_v13   ;;  %v1456_v19 = vsel %vm3674_vm14, %v5180_v42, %v1455_v62   ;;  %v5452_v42 = vld [vmem:[#allocation98_spill] sm:$0xff] }
 0x217   : > { %v1459_v16 = vsel %vm3674_vm14, %v2437_v16, %v1458_v15   ;;  %v1462_v15 = vsel %vm3674_vm14, %v5252_v34, %v1461_v12   ;;  %v1465_v14 = vsel %vm3674_vm14, %v5372_v1, %v1464_v39   ;;  %v1468_v13 = vsel %vm3674_vm14, %v5202_v2, %v1467_v26  }
 0x218   : > { %v1471_v12 = vsel %vm3674_vm14, %v5200_v35, %v1470_v8   ;;  %v1472_v4 = vmul.f32 %v4230_v29, %v4060_v10  ;;  %v1475_v6 = vmul.f32 %v4230_v29, %v4036_v23  ;;  %v1478_v34 = vmul.f32 %v4230_v29, %v5452_v42 }
 0x219   : > { %v1481_v1 = vmul.f32 %v4230_v29, %v5453_v57  ;;  %v5459_v23 = vmov %v1444_v50  ;;  %v5461_v38 = vsel %vm3674_vm14, %v5444_v38, %v5445_v55   ;;  %v5462_v39 = vsel %vm3674_vm14, %v5385_v52, %v5441_v5   ;;  %v5469_v50 = vld [vmem:[#allocation57_spill] sm:$0xff]  ;;  %v5470_v52 = vld [vmem:[#allocation166_spill] sm:$0xff] }
 0x21a   : > { %v1473_v9 = vadd.f32 %v5454_v58, %v1472_v4  ;;  %v1476_v2 = vadd.f32 %v5455_v49, %v1475_v6  ;;  %v1479_v30 = vadd.f32 %v5456_v53, %v1478_v34  ;;  %v5463_v40 = vsel %vm3674_vm14, %v5387_v59, %v5440_v3   ;;  %v5476_v57 = vld [vmem:[#allocation161_spill] sm:$0xff]  ;;  %v5478_v59 = vld [vmem:[#allocation159_spill] sm:$0xff] }
 0x21b   : > { %v1482_v35 = vadd.f32 %v5457_v28, %v1481_v1  ;;  %v5464_v44 = vsel %vm3674_vm14, %v5438_v36, %v5439_v54   ;;  %v5465_v45 = vsel %vm3674_vm14, %v5435_v17, %v5436_v43   ;;  %v5466_v46 = vsel %vm3674_vm14, %v5433_v25, %v4322_v41  }
 0x21c   : > { %v1474_v11 = vsel %vm3674_vm14, %v5454_v58, %v1473_v9   ;;  %v1477_v10 = vsel %vm3674_vm14, %v5455_v49, %v1476_v2   ;;  %v1480_v9 = vsel %vm3674_vm14, %v5456_v53, %v1479_v30   ;;  %v5467_v47 = vsel %vm3674_vm14, %v5430_v47, %v5431_v61   ;;  %v5474_v53 = vld [vmem:[#allocation163_spill] sm:$0xff]  ;;  %v5477_v58 = vld [vmem:[#allocation160_spill] sm:$0xff] }
 0x21d   : > { %v1483_v8 = vsel %vm3674_vm14, %v5457_v28, %v1482_v35   ;;  %v5460_v28 = vmov %v1438_v0  ;;  %v5468_v49 = vsel %vm3674_vm14, %v5429_v7, %v4316_v48   ;;  %v5471_v50 = vsel %vm3674_vm14, %v5469_v50, %v5470_v52   ;;  %v5473_v52 = vld [vmem:[#allocation164_spill] sm:$0xff] }
 0x222   : > { %s1664_s9 = spop %1663 }
 0x223   : > { %p1494_p0 = scmp.eq.f32.partialorder %s1664_s9, 0.0 }
 0x225   : > { %s1495_s10 = scalar_select %p1494_p0, 1, 0 }
 0x227   : > { %p193_p2 = scmp.eq.s32.totalorder %s1495_s10, 0 }
 0x229   : > { %p4514_p3 = pnand %p193_p2, %p192_p1 }
 0x22a   :  { %v5481_v61 = vld [vmem:[#allocation158_spill] sm:$0xff] (%p4514_p3)  ;;  %v5482_v29 = vld [vmem:[#allocation159_spill] sm:$0xff] (%p4514_p3)  ;;  %v5483_v25 = vld [vmem:[#allocation160_spill] sm:$0xff] (%p4514_p3)  ;;  %s2558_s12 = smov (%p4514_p3), [#allocation10]   ;;  %s1518_s16 = sshll.u32 (%p4514_p3), %s4677_s4, 4  ;;  %s1519_s16 = int_to_ptr.hbm [resolvable:$true] %s1518_s16 }
 0x22b   :  { %197 = sbr.rel (!%p4514_p3) target bundleno = 41 (0x29), region = 66  ;;  %1497 = vst [vmem:[#allocation10] sm:$0xff] (%p4514_p3), %v5481_v61  ;;  %s1516_s13 = sshll.u32 (%p4514_p3), %s2558_s12, 4  ;;  %v5484_v17 = vld [vmem:[#allocation161_spill] sm:$0xff] (%p4514_p3)  ;;  %v5485_v43 = vld [vmem:[#allocation162_spill] sm:$0xff] (%p4514_p3)  ;;  %v5486_v36 = vld [vmem:[#allocation163_spill] sm:$0xff] (%p4514_p3)  ;;  %s1517_s13 = int_to_ptr.vmem [resolvable:$true] %s1516_s13 }
 0x22c   :  { %1499 = vst [vmem:[#allocation10 + $0x8] sm:$0xff] (%p4514_p3), %v5482_v29  ;;  %v5487_v16 = vld [vmem:[#allocation164_spill] sm:$0xff] (%p4514_p3)  ;;  %v5488_v23 = vld [vmem:[#allocation165_spill] sm:$0xff] (%p4514_p3) }
 0x22d   :  { %1501 = vst [vmem:[#allocation10 + $0x10] sm:$0xff] (%p4514_p3), %v5483_v25 }
 0x22e   :  { %1503 = vst [vmem:[#allocation10 + $0x18] sm:$0xff] (%p4514_p3), %v5484_v17 }
 0x22f   :  { %1505 = vst [vmem:[#allocation10 + $0x20] sm:$0xff] (%p4514_p3), %v5485_v43 }
 0x230   :  { %1507 = vst [vmem:[#allocation10 + $0x28] sm:$0xff] %v5486_v36 }
 0x231   :  { %1509 = vst [vmem:[#allocation10 + $0x30] sm:$0xff] %v5487_v16 }
 0x232   :  { %1511 = vst [vmem:[#allocation10 + $0x38] sm:$0xff] %v5488_v23 }
 0x233   :  { %1524 = dma.vmem_to_hbm [thread:$0]  %s1517_s13, 1024, %s1519_s16, [#allocation4], %s2552_s23, %s2552_s23, %s2553_s24  }
 0x234   :  { %2401 = dma.done.wait [#allocation4], 1024  }
 0x235   :  { %2402 = vsyncadd [#allocation4], 4294966272 }
 0x236   :  { %1529 = vsyncpa [#allocation3], 1 }
 0x237   :  { %1530 = vsyncpa [#allocation6], 1 }
 0x238   :  { %1531 = vsyncpa [#allocation9], 1 }
 0x239   :  { %1532 = vsyncpa [#allocation4], 1 }

</bundles_post_ra>
